<compile_context>
chip_gen: v6e
topology: v6e:2x2x1
jax: 0.10.0
libtpu: 0.0.40
codegen_flags: <defaults>
</compile_context>

<pallas_src>
import functools

import jax
import jax.numpy as jnp
import numpy as np
from jax.experimental import pallas as pl
from jax.experimental.pallas import tpu as pltpu

_BN_EPS = 1e-5
_LANE = 128


def _default_vmem_limit():
    cap = 64 * 1024 * 1024
    try:
        cap = int(pltpu.get_tpu_info().vmem_capacity_bytes)
    except Exception:
        pass
    # 3/4 of physical, capped at 96 MiB (v5e/v6e), floored at the 32 MiB default.
    return max(32 * 1024 * 1024, min(96 * 1024 * 1024, (cap * 3) // 4))


_VMEM_LIMIT = _default_vmem_limit()


def _round_up(x, m):
    return (x + m - 1) // m * m


# -----------------------------------------------------------------------------
# Kernel A: implicit-im2col conv (sum of K*K shifted matmuls) + partial BN stats
#           with an optional fused BN+ReLU input prologue (used by conv2).
# -----------------------------------------------------------------------------
def _conv_stats_kernel(*refs, taps, stride, n_ph, ho, wo, tile_n, cout_blk,
                       prologue, pad, h_in, w_in):
    n_phase = n_ph * n_ph
    phase_refs = refs[:n_phase]
    idx = n_phase
    w_ref = refs[idx]
    idx += 1
    if prologue:
        psc_ref, psh_ref = refs[idx], refs[idx + 1]
        idx += 2
    y_ref, stats_ref = refs[idx], refs[idx + 1]

    j = pl.program_id(1)
    cs = pl.multiple_of(j * cout_blk, cout_blk)      # lane-aligned cout offset
    tile_m = tile_n * ho * wo

    if prologue:
        # Fused bn1 + ReLU on the (single, stride-1) phase tile.  The spatial
        # halo was zero-padded *before* BN, so it must be re-zeroed after the
        # affine transform (relu(shift) is generally nonzero).
        t = phase_refs[0][...].astype(jnp.float32)
        sc = psc_ref[...].reshape(1, 1, 1, -1)
        sh = psh_ref[...].reshape(1, 1, 1, -1)
        t = jnp.maximum(t * sc + sh, 0.0)
        rr = jax.lax.broadcasted_iota(jnp.int32, t.shape, 1)
        cc = jax.lax.broadcasted_iota(jnp.int32, t.shape, 2)
        valid = (rr >= pad) & (rr < pad + h_in) & (cc >= pad) & (cc < pad + w_in)
        t = jnp.where(valid, t, 0.0)
        tiles_f32 = [t]
    else:
        # Upcast each phase tile once (not per tap) so each tap only pays a
        # slice + reshape + single downcast.
        tiles_f32 = [phase_refs[p][...].astype(jnp.float32) for p in range(n_phase)]

    acc = jnp.zeros((tile_m, cout_blk), jnp.float32)
    for ti, (kh, kw) in enumerate(taps):
        pi = (kh % stride) * n_ph + (kw % stride)
        qh, qw = kh // stride, kw // stride
        win = tiles_f32[pi][:, qh:qh + ho, qw:qw + wo, :]
        win = win.reshape(tile_m, win.shape[-1]).astype(jnp.bfloat16)
        wblk = w_ref[ti, :, pl.ds(cs, cout_blk)]
        acc = acc + jnp.dot(win, wblk, preferred_element_type=jnp.float32)

    y_ref[...] = acc.astype(y_ref.dtype)

    # Per-tile partial BN statistics (row 0 = sum, row 1 = sum of squares).
    s0 = jnp.sum(acc, axis=0, keepdims=True)
    s1 = jnp.sum(acc * acc, axis=0, keepdims=True)
    row = jax.lax.broadcasted_iota(jnp.int32, (8, cout_blk), 0)
    stats = jnp.where(row == 0, s0, 0.0) + jnp.where(row == 1, s1, 0.0)
    stats_ref[...] = stats.reshape(1, 8, cout_blk)


def _make_phases(x_nhwc, k, stride, pad, cin_pad):
    """Split the padded NHWC activation into stride-phase views (no expansion).

    Tap (kh, kw) of a k x k / stride-s conv reads phase (kh % s, kw % s) at the
    contiguous offset (kh // s, kw // s), so the kernel never needs strided loads.
    """
    n, h, w, c = x_nhwc.shape
    ho = (h + 2 * pad - k) // stride + 1
    wo = (w + 2 * pad - k) // stride + 1
    q = (k - 1) // stride
    n_ph = min(stride, k)
    xp = jnp.pad(x_nhwc, ((0, 0), (pad, pad), (pad, pad), (0, cin_pad - c)))
    phases = []
    for ph in range(n_ph):
        for pw in range(n_ph):
            sub = xp[:, ph::stride, pw::stride, :][:, :ho + q, :wo + q, :]
            dh, dw = ho + q - sub.shape[1], wo + q - sub.shape[2]
            if dh or dw:
                sub = jnp.pad(sub, ((0, 0), (0, dh), (0, dw), (0, 0)))
            phases.append(sub.astype(jnp.bfloat16))
    return phases, n_ph, (n, ho, wo)


def _pick_tile_n(n, ho, wo, target_rows=1024):
    """Largest image-tile whose row count stays near `target_rows` and keeps the
    collapsed second-minor block dim a multiple of 8.  If no tile fits under the
    target, the smallest legal tile is used (bounds VMEM instead of blowing up)."""
    rows = ho * wo
    best = None
    fallback = None
    for t in range(1, n + 1):
        if n % t != 0 or (t * rows) % 8 != 0:
            continue
        if fallback is None:
            fallback = t
        if t * rows <= target_rows:
            best = t
    if best is not None:
        return best
    if fallback is not None:
        return fallback
    # TODO(synk): pad M to a multiple of 8 instead of using the full batch.
    return n


def conv2d_bn_stats(x_nhwc, w_taps, k, stride, pad, *, cout_blk=_LANE,
                    pre_scale=None, pre_shift=None, target_rows=1024):
    """Implicit-im2col conv.  Returns (y[M, cout_pad] bf16, partial stats, dims).

    If pre_scale/pre_shift are given (shape (1, cin_pad)), a fused
    relu(x * scale + shift) prologue is applied to the loaded activation tiles
    (stride-1 convs only) — used to fold bn1+relu into conv2.
    """
    kk, cin_pad, cout_pad = w_taps.shape
    assert kk == k * k
    fuse = pre_scale is not None
    if fuse:
        assert stride == 1, "fused BN/ReLU prologue requires stride 1"
    h_in, w_in = x_nhwc.shape[1], x_nhwc.shape[2]

    phases, n_ph, (n, ho, wo) = _make_phases(x_nhwc, k, stride, pad, cin_pad)
    taps = [(kh, kw) for kh in range(k) for kw in range(k)]
    tile_n = _pick_tile_n(n, ho, wo, target_rows=target_rows)
    n_tiles = n // tile_n
    tile_m = tile_n * ho * wo
    m_total = n * ho * wo
    cout_blk = min(cout_blk, cout_pad)
    cout_tiles = cout_pad // cout_blk

    phase_specs = [
        pl.BlockSpec((tile_n,) + p.shape[1:], lambda i, j: (i, 0, 0, 0))
        for p in phases
    ]
    # Full weight block with a constant index_map: loaded once, VMEM-resident
    # across the entire grid; the kernel slices its cout block with pl.ds.
    w_spec = pl.BlockSpec((kk, cin_pad, cout_pad), lambda i, j: (0, 0, 0))
    y_spec = pl.BlockSpec((tile_m, cout_blk), lambda i, j: (i, j))
    st_spec = pl.BlockSpec((1, 8, cout_blk), lambda i, j: (i, 0, j))

    in_specs = phase_specs + [w_spec]
    args = list(phases) + [w_taps]
    if fuse:
        vec_spec = pl.BlockSpec((1, cin_pad), lambda i, j: (0, 0))
        in_specs += [vec_spec, vec_spec]
        args += [pre_scale, pre_shift]

    kernel = functools.partial(
        _conv_stats_kernel, taps=taps, stride=stride, n_ph=n_ph,
        ho=ho, wo=wo, tile_n=tile_n, cout_blk=cout_blk,
        prologue=fuse, pad=pad, h_in=h_in, w_in=w_in)

    y, stats = pl.pallas_call(
        kernel,
        grid=(n_tiles, cout_tiles),
        in_specs=in_specs,
        out_specs=[y_spec, st_spec],
        out_shape=[
            jax.ShapeDtypeStruct((m_total, cout_pad), jnp.bfloat16),
            jax.ShapeDtypeStruct((n_tiles, 8, cout_pad), jnp.float32),
        ],
        compiler_params=pltpu.CompilerParams(
            dimension_semantics=("parallel", "parallel"),
            vmem_limit_bytes=_VMEM_LIMIT),
    )(*args)
    return y, stats, (n, ho, wo)


def _bn_fold(stats, count, gamma, beta, cout_pad):
    """Reduce per-tile stats; fold training-mode BN (biased var) into scale/shift."""
    ssum = jnp.sum(stats[:, 0, :], axis=0)
    ssq = jnp.sum(stats[:, 1, :], axis=0)
    mean = ssum / count
    var = jnp.maximum(ssq / count - mean * mean, 0.0)   # guard cancellation
    inv = jax.lax.rsqrt(var + _BN_EPS)
    g = jnp.pad(gamma, (0, cout_pad - gamma.shape[0]))
    b = jnp.pad(beta, (0, cout_pad - beta.shape[0]))
    scale = (g * inv).astype(jnp.float32)
    shift = (b - mean * g * inv).astype(jnp.float32)
    return scale.reshape(1, -1), shift.reshape(1, -1)


# -----------------------------------------------------------------------------
# Kernel B: folded BN (+ shortcut-BN + residual add) (+ ReLU), tiled elementwise
# -----------------------------------------------------------------------------
def _bn_act_kernel(y_ref, sc_ref, sh_ref, o_ref, *, relu):
    out = y_ref[...].astype(jnp.float32) * sc_ref[...] + sh_ref[...]
    if relu:
        out = jnp.maximum(out, 0.0)
    o_ref[...] = out.astype(o_ref.dtype)


def _bn_res_act_kernel(y_ref, sc_ref, sh_ref, r_ref, rsc_ref, rsh_ref, o_ref, *, relu):
    out = y_ref[...].astype(jnp.float32) * sc_ref[...] + sh_ref[...]
    out = out + (r_ref[...].astype(jnp.float32) * rsc_ref[...] + rsh_ref[...])
    if relu:
        out = jnp.maximum(out, 0.0)
    o_ref[...] = out.astype(o_ref.dtype)


def _pick_tile_m(m, target=1024):
    if m <= target:
        return m
    best = None
    for t in range(8, target + 1, 8):
        if m % t == 0:
            best = t
    return best if best is not None else m


def bn_act_pallas(y, scale, shift, residual=None, res_scale=None, res_shift=None,
                  *, relu=True, out_dtype=jnp.float32, cout_blk=_LANE):
    m, cout_pad = y.shape
    cout_blk = min(cout_blk, cout_pad)
    tile_m = _pick_tile_m(m)
    grid = (m // tile_m, cout_pad // cout_blk)
    big = pl.BlockSpec((tile_m, cout_blk), lambda i, j: (i, j))
    vec = pl.BlockSpec((1, cout_blk), lambda i, j: (0, j))

    if residual is None:
        args = (y, scale, shift)
        in_specs = [big, vec, vec]
        kernel = functools.partial(_bn_act_kernel, relu=relu)
    else:
        args = (y, scale, shift, residual, res_scale, res_shift)
        in_specs = [big, vec, vec, big, vec, vec]
        kernel = functools.partial(_bn_res_act_kernel, relu=relu)

    return pl.pallas_call(
        kernel,
        grid=grid,
        in_specs=in_specs,
        out_specs=big,
        out_shape=jax.ShapeDtypeStruct((m, cout_pad), out_dtype),
        compiler_params=pltpu.CompilerParams(
            dimension_semantics=("parallel", "parallel"),
            vmem_limit_bytes=_VMEM_LIMIT),
    )(*args)


# ------------------------------ module wrapper --------------------------------
def _pack_weight_taps(w_oihw, cin_pad, cout_pad):
    """PyTorch (Cout,Cin,K,K) -> (K*K, Cin_pad, Cout_pad) bf16, (kh,kw) row-major."""
    cout, cin, kh, kw = w_oihw.shape
    wt = jnp.transpose(w_oihw, (2, 3, 1, 0)).reshape(kh * kw, cin, cout)
    wt = jnp.pad(wt, ((0, 0), (0, cin_pad - cin), (0, cout_pad - cout)))
    return wt.astype(jnp.bfloat16)


class BasicBlockPallas:
    """Mirrors torch BasicBlock(in_planes, planes, stride) in training mode."""

    def __init__(self, in_planes, planes, stride=1, key=jax.random.PRNGKey(0)):
        self.in_planes, self.planes, self.stride = in_planes, planes, stride
        self.has_proj = (stride != 1) or (in_planes != planes)
        self.cin_pad = _round_up(in_planes, _LANE)
        self.cout_pad = _round_up(planes, _LANE)
        ks = jax.random.split(key, 9)
        f32 = jnp.float32
        self.w1 = 0.1 * jax.random.normal(ks[0], (planes, in_planes, 3, 3), f32)
        self.w2 = 0.1 * jax.random.normal(ks[1], (planes, planes, 3, 3), f32)
        self.g1 = 1.0 + 0.1 * jax.random.normal(ks[2], (planes,), f32)
        self.b1 = 0.1 * jax.random.normal(ks[3], (planes,), f32)
        self.g2 = 1.0 + 0.1 * jax.random.normal(ks[4], (planes,), f32)
        self.b2 = 0.1 * jax.random.normal(ks[5], (planes,), f32)
        if self.has_proj:
            self.ws = 0.1 * jax.random.normal(ks[6], (planes, in_planes, 1, 1), f32)
            self.gs = 1.0 + 0.1 * jax.random.normal(ks[7], (planes,), f32)
            self.bs = 0.1 * jax.random.normal(ks[8], (planes,), f32)
        # Packed per-tap weights (128-lane padded, bf16 MXU operands).
        self.w1_taps = _pack_weight_taps(self.w1, self.cin_pad, self.cout_pad)
        self.w2_taps = _pack_weight_taps(self.w2, self.cout_pad, self.cout_pad)
        if self.has_proj:
            self.ws_taps = _pack_weight_taps(self.ws, self.cin_pad, self.cout_pad)
        self._forward = jax.jit(self._forward_impl)

    def __call__(self, x_nchw):
        return self._forward(x_nchw)

    def _forward_impl(self, x_nchw):
        planes, cpad = self.planes, self.cout_pad
        # NCHW -> NHWC once at entry; everything stays NHWC until the exit transpose.
        x = jnp.transpose(x_nchw, (0, 2, 3, 1)).astype(jnp.float32)

        # conv1 (3x3, stride) + partial BN stats; bn1 is folded into scale/shift
        # and fused into conv2's input prologue (no HBM round trip of out1).
        y1, st1, (n, h1, w1) = conv2d_bn_stats(x, self.w1_taps, 3, self.stride, 1)
        m1 = n * h1 * w1
        sc1, sh1 = _bn_fold(st1, m1, self.g1, self.b1, cpad)

        # conv2 (3x3, stride 1) with fused relu(bn1(.)) prologue + partial stats.
        y1_nhwc = y1.reshape(n, h1, w1, cpad)
        y2, st2, _ = conv2d_bn_stats(y1_nhwc, self.w2_taps, 3, 1, 1,
                                     pre_scale=sc1, pre_shift=sh1)
        sc2, sh2 = _bn_fold(st2, m1, self.g2, self.b2, cpad)

        # Shortcut: projection (1x1 conv + BN via the same fused kernel) or identity.
        if self.has_proj:
            ys, sts, _ = conv2d_bn_stats(x, self.ws_taps, 1, self.stride, 0)
            rsc, rsh = _bn_fold(sts, m1, self.gs, self.bs, cpad)
            residual = ys
        else:
            residual = jnp.pad(x, ((0, 0), (0, 0), (0, 0), (0, cpad - x.shape[-1])))
            residual = residual.reshape(m1, cpad)
            rsc = jnp.ones((1, cpad), jnp.float32)
            rsh = jnp.zeros((1, cpad), jnp.float32)

        # bn2 + shortcut-BN + residual add + relu fused in one elementwise kernel.
        out = bn_act_pallas(y2, sc2, sh2, residual, rsc, rsh,
                            relu=True, out_dtype=jnp.float32)
        out = out[:, :planes].reshape(n, h1, w1, planes)
        return jnp.transpose(out, (0, 3, 1, 2))  # NHWC -> NCHW


# ----------------------------- pure-JAX reference ------------------------------
def _ref_block(blk: BasicBlockPallas, x_nchw):
    def conv(x, w, stride, pad):
        return jax.lax.conv_general_dilated(
            x, w, (stride, stride), [(pad, pad), (pad, pad)],
            dimension_numbers=("NCHW", "OIHW", "NCHW"))

    def bn(y, g, b):
        mean = y.mean(axis=(0, 2, 3), keepdims=True)
        var = ((y - mean) ** 2).mean(axis=(0, 2, 3), keepdims=True)
        return ((y - mean) * jax.lax.rsqrt(var + _BN_EPS)
                * g.reshape(1, -1, 1, 1) + b.reshape(1, -1, 1, 1))

    out = jax.nn.relu(bn(conv(x_nchw, blk.w1, blk.stride, 1), blk.g1, blk.b1))
    out = bn(conv(out, blk.w2, 1, 1), blk.g2, blk.b2)
    if blk.has_proj:
        sc = bn(conv(x_nchw, blk.ws, blk.stride, 0), blk.gs, blk.bs)
    else:
        sc = x_nchw
    return jax.nn.relu(out + sc)


# ----------------------------------- main ---------------------------------------
if __name__ == "__main__":
    key = jax.random.PRNGKey(0)
    kx, kp = jax.random.split(key)

    # Small shapes: batch=2, in_planes=4, planes=8, stride=2, spatial=16x16
    N, C_IN, PLANES, STRIDE, H, W = 2, 4, 8, 2, 16, 16
    x = jax.random.normal(kx, (N, C_IN, H, W), jnp.float32)

    block = BasicBlockPallas(C_IN, PLANES, stride=STRIDE, key=kp)

    out = jax.block_until_ready(block(x))
    ref = jax.block_until_ready(_ref_block(block, x))

    assert out.shape == (N, PLANES, H // STRIDE, W // STRIDE), out.shape
    np.testing.assert_allclose(np.asarray(out), np.asarray(ref),
                               rtol=5e-2, atol=1e-1)
    print("KERNEL_OK")
</pallas_src>

<mosaic_0001>
module attributes {stable_mosaic.version = 11 : i64} {
  func.func @_conv_stats_kernel(%arg0: i32, %arg1: i32, %arg2: memref<2x8x8x128xbf16, #tpu.memory_space<vmem>>, %arg3: memref<1x128x128xbf16, #tpu.memory_space<vmem>>, %arg4: memref<128x128xbf16, #tpu.memory_space<vmem>>, %arg5: memref<1x8x128xf32, #tpu.memory_space<vmem>>) attributes {dimension_semantics = [#tpu.dimension_semantics<parallel>, #tpu.dimension_semantics<parallel>], iteration_bounds = array<i64: 1, 1>, scalar_prefetch = 0 : i64, scratch_operands = 0 : i64, tpu.core_type = #tpu.core_type<tc>, window_params = [{transform_indices = @transform_0, window_bounds = array<i64: 2, 8, 8, 128>}, {pipeline_mode = #tpu.pipeline_mode<synchronous>, transform_indices = @transform_1, window_bounds = array<i64: 1, 128, 128>}, {transform_indices = @transform_2, window_bounds = array<i64: 128, 128>}, {transform_indices = @transform_3, window_bounds = array<i64: 1, 8, 128>}]} {
    %c128_i32 = arith.constant 128 : i32
    %0 = arith.muli %arg1, %c128_i32 : i32
    %1 = tpu.assume_multiple %0, 128 : i32
    %c0 = arith.constant 0 : index
    %c0_0 = arith.constant 0 : index
    %c0_1 = arith.constant 0 : index
    %c0_2 = arith.constant 0 : index
    %2 = vector.load %arg2[%c0, %c0_0, %c0_1, %c0_2] : memref<2x8x8x128xbf16, #tpu.memory_space<vmem>>, vector<2x8x8x128xbf16>
    %3 = arith.extf %2 : vector<2x8x8x128xbf16> to vector<2x8x8x128xf32>
    %cst = arith.constant 0.000000e+00 : f32
    %4 = vector.broadcast %cst : f32 to vector<128x128xf32>
    %5 = vector.shape_cast %3 : vector<2x8x8x128xf32> to vector<128x128xf32>
    %6 = arith.truncf %5 : vector<128x128xf32> to vector<128x128xbf16>
    %c0_3 = arith.constant 0 : index
    %c0_4 = arith.constant 0 : index
    %7 = arith.index_cast %1 : i32 to index
    %8 = vector.load %arg3[%c0_3, %c0_4, %7] : memref<1x128x128xbf16, #tpu.memory_space<vmem>>, vector<1x128x128xbf16>
    %9 = vector.shape_cast %8 : vector<1x128x128xbf16> to vector<128x128xbf16>
    %cst_5 = arith.constant dense<0.000000e+00> : vector<128x128xf32>
    %10 = tpu.matmul %6, %9, %cst_5 {dimension_numbers = #tpu.dot_dimension_numbers<[1], [0], [0], [1], [0, 0, 1, 1], [], []>} : vector<128x128xbf16>, vector<128x128xbf16>, vector<128x128xf32> -> vector<128x128xf32>
    %11 = arith.addf %4, %10 : vector<128x128xf32>
    %12 = arith.truncf %11 : vector<128x128xf32> to vector<128x128xbf16>
    %c0_6 = arith.constant 0 : index
    %c0_7 = arith.constant 0 : index
    %13 = vector.load %arg4[%c0_6, %c0_7] : memref<128x128xbf16, #tpu.memory_space<vmem>>, vector<128x128xbf16>
    tpu.vector_store %arg4[%c0_6, %c0_7], %12 {strides = array<i32>} : memref<128x128xbf16, #tpu.memory_space<vmem>>, vector<128x128xbf16>,
    %cst_8 = arith.constant dense<0.000000e+00> : vector<128xf32>
    %14 = vector.multi_reduction <add>, %11, %cst_8 [0] : vector<128x128xf32> to vector<128xf32>
    %15 = vector.shape_cast %14 : vector<128xf32> to vector<1x128xf32>
    %16 = arith.mulf %11, %11 : vector<128x128xf32>
    %cst_9 = arith.constant dense<0.000000e+00> : vector<128xf32>
    %17 = vector.multi_reduction <add>, %16, %cst_9 [0] : vector<128x128xf32> to vector<128xf32>
    %18 = vector.shape_cast %17 : vector<128xf32> to vector<1x128xf32>
    %19 = tpu.iota {dimensions = array<i32: 0>} : vector<8x128xi32>
    %c0_i32 = arith.constant 0 : i32
    %20 = vector.broadcast %c0_i32 : i32 to vector<8x128xi32>
    %21 = arith.cmpi eq, %19, %20 : vector<8x128xi32>
    %cst_10 = arith.constant 0.000000e+00 : f32
    %22 = vector.shape_cast %15 : vector<1x128xf32> to vector<1x128xf32>
    %23 = vector.broadcast %22 : vector<1x128xf32> to vector<8x128xf32>
    %24 = vector.broadcast %cst_10 : f32 to vector<8x128xf32>
    %25 = arith.select %21, %23, %24 : vector<8x128xi1>, vector<8x128xf32>
    %c1_i32 = arith.constant 1 : i32
    %26 = vector.broadcast %c1_i32 : i32 to vector<8x128xi32>
    %27 = arith.cmpi eq, %19, %26 : vector<8x128xi32>
    %cst_11 = arith.constant 0.000000e+00 : f32
    %28 = vector.shape_cast %18 : vector<1x128xf32> to vector<1x128xf32>
    %29 = vector.broadcast %28 : vector<1x128xf32> to vector<8x128xf32>
    %30 = vector.broadcast %cst_11 : f32 to vector<8x128xf32>
    %31 = arith.select %27, %29, %30 : vector<8x128xi1>, vector<8x128xf32>
    %32 = arith.addf %25, %31 : vector<8x128xf32>
    %33 = vector.shape_cast %32 : vector<8x128xf32> to vector<1x8x128xf32>
    %c0_12 = arith.constant 0 : index
    %c0_13 = arith.constant 0 : index
    %c0_14 = arith.constant 0 : index
    %34 = vector.load %arg5[%c0_12, %c0_13, %c0_14] : memref<1x8x128xf32, #tpu.memory_space<vmem>>, vector<1x8x128xf32>
    tpu.vector_store %arg5[%c0_12, %c0_13, %c0_14], %33 {strides = array<i32>} : memref<1x8x128xf32, #tpu.memory_space<vmem>>, vector<1x8x128xf32>,
    return
  }
  func.func @transform_0(%arg0: i32, %arg1: i32) -> (i32, i32, i32, i32) {
    %c0_i32 = arith.constant 0 : i32
    %c0_i32_0 = arith.constant 0 : i32
    %c0_i32_1 = arith.constant 0 : i32
    %c0_i32_2 = arith.constant 0 : i32
    return %arg0, %c0_i32, %c0_i32_0, %c0_i32_1 : i32, i32, i32, i32
  }
  func.func @transform_1(%arg0: i32, %arg1: i32) -> (i32, i32, i32) {
    %c0_i32 = arith.constant 0 : i32
    %c0_i32_0 = arith.constant 0 : i32
    %c0_i32_1 = arith.constant 0 : i32
    %c0_i32_2 = arith.constant 0 : i32
    return %c0_i32, %c0_i32_0, %c0_i32_1 : i32, i32, i32
  }
  func.func @transform_2(%arg0: i32, %arg1: i32) -> (i32, i32) {
    %c0_i32 = arith.constant 0 : i32
    return %arg0, %arg1 : i32, i32
  }
  func.func @transform_3(%arg0: i32, %arg1: i32) -> (i32, i32, i32) {
    %c0_i32 = arith.constant 0 : i32
    %c0_i32_0 = arith.constant 0 : i32
    return %arg0, %c0_i32, %arg1 : i32, i32, i32
  }
}

module attributes {stable_mosaic.version = 11 : i64} {
  func.func @_conv_stats_kernel(%arg0: i32, %arg1: i32, %arg2: memref<2x10x10x128xbf16, #tpu.memory_space<vmem>>, %arg3: memref<9x128x128xbf16, #tpu.memory_space<vmem>>, %arg4: memref<1x128xf32, #tpu.memory_space<vmem>>, %arg5: memref<1x128xf32, #tpu.memory_space<vmem>>, %arg6: memref<128x128xbf16, #tpu.memory_space<vmem>>, %arg7: memref<1x8x128xf32, #tpu.memory_space<vmem>>) attributes {dimension_semantics = [#tpu.dimension_semantics<parallel>, #tpu.dimension_semantics<parallel>], iteration_bounds = array<i64: 1, 1>, scalar_prefetch = 0 : i64, scratch_operands = 0 : i64, tpu.core_type = #tpu.core_type<tc>, window_params = [{transform_indices = @transform_0, window_bounds = array<i64: 2, 10, 10, 128>}, {pipeline_mode = #tpu.pipeline_mode<synchronous>, transform_indices = @transform_1, window_bounds = array<i64: 9, 128, 128>}, {pipeline_mode = #tpu.pipeline_mode<synchronous>, transform_indices = @transform_2, window_bounds = array<i64: 1, 128>}, {pipeline_mode = #tpu.pipeline_mode<synchronous>, transform_indices = @transform_3, window_bounds = array<i64: 1, 128>}, {transform_indices = @transform_4, window_bounds = array<i64: 128, 128>}, {transform_indices = @transform_5, window_bounds = array<i64: 1, 8, 128>}]} {
    %c128_i32 = arith.constant 128 : i32
    %0 = arith.muli %arg1, %c128_i32 : i32
    %1 = tpu.assume_multiple %0, 128 : i32
    %c0 = arith.constant 0 : index
    %c0_0 = arith.constant 0 : index
    %c0_1 = arith.constant 0 : index
    %c0_2 = arith.constant 0 : index
    %2 = vector.load %arg2[%c0, %c0_0, %c0_1, %c0_2] : memref<2x10x10x128xbf16, #tpu.memory_space<vmem>>, vector<2x10x10x128xbf16>
    %3 = arith.extf %2 : vector<2x10x10x128xbf16> to vector<2x10x10x128xf32>
    %c0_3 = arith.constant 0 : index
    %c0_4 = arith.constant 0 : index
    %4 = vector.load %arg4[%c0_3, %c0_4] : memref<1x128xf32, #tpu.memory_space<vmem>>, vector<1x128xf32>
    %5 = vector.shape_cast %4 : vector<1x128xf32> to vector<1x1x1x128xf32>
    %c0_5 = arith.constant 0 : index
    %c0_6 = arith.constant 0 : index
    %6 = vector.load %arg5[%c0_5, %c0_6] : memref<1x128xf32, #tpu.memory_space<vmem>>, vector<1x128xf32>
    %7 = vector.shape_cast %6 : vector<1x128xf32> to vector<1x1x1x128xf32>
    %8 = vector.broadcast %5 : vector<1x1x1x128xf32> to vector<2x10x10x128xf32>
    %9 = arith.mulf %3, %8 : vector<2x10x10x128xf32>
    %10 = vector.broadcast %7 : vector<1x1x1x128xf32> to vector<2x10x10x128xf32>
    %11 = arith.addf %9, %10 : vector<2x10x10x128xf32>
    %cst = arith.constant 0.000000e+00 : f32
    %12 = vector.broadcast %cst : f32 to vector<2x10x10x128xf32>
    %13 = arith.maximumf %11, %12 : vector<2x10x10x128xf32>
    %14 = tpu.iota {dimensions = array<i32: 1>} : vector<2x10x10x128xi32>
    %15 = tpu.iota {dimensions = array<i32: 2>} : vector<2x10x10x128xi32>
    %c1_i32 = arith.constant 1 : i32
    %16 = vector.broadcast %c1_i32 : i32 to vector<2x10x10x128xi32>
    %17 = arith.cmpi sge, %14, %16 : vector<2x10x10x128xi32>
    %c9_i32 = arith.constant 9 : i32
    %18 = vector.broadcast %c9_i32 : i32 to vector<2x10x10x128xi32>
    %19 = arith.cmpi slt, %14, %18 : vector<2x10x10x128xi32>
    %20 = arith.andi %17, %19 : vector<2x10x10x128xi1>
    %c1_i32_7 = arith.constant 1 : i32
    %21 = vector.broadcast %c1_i32_7 : i32 to vector<2x10x10x128xi32>
    %22 = arith.cmpi sge, %15, %21 : vector<2x10x10x128xi32>
    %23 = arith.andi %20, %22 : vector<2x10x10x128xi1>
    %c9_i32_8 = arith.constant 9 : i32
    %24 = vector.broadcast %c9_i32_8 : i32 to vector<2x10x10x128xi32>
    %25 = arith.cmpi slt, %15, %24 : vector<2x10x10x128xi32>
    %26 = arith.andi %23, %25 : vector<2x10x10x128xi1>
    %cst_9 = arith.constant 0.000000e+00 : f32
    %27 = vector.broadcast %cst_9 : f32 to vector<2x10x10x128xf32>
    %28 = arith.select %26, %13, %27 : vector<2x10x10x128xi1>, vector<2x10x10x128xf32>
    %cst_10 = arith.constant 0.000000e+00 : f32
    %29 = vector.broadcast %cst_10 : f32 to vector<128x128xf32>
    %30 = vector.extract_strided_slice %28 {offsets = [0, 0, 0, 0], sizes = [2, 8, 8, 128], strides = [1, 1, 1, 1]} : vector<2x10x10x128xf32> to vector<2x8x8x128xf32>
    %31 = vector.shape_cast %30 : vector<2x8x8x128xf32> to vector<128x128xf32>
    %32 = arith.truncf %31 : vector<128x128xf32> to vector<128x128xbf16>
    %c0_11 = arith.constant 0 : index
    %c0_12 = arith.constant 0 : index
    %33 = arith.index_cast %1 : i32 to index
    %34 = vector.load %arg3[%c0_11, %c0_12, %33] : memref<9x128x128xbf16, #tpu.memory_space<vmem>>, vector<1x128x128xbf16>
    %35 = vector.shape_cast %34 : vector<1x128x128xbf16> to vector<128x128xbf16>
    %cst_13 = arith.constant dense<0.000000e+00> : vector<128x128xf32>
    %36 = tpu.matmul %32, %35, %cst_13 {dimension_numbers = #tpu.dot_dimension_numbers<[1], [0], [0], [1], [0, 0, 1, 1], [], []>} : vector<128x128xbf16>, vector<128x128xbf16>, vector<128x128xf32> -> vector<128x128xf32>
    %37 = arith.addf %29, %36 : vector<128x128xf32>
    %38 = vector.extract_strided_slice %28 {offsets = [0, 0, 1, 0], sizes = [2, 8, 8, 128], strides = [1, 1, 1, 1]} : vector<2x10x10x128xf32> to vector<2x8x8x128xf32>
    %39 = vector.shape_cast %38 : vector<2x8x8x128xf32> to vector<128x128xf32>
    %40 = arith.truncf %39 : vector<128x128xf32> to vector<128x128xbf16>
    %c1 = arith.constant 1 : index
    %c0_14 = arith.constant 0 : index
    %41 = arith.index_cast %1 : i32 to index
    %42 = vector.load %arg3[%c1, %c0_14, %41] : memref<9x128x128xbf16, #tpu.memory_space<vmem>>, vector<1x128x128xbf16>
    %43 = vector.shape_cast %42 : vector<1x128x128xbf16> to vector<128x128xbf16>
    %cst_15 = arith.constant dense<0.000000e+00> : vector<128x128xf32>
    %44 = tpu.matmul %40, %43, %cst_15 {dimension_numbers = #tpu.dot_dimension_numbers<[1], [0], [0], [1], [0, 0, 1, 1], [], []>} : vector<128x128xbf16>, vector<128x128xbf16>, vector<128x128xf32> -> vector<128x128xf32>
    %45 = arith.addf %37, %44 : vector<128x128xf32>
    %46 = vector.extract_strided_slice %28 {offsets = [0, 0, 2, 0], sizes = [2, 8, 8, 128], strides = [1, 1, 1, 1]} : vector<2x10x10x128xf32> to vector<2x8x8x128xf32>
    %47 = vector.shape_cast %46 : vector<2x8x8x128xf32> to vector<128x128xf32>
    %48 = arith.truncf %47 : vector<128x128xf32> to vector<128x128xbf16>
    %c2 = arith.constant 2 : index
    %c0_16 = arith.constant 0 : index
    %49 = arith.index_cast %1 : i32 to index
    %50 = vector.load %arg3[%c2, %c0_16, %49] : memref<9x128x128xbf16, #tpu.memory_space<vmem>>, vector<1x128x128xbf16>
    %51 = vector.shape_cast %50 : vector<1x128x128xbf16> to vector<128x128xbf16>
    %cst_17 = arith.constant dense<0.000000e+00> : vector<128x128xf32>
    %52 = tpu.matmul %48, %51, %cst_17 {dimension_numbers = #tpu.dot_dimension_numbers<[1], [0], [0], [1], [0, 0, 1, 1], [], []>} : vector<128x128xbf16>, vector<128x128xbf16>, vector<128x128xf32> -> vector<128x128xf32>
    %53 = arith.addf %45, %52 : vector<128x128xf32>
    %54 = vector.extract_strided_slice %28 {offsets = [0, 1, 0, 0], sizes = [2, 8, 8, 128], strides = [1, 1, 1, 1]} : vector<2x10x10x128xf32> to vector<2x8x8x128xf32>
    %55 = vector.shape_cast %54 : vector<2x8x8x128xf32> to vector<128x128xf32>
    %56 = arith.truncf %55 : vector<128x128xf32> to vector<128x128xbf16>
    %c3 = arith.constant 3 : index
    %c0_18 = arith.constant 0 : index
    %57 = arith.index_cast %1 : i32 to index
    %58 = vector.load %arg3[%c3, %c0_18, %57] : memref<9x128x128xbf16, #tpu.memory_space<vmem>>, vector<1x128x128xbf16>
    %59 = vector.shape_cast %58 : vector<1x128x128xbf16> to vector<128x128xbf16>
    %cst_19 = arith.constant dense<0.000000e+00> : vector<128x128xf32>
    %60 = tpu.matmul %56, %59, %cst_19 {dimension_numbers = #tpu.dot_dimension_numbers<[1], [0], [0], [1], [0, 0, 1, 1], [], []>} : vector<128x128xbf16>, vector<128x128xbf16>, vector<128x128xf32> -> vector<128x128xf32>
    %61 = arith.addf %53, %60 : vector<128x128xf32>
    %62 = vector.extract_strided_slice %28 {offsets = [0, 1, 1, 0], sizes = [2, 8, 8, 128], strides = [1, 1, 1, 1]} : vector<2x10x10x128xf32> to vector<2x8x8x128xf32>
    %63 = vector.shape_cast %62 : vector<2x8x8x128xf32> to vector<128x128xf32>
    %64 = arith.truncf %63 : vector<128x128xf32> to vector<128x128xbf16>
    %c4 = arith.constant 4 : index
    %c0_20 = arith.constant 0 : index
    %65 = arith.index_cast %1 : i32 to index
    %66 = vector.load %arg3[%c4, %c0_20, %65] : memref<9x128x128xbf16, #tpu.memory_space<vmem>>, vector<1x128x128xbf16>
    %67 = vector.shape_cast %66 : vector<1x128x128xbf16> to vector<128x128xbf16>
    %cst_21 = arith.constant dense<0.000000e+00> : vector<128x128xf32>
    %68 = tpu.matmul %64, %67, %cst_21 {dimension_numbers = #tpu.dot_dimension_numbers<[1], [0], [0], [1], [0, 0, 1, 1], [], []>} : vector<128x128xbf16>, vector<128x128xbf16>, vector<128x128xf32> -> vector<128x128xf32>
    %69 = arith.addf %61, %68 : vector<128x128xf32>
    %70 = vector.extract_strided_slice %28 {offsets = [0, 1, 2, 0], sizes = [2, 8, 8, 128], strides = [1, 1, 1, 1]} : vector<2x10x10x128xf32> to vector<2x8x8x128xf32>
    %71 = vector.shape_cast %70 : vector<2x8x8x128xf32> to vector<128x128xf32>
    %72 = arith.truncf %71 : vector<128x128xf32> to vector<128x128xbf16>
    %c5 = arith.constant 5 : index
    %c0_22 = arith.constant 0 : index
    %73 = arith.index_cast %1 : i32 to index
    %74 = vector.load %arg3[%c5, %c0_22, %73] : memref<9x128x128xbf16, #tpu.memory_space<vmem>>, vector<1x128x128xbf16>
    %75 = vector.shape_cast %74 : vector<1x128x128xbf16> to vector<128x128xbf16>
    %cst_23 = arith.constant dense<0.000000e+00> : vector<128x128xf32>
    %76 = tpu.matmul %72, %75, %cst_23 {dimension_numbers = #tpu.dot_dimension_numbers<[1], [0], [0], [1], [0, 0, 1, 1], [], []>} : vector<128x128xbf16>, vector<128x128xbf16>, vector<128x128xf32> -> vector<128x128xf32>
    %77 = arith.addf %69, %76 : vector<128x128xf32>
    %78 = vector.extract_strided_slice %28 {offsets = [0, 2, 0, 0], sizes = [2, 8, 8, 128], strides = [1, 1, 1, 1]} : vector<2x10x10x128xf32> to vector<2x8x8x128xf32>
    %79 = vector.shape_cast %78 : vector<2x8x8x128xf32> to vector<128x128xf32>
    %80 = arith.truncf %79 : vector<128x128xf32> to vector<128x128xbf16>
    %c6 = arith.constant 6 : index
    %c0_24 = arith.constant 0 : index
    %81 = arith.index_cast %1 : i32 to index
    %82 = vector.load %arg3[%c6, %c0_24, %81] : memref<9x128x128xbf16, #tpu.memory_space<vmem>>, vector<1x128x128xbf16>
    %83 = vector.shape_cast %82 : vector<1x128x128xbf16> to vector<128x128xbf16>
    %cst_25 = arith.constant dense<0.000000e+00> : vector<128x128xf32>
    %84 = tpu.matmul %80, %83, %cst_25 {dimension_numbers = #tpu.dot_dimension_numbers<[1], [0], [0], [1], [0, 0, 1, 1], [], []>} : vector<128x128xbf16>, vector<128x128xbf16>, vector<128x128xf32> -> vector<128x128xf32>
    %85 = arith.addf %77, %84 : vector<128x128xf32>
    %86 = vector.extract_strided_slice %28 {offsets = [0, 2, 1, 0], sizes = [2, 8, 8, 128], strides = [1, 1, 1, 1]} : vector<2x10x10x128xf32> to vector<2x8x8x128xf32>
    %87 = vector.shape_cast %86 : vector<2x8x8x128xf32> to vector<128x128xf32>
    %88 = arith.truncf %87 : vector<128x128xf32> to vector<128x128xbf16>
    %c7 = arith.constant 7 : index
    %c0_26 = arith.constant 0 : index
    %89 = arith.index_cast %1 : i32 to index
    %90 = vector.load %arg3[%c7, %c0_26, %89] : memref<9x128x128xbf16, #tpu.memory_space<vmem>>, vector<1x128x128xbf16>
    %91 = vector.shape_cast %90 : vector<1x128x128xbf16> to vector<128x128xbf16>
    %cst_27 = arith.constant dense<0.000000e+00> : vector<128x128xf32>
    %92 = tpu.matmul %88, %91, %cst_27 {dimension_numbers = #tpu.dot_dimension_numbers<[1], [0], [0], [1], [0, 0, 1, 1], [], []>} : vector<128x128xbf16>, vector<128x128xbf16>, vector<128x128xf32> -> vector<128x128xf32>
    %93 = arith.addf %85, %92 : vector<128x128xf32>
    %94 = vector.extract_strided_slice %28 {offsets = [0, 2, 2, 0], sizes = [2, 8, 8, 128], strides = [1, 1, 1, 1]} : vector<2x10x10x128xf32> to vector<2x8x8x128xf32>
    %95 = vector.shape_cast %94 : vector<2x8x8x128xf32> to vector<128x128xf32>
    %96 = arith.truncf %95 : vector<128x128xf32> to vector<128x128xbf16>
    %c8 = arith.constant 8 : index
    %c0_28 = arith.constant 0 : index
    %97 = arith.index_cast %1 : i32 to index
    %98 = vector.load %arg3[%c8, %c0_28, %97] : memref<9x128x128xbf16, #tpu.memory_space<vmem>>, vector<1x128x128xbf16>
    %99 = vector.shape_cast %98 : vector<1x128x128xbf16> to vector<128x128xbf16>
    %cst_29 = arith.constant dense<0.000000e+00> : vector<128x128xf32>
    %100 = tpu.matmul %96, %99, %cst_29 {dimension_numbers = #tpu.dot_dimension_numbers<[1], [0], [0], [1], [0, 0, 1, 1], [], []>} : vector<128x128xbf16>, vector<128x128xbf16>, vector<128x128xf32> -> vector<128x128xf32>
    %101 = arith.addf %93, %100 : vector<128x128xf32>
    %102 = arith.truncf %101 : vector<128x128xf32> to vector<128x128xbf16>
    %c0_30 = arith.constant 0 : index
    %c0_31 = arith.constant 0 : index
    %103 = vector.load %arg6[%c0_30, %c0_31] : memref<128x128xbf16, #tpu.memory_space<vmem>>, vector<128x128xbf16>
    tpu.vector_store %arg6[%c0_30, %c0_31], %102 {strides = array<i32>} : memref<128x128xbf16, #tpu.memory_space<vmem>>, vector<128x128xbf16>,
    %cst_32 = arith.constant dense<0.000000e+00> : vector<128xf32>
    %104 = vector.multi_reduction <add>, %101, %cst_32 [0] : vector<128x128xf32> to vector<128xf32>
    %105 = vector.shape_cast %104 : vector<128xf32> to vector<1x128xf32>
    %106 = arith.mulf %101, %101 : vector<128x128xf32>
    %cst_33 = arith.constant dense<0.000000e+00> : vector<128xf32>
    %107 = vector.multi_reduction <add>, %106, %cst_33 [0] : vector<128x128xf32> to vector<128xf32>
    %108 = vector.shape_cast %107 : vector<128xf32> to vector<1x128xf32>
    %109 = tpu.iota {dimensions = array<i32: 0>} : vector<8x128xi32>
    %c0_i32 = arith.constant 0 : i32
    %110 = vector.broadcast %c0_i32 : i32 to vector<8x128xi32>
    %111 = arith.cmpi eq, %109, %110 : vector<8x128xi32>
    %cst_34 = arith.constant 0.000000e+00 : f32
    %112 = vector.shape_cast %105 : vector<1x128xf32> to vector<1x128xf32>
    %113 = vector.broadcast %112 : vector<1x128xf32> to vector<8x128xf32>
    %114 = vector.broadcast %cst_34 : f32 to vector<8x128xf32>
    %115 = arith.select %111, %113, %114 : vector<8x128xi1>, vector<8x128xf32>
    %c1_i32_35 = arith.constant 1 : i32
    %116 = vector.broadcast %c1_i32_35 : i32 to vector<8x128xi32>
    %117 = arith.cmpi eq, %109, %116 : vector<8x128xi32>
    %cst_36 = arith.constant 0.000000e+00 : f32
    %118 = vector.shape_cast %108 : vector<1x128xf32> to vector<1x128xf32>
    %119 = vector.broadcast %118 : vector<1x128xf32> to vector<8x128xf32>
    %120 = vector.broadcast %cst_36 : f32 to vector<8x128xf32>
    %121 = arith.select %117, %119, %120 : vector<8x128xi1>, vector<8x128xf32>
    %122 = arith.addf %115, %121 : vector<8x128xf32>
    %123 = vector.shape_cast %122 : vector<8x128xf32> to vector<1x8x128xf32>
    %c0_37 = arith.constant 0 : index
    %c0_38 = arith.constant 0 : index
    %c0_39 = arith.constant 0 : index
    %124 = vector.load %arg7[%c0_37, %c0_38, %c0_39] : memref<1x8x128xf32, #tpu.memory_space<vmem>>, vector<1x8x128xf32>
    tpu.vector_store %arg7[%c0_37, %c0_38, %c0_39], %123 {strides = array<i32>} : memref<1x8x128xf32, #tpu.memory_space<vmem>>, vector<1x8x128xf32>,
    return
  }
  func.func @transform_0(%arg0: i32, %arg1: i32) -> (i32, i32, i32, i32) {
    %c0_i32 = arith.constant 0 : i32
    %c0_i32_0 = arith.constant 0 : i32
    %c0_i32_1 = arith.constant 0 : i32
    %c0_i32_2 = arith.constant 0 : i32
    return %arg0, %c0_i32, %c0_i32_0, %c0_i32_1 : i32, i32, i32, i32
  }
  func.func @transform_1(%arg0: i32, %arg1: i32) -> (i32, i32, i32) {
    %c0_i32 = arith.constant 0 : i32
    %c0_i32_0 = arith.constant 0 : i32
    %c0_i32_1 = arith.constant 0 : i32
    %c0_i32_2 = arith.constant 0 : i32
    return %c0_i32, %c0_i32_0, %c0_i32_1 : i32, i32, i32
  }
  func.func @transform_2(%arg0: i32, %arg1: i32) -> (i32, i32) {
    %c0_i32 = arith.constant 0 : i32
    %c0_i32_0 = arith.constant 0 : i32
    %c0_i32_1 = arith.constant 0 : i32
    return %c0_i32, %c0_i32_0 : i32, i32
  }
  func.func @transform_3(%arg0: i32, %arg1: i32) -> (i32, i32) {
    %c0_i32 = arith.constant 0 : i32
    %c0_i32_0 = arith.constant 0 : i32
    %c0_i32_1 = arith.constant 0 : i32
    return %c0_i32, %c0_i32_0 : i32, i32
  }
  func.func @transform_4(%arg0: i32, %arg1: i32) -> (i32, i32) {
    %c0_i32 = arith.constant 0 : i32
    return %arg0, %arg1 : i32, i32
  }
  func.func @transform_5(%arg0: i32, %arg1: i32) -> (i32, i32, i32) {
    %c0_i32 = arith.constant 0 : i32
    %c0_i32_0 = arith.constant 0 : i32
    return %arg0, %c0_i32, %arg1 : i32, i32, i32
  }
}

module attributes {stable_mosaic.version = 11 : i64} {
  func.func @_conv_stats_kernel(%arg0: i32, %arg1: i32, %arg2: memref<2x9x9x128xbf16, #tpu.memory_space<vmem>>, %arg3: memref<2x9x9x128xbf16, #tpu.memory_space<vmem>>, %arg4: memref<2x9x9x128xbf16, #tpu.memory_space<vmem>>, %arg5: memref<2x9x9x128xbf16, #tpu.memory_space<vmem>>, %arg6: memref<9x128x128xbf16, #tpu.memory_space<vmem>>, %arg7: memref<128x128xbf16, #tpu.memory_space<vmem>>, %arg8: memref<1x8x128xf32, #tpu.memory_space<vmem>>) attributes {dimension_semantics = [#tpu.dimension_semantics<parallel>, #tpu.dimension_semantics<parallel>], iteration_bounds = array<i64: 1, 1>, scalar_prefetch = 0 : i64, scratch_operands = 0 : i64, tpu.core_type = #tpu.core_type<tc>, window_params = [{transform_indices = @transform_0, window_bounds = array<i64: 2, 9, 9, 128>}, {transform_indices = @transform_1, window_bounds = array<i64: 2, 9, 9, 128>}, {transform_indices = @transform_2, window_bounds = array<i64: 2, 9, 9, 128>}, {transform_indices = @transform_3, window_bounds = array<i64: 2, 9, 9, 128>}, {pipeline_mode = #tpu.pipeline_mode<synchronous>, transform_indices = @transform_4, window_bounds = array<i64: 9, 128, 128>}, {transform_indices = @transform_5, window_bounds = array<i64: 128, 128>}, {transform_indices = @transform_6, window_bounds = array<i64: 1, 8, 128>}]} {
    %c128_i32 = arith.constant 128 : i32
    %0 = arith.muli %arg1, %c128_i32 : i32
    %1 = tpu.assume_multiple %0, 128 : i32
    %c0 = arith.constant 0 : index
    %c0_0 = arith.constant 0 : index
    %c0_1 = arith.constant 0 : index
    %c0_2 = arith.constant 0 : index
    %2 = vector.load %arg2[%c0, %c0_0, %c0_1, %c0_2] : memref<2x9x9x128xbf16, #tpu.memory_space<vmem>>, vector<2x9x9x128xbf16>
    %3 = arith.extf %2 : vector<2x9x9x128xbf16> to vector<2x9x9x128xf32>
    %c0_3 = arith.constant 0 : index
    %c0_4 = arith.constant 0 : index
    %c0_5 = arith.constant 0 : index
    %c0_6 = arith.constant 0 : index
    %4 = vector.load %arg3[%c0_3, %c0_4, %c0_5, %c0_6] : memref<2x9x9x128xbf16, #tpu.memory_space<vmem>>, vector<2x9x9x128xbf16>
    %5 = arith.extf %4 : vector<2x9x9x128xbf16> to vector<2x9x9x128xf32>
    %c0_7 = arith.constant 0 : index
    %c0_8 = arith.constant 0 : index
    %c0_9 = arith.constant 0 : index
    %c0_10 = arith.constant 0 : index
    %6 = vector.load %arg4[%c0_7, %c0_8, %c0_9, %c0_10] : memref<2x9x9x128xbf16, #tpu.memory_space<vmem>>, vector<2x9x9x128xbf16>
    %7 = arith.extf %6 : vector<2x9x9x128xbf16> to vector<2x9x9x128xf32>
    %c0_11 = arith.constant 0 : index
    %c0_12 = arith.constant 0 : index
    %c0_13 = arith.constant 0 : index
    %c0_14 = arith.constant 0 : index
    %8 = vector.load %arg5[%c0_11, %c0_12, %c0_13, %c0_14] : memref<2x9x9x128xbf16, #tpu.memory_space<vmem>>, vector<2x9x9x128xbf16>
    %9 = arith.extf %8 : vector<2x9x9x128xbf16> to vector<2x9x9x128xf32>
    %cst = arith.constant 0.000000e+00 : f32
    %10 = vector.broadcast %cst : f32 to vector<128x128xf32>
    %11 = vector.extract_strided_slice %3 {offsets = [0, 0, 0, 0], sizes = [2, 8, 8, 128], strides = [1, 1, 1, 1]} : vector<2x9x9x128xf32> to vector<2x8x8x128xf32>
    %12 = vector.shape_cast %11 : vector<2x8x8x128xf32> to vector<128x128xf32>
    %13 = arith.truncf %12 : vector<128x128xf32> to vector<128x128xbf16>
    %c0_15 = arith.constant 0 : index
    %c0_16 = arith.constant 0 : index
    %14 = arith.index_cast %1 : i32 to index
    %15 = vector.load %arg6[%c0_15, %c0_16, %14] : memref<9x128x128xbf16, #tpu.memory_space<vmem>>, vector<1x128x128xbf16>
    %16 = vector.shape_cast %15 : vector<1x128x128xbf16> to vector<128x128xbf16>
    %cst_17 = arith.constant dense<0.000000e+00> : vector<128x128xf32>
    %17 = tpu.matmul %13, %16, %cst_17 {dimension_numbers = #tpu.dot_dimension_numbers<[1], [0], [0], [1], [0, 0, 1, 1], [], []>} : vector<128x128xbf16>, vector<128x128xbf16>, vector<128x128xf32> -> vector<128x128xf32>
    %18 = arith.addf %10, %17 : vector<128x128xf32>
    %19 = vector.extract_strided_slice %5 {offsets = [0, 0, 0, 0], sizes = [2, 8, 8, 128], strides = [1, 1, 1, 1]} : vector<2x9x9x128xf32> to vector<2x8x8x128xf32>
    %20 = vector.shape_cast %19 : vector<2x8x8x128xf32> to vector<128x128xf32>
    %21 = arith.truncf %20 : vector<128x128xf32> to vector<128x128xbf16>
    %c1 = arith.constant 1 : index
    %c0_18 = arith.constant 0 : index
    %22 = arith.index_cast %1 : i32 to index
    %23 = vector.load %arg6[%c1, %c0_18, %22] : memref<9x128x128xbf16, #tpu.memory_space<vmem>>, vector<1x128x128xbf16>
    %24 = vector.shape_cast %23 : vector<1x128x128xbf16> to vector<128x128xbf16>
    %cst_19 = arith.constant dense<0.000000e+00> : vector<128x128xf32>
    %25 = tpu.matmul %21, %24, %cst_19 {dimension_numbers = #tpu.dot_dimension_numbers<[1], [0], [0], [1], [0, 0, 1, 1], [], []>} : vector<128x128xbf16>, vector<128x128xbf16>, vector<128x128xf32> -> vector<128x128xf32>
    %26 = arith.addf %18, %25 : vector<128x128xf32>
    %27 = vector.extract_strided_slice %3 {offsets = [0, 0, 1, 0], sizes = [2, 8, 8, 128], strides = [1, 1, 1, 1]} : vector<2x9x9x128xf32> to vector<2x8x8x128xf32>
    %28 = vector.shape_cast %27 : vector<2x8x8x128xf32> to vector<128x128xf32>
    %29 = arith.truncf %28 : vector<128x128xf32> to vector<128x128xbf16>
    %c2 = arith.constant 2 : index
    %c0_20 = arith.constant 0 : index
    %30 = arith.index_cast %1 : i32 to index
    %31 = vector.load %arg6[%c2, %c0_20, %30] : memref<9x128x128xbf16, #tpu.memory_space<vmem>>, vector<1x128x128xbf16>
    %32 = vector.shape_cast %31 : vector<1x128x128xbf16> to vector<128x128xbf16>
    %cst_21 = arith.constant dense<0.000000e+00> : vector<128x128xf32>
    %33 = tpu.matmul %29, %32, %cst_21 {dimension_numbers = #tpu.dot_dimension_numbers<[1], [0], [0], [1], [0, 0, 1, 1], [], []>} : vector<128x128xbf16>, vector<128x128xbf16>, vector<128x128xf32> -> vector<128x128xf32>
    %34 = arith.addf %26, %33 : vector<128x128xf32>
    %35 = vector.extract_strided_slice %7 {offsets = [0, 0, 0, 0], sizes = [2, 8, 8, 128], strides = [1, 1, 1, 1]} : vector<2x9x9x128xf32> to vector<2x8x8x128xf32>
    %36 = vector.shape_cast %35 : vector<2x8x8x128xf32> to vector<128x128xf32>
    %37 = arith.truncf %36 : vector<128x128xf32> to vector<128x128xbf16>
    %c3 = arith.constant 3 : index
    %c0_22 = arith.constant 0 : index
    %38 = arith.index_cast %1 : i32 to index
    %39 = vector.load %arg6[%c3, %c0_22, %38] : memref<9x128x128xbf16, #tpu.memory_space<vmem>>, vector<1x128x128xbf16>
    %40 = vector.shape_cast %39 : vector<1x128x128xbf16> to vector<128x128xbf16>
    %cst_23 = arith.constant dense<0.000000e+00> : vector<128x128xf32>
    %41 = tpu.matmul %37, %40, %cst_23 {dimension_numbers = #tpu.dot_dimension_numbers<[1], [0], [0], [1], [0, 0, 1, 1], [], []>} : vector<128x128xbf16>, vector<128x128xbf16>, vector<128x128xf32> -> vector<128x128xf32>
    %42 = arith.addf %34, %41 : vector<128x128xf32>
    %43 = vector.extract_strided_slice %9 {offsets = [0, 0, 0, 0], sizes = [2, 8, 8, 128], strides = [1, 1, 1, 1]} : vector<2x9x9x128xf32> to vector<2x8x8x128xf32>
    %44 = vector.shape_cast %43 : vector<2x8x8x128xf32> to vector<128x128xf32>
    %45 = arith.truncf %44 : vector<128x128xf32> to vector<128x128xbf16>
    %c4 = arith.constant 4 : index
    %c0_24 = arith.constant 0 : index
    %46 = arith.index_cast %1 : i32 to index
    %47 = vector.load %arg6[%c4, %c0_24, %46] : memref<9x128x128xbf16, #tpu.memory_space<vmem>>, vector<1x128x128xbf16>
    %48 = vector.shape_cast %47 : vector<1x128x128xbf16> to vector<128x128xbf16>
    %cst_25 = arith.constant dense<0.000000e+00> : vector<128x128xf32>
    %49 = tpu.matmul %45, %48, %cst_25 {dimension_numbers = #tpu.dot_dimension_numbers<[1], [0], [0], [1], [0, 0, 1, 1], [], []>} : vector<128x128xbf16>, vector<128x128xbf16>, vector<128x128xf32> -> vector<128x128xf32>
    %50 = arith.addf %42, %49 : vector<128x128xf32>
    %51 = vector.extract_strided_slice %7 {offsets = [0, 0, 1, 0], sizes = [2, 8, 8, 128], strides = [1, 1, 1, 1]} : vector<2x9x9x128xf32> to vector<2x8x8x128xf32>
    %52 = vector.shape_cast %51 : vector<2x8x8x128xf32> to vector<128x128xf32>
    %53 = arith.truncf %52 : vector<128x128xf32> to vector<128x128xbf16>
    %c5 = arith.constant 5 : index
    %c0_26 = arith.constant 0 : index
    %54 = arith.index_cast %1 : i32 to index
    %55 = vector.load %arg6[%c5, %c0_26, %54] : memref<9x128x128xbf16, #tpu.memory_space<vmem>>, vector<1x128x128xbf16>
    %56 = vector.shape_cast %55 : vector<1x128x128xbf16> to vector<128x128xbf16>
    %cst_27 = arith.constant dense<0.000000e+00> : vector<128x128xf32>
    %57 = tpu.matmul %53, %56, %cst_27 {dimension_numbers = #tpu.dot_dimension_numbers<[1], [0], [0], [1], [0, 0, 1, 1], [], []>} : vector<128x128xbf16>, vector<128x128xbf16>, vector<128x128xf32> -> vector<128x128xf32>
    %58 = arith.addf %50, %57 : vector<128x128xf32>
    %59 = vector.extract_strided_slice %3 {offsets = [0, 1, 0, 0], sizes = [2, 8, 8, 128], strides = [1, 1, 1, 1]} : vector<2x9x9x128xf32> to vector<2x8x8x128xf32>
    %60 = vector.shape_cast %59 : vector<2x8x8x128xf32> to vector<128x128xf32>
    %61 = arith.truncf %60 : vector<128x128xf32> to vector<128x128xbf16>
    %c6 = arith.constant 6 : index
    %c0_28 = arith.constant 0 : index
    %62 = arith.index_cast %1 : i32 to index
    %63 = vector.load %arg6[%c6, %c0_28, %62] : memref<9x128x128xbf16, #tpu.memory_space<vmem>>, vector<1x128x128xbf16>
    %64 = vector.shape_cast %63 : vector<1x128x128xbf16> to vector<128x128xbf16>
    %cst_29 = arith.constant dense<0.000000e+00> : vector<128x128xf32>
    %65 = tpu.matmul %61, %64, %cst_29 {dimension_numbers = #tpu.dot_dimension_numbers<[1], [0], [0], [1], [0, 0, 1, 1], [], []>} : vector<128x128xbf16>, vector<128x128xbf16>, vector<128x128xf32> -> vector<128x128xf32>
    %66 = arith.addf %58, %65 : vector<128x128xf32>
    %67 = vector.extract_strided_slice %5 {offsets = [0, 1, 0, 0], sizes = [2, 8, 8, 128], strides = [1, 1, 1, 1]} : vector<2x9x9x128xf32> to vector<2x8x8x128xf32>
    %68 = vector.shape_cast %67 : vector<2x8x8x128xf32> to vector<128x128xf32>
    %69 = arith.truncf %68 : vector<128x128xf32> to vector<128x128xbf16>
    %c7 = arith.constant 7 : index
    %c0_30 = arith.constant 0 : index
    %70 = arith.index_cast %1 : i32 to index
    %71 = vector.load %arg6[%c7, %c0_30, %70] : memref<9x128x128xbf16, #tpu.memory_space<vmem>>, vector<1x128x128xbf16>
    %72 = vector.shape_cast %71 : vector<1x128x128xbf16> to vector<128x128xbf16>
    %cst_31 = arith.constant dense<0.000000e+00> : vector<128x128xf32>
    %73 = tpu.matmul %69, %72, %cst_31 {dimension_numbers = #tpu.dot_dimension_numbers<[1], [0], [0], [1], [0, 0, 1, 1], [], []>} : vector<128x128xbf16>, vector<128x128xbf16>, vector<128x128xf32> -> vector<128x128xf32>
    %74 = arith.addf %66, %73 : vector<128x128xf32>
    %75 = vector.extract_strided_slice %3 {offsets = [0, 1, 1, 0], sizes = [2, 8, 8, 128], strides = [1, 1, 1, 1]} : vector<2x9x9x128xf32> to vector<2x8x8x128xf32>
    %76 = vector.shape_cast %75 : vector<2x8x8x128xf32> to vector<128x128xf32>
    %77 = arith.truncf %76 : vector<128x128xf32> to vector<128x128xbf16>
    %c8 = arith.constant 8 : index
    %c0_32 = arith.constant 0 : index
    %78 = arith.index_cast %1 : i32 to index
    %79 = vector.load %arg6[%c8, %c0_32, %78] : memref<9x128x128xbf16, #tpu.memory_space<vmem>>, vector<1x128x128xbf16>
    %80 = vector.shape_cast %79 : vector<1x128x128xbf16> to vector<128x128xbf16>
    %cst_33 = arith.constant dense<0.000000e+00> : vector<128x128xf32>
    %81 = tpu.matmul %77, %80, %cst_33 {dimension_numbers = #tpu.dot_dimension_numbers<[1], [0], [0], [1], [0, 0, 1, 1], [], []>} : vector<128x128xbf16>, vector<128x128xbf16>, vector<128x128xf32> -> vector<128x128xf32>
    %82 = arith.addf %74, %81 : vector<128x128xf32>
    %83 = arith.truncf %82 : vector<128x128xf32> to vector<128x128xbf16>
    %c0_34 = arith.constant 0 : index
    %c0_35 = arith.constant 0 : index
    %84 = vector.load %arg7[%c0_34, %c0_35] : memref<128x128xbf16, #tpu.memory_space<vmem>>, vector<128x128xbf16>
    tpu.vector_store %arg7[%c0_34, %c0_35], %83 {strides = array<i32>} : memref<128x128xbf16, #tpu.memory_space<vmem>>, vector<128x128xbf16>,
    %cst_36 = arith.constant dense<0.000000e+00> : vector<128xf32>
    %85 = vector.multi_reduction <add>, %82, %cst_36 [0] : vector<128x128xf32> to vector<128xf32>
    %86 = vector.shape_cast %85 : vector<128xf32> to vector<1x128xf32>
    %87 = arith.mulf %82, %82 : vector<128x128xf32>
    %cst_37 = arith.constant dense<0.000000e+00> : vector<128xf32>
    %88 = vector.multi_reduction <add>, %87, %cst_37 [0] : vector<128x128xf32> to vector<128xf32>
    %89 = vector.shape_cast %88 : vector<128xf32> to vector<1x128xf32>
    %90 = tpu.iota {dimensions = array<i32: 0>} : vector<8x128xi32>
    %c0_i32 = arith.constant 0 : i32
    %91 = vector.broadcast %c0_i32 : i32 to vector<8x128xi32>
    %92 = arith.cmpi eq, %90, %91 : vector<8x128xi32>
    %cst_38 = arith.constant 0.000000e+00 : f32
    %93 = vector.shape_cast %86 : vector<1x128xf32> to vector<1x128xf32>
    %94 = vector.broadcast %93 : vector<1x128xf32> to vector<8x128xf32>
    %95 = vector.broadcast %cst_38 : f32 to vector<8x128xf32>
    %96 = arith.select %92, %94, %95 : vector<8x128xi1>, vector<8x128xf32>
    %c1_i32 = arith.constant 1 : i32
    %97 = vector.broadcast %c1_i32 : i32 to vector<8x128xi32>
    %98 = arith.cmpi eq, %90, %97 : vector<8x128xi32>
    %cst_39 = arith.constant 0.000000e+00 : f32
    %99 = vector.shape_cast %89 : vector<1x128xf32> to vector<1x128xf32>
    %100 = vector.broadcast %99 : vector<1x128xf32> to vector<8x128xf32>
    %101 = vector.broadcast %cst_39 : f32 to vector<8x128xf32>
    %102 = arith.select %98, %100, %101 : vector<8x128xi1>, vector<8x128xf32>
    %103 = arith.addf %96, %102 : vector<8x128xf32>
    %104 = vector.shape_cast %103 : vector<8x128xf32> to vector<1x8x128xf32>
    %c0_40 = arith.constant 0 : index
    %c0_41 = arith.constant 0 : index
    %c0_42 = arith.constant 0 : index
    %105 = vector.load %arg8[%c0_40, %c0_41, %c0_42] : memref<1x8x128xf32, #tpu.memory_space<vmem>>, vector<1x8x128xf32>
    tpu.vector_store %arg8[%c0_40, %c0_41, %c0_42], %104 {strides = array<i32>} : memref<1x8x128xf32, #tpu.memory_space<vmem>>, vector<1x8x128xf32>,
    return
  }
  func.func @transform_0(%arg0: i32, %arg1: i32) -> (i32, i32, i32, i32) {
    %c0_i32 = arith.constant 0 : i32
    %c0_i32_0 = arith.constant 0 : i32
    %c0_i32_1 = arith.constant 0 : i32
    %c0_i32_2 = arith.constant 0 : i32
    return %arg0, %c0_i32, %c0_i32_0, %c0_i32_1 : i32, i32, i32, i32
  }
  func.func @transform_1(%arg0: i32, %arg1: i32) -> (i32, i32, i32, i32) {
    %c0_i32 = arith.constant 0 : i32
    %c0_i32_0 = arith.constant 0 : i32
    %c0_i32_1 = arith.constant 0 : i32
    %c0_i32_2 = arith.constant 0 : i32
    return %arg0, %c0_i32, %c0_i32_0, %c0_i32_1 : i32, i32, i32, i32
  }
  func.func @transform_2(%arg0: i32, %arg1: i32) -> (i32, i32, i32, i32) {
    %c0_i32 = arith.constant 0 : i32
    %c0_i32_0 = arith.constant 0 : i32
    %c0_i32_1 = arith.constant 0 : i32
    %c0_i32_2 = arith.constant 0 : i32
    return %arg0, %c0_i32, %c0_i32_0, %c0_i32_1 : i32, i32, i32, i32
  }
  func.func @transform_3(%arg0: i32, %arg1: i32) -> (i32, i32, i32, i32) {
    %c0_i32 = arith.constant 0 : i32
    %c0_i32_0 = arith.constant 0 : i32
    %c0_i32_1 = arith.constant 0 : i32
    %c0_i32_2 = arith.constant 0 : i32
    return %arg0, %c0_i32, %c0_i32_0, %c0_i32_1 : i32, i32, i32, i32
  }
  func.func @transform_4(%arg0: i32, %arg1: i32) -> (i32, i32, i32) {
    %c0_i32 = arith.constant 0 : i32
    %c0_i32_0 = arith.constant 0 : i32
    %c0_i32_1 = arith.constant 0 : i32
    %c0_i32_2 = arith.constant 0 : i32
    return %c0_i32, %c0_i32_0, %c0_i32_1 : i32, i32, i32
  }
  func.func @transform_5(%arg0: i32, %arg1: i32) -> (i32, i32) {
    %c0_i32 = arith.constant 0 : i32
    return %arg0, %arg1 : i32, i32
  }
  func.func @transform_6(%arg0: i32, %arg1: i32) -> (i32, i32, i32) {
    %c0_i32 = arith.constant 0 : i32
    %c0_i32_0 = arith.constant 0 : i32
    return %arg0, %c0_i32, %arg1 : i32, i32, i32
  }
}

module attributes {stable_mosaic.version = 11 : i64} {
  func.func @_bn_res_act_kernel(%arg0: i32, %arg1: i32, %arg2: memref<128x128xbf16, #tpu.memory_space<vmem>>, %arg3: memref<1x128xf32, #tpu.memory_space<vmem>>, %arg4: memref<1x128xf32, #tpu.memory_space<vmem>>, %arg5: memref<128x128xbf16, #tpu.memory_space<vmem>>, %arg6: memref<1x128xf32, #tpu.memory_space<vmem>>, %arg7: memref<1x128xf32, #tpu.memory_space<vmem>>, %arg8: memref<128x128xf32, #tpu.memory_space<vmem>>) attributes {dimension_semantics = [#tpu.dimension_semantics<parallel>, #tpu.dimension_semantics<parallel>], iteration_bounds = array<i64: 1, 1>, scalar_prefetch = 0 : i64, scratch_operands = 0 : i64, tpu.core_type = #tpu.core_type<tc>, window_params = [{transform_indices = @transform_0, window_bounds = array<i64: 128, 128>}, {transform_indices = @transform_1, window_bounds = array<i64: 1, 128>}, {transform_indices = @transform_2, window_bounds = array<i64: 1, 128>}, {transform_indices = @transform_3, window_bounds = array<i64: 128, 128>}, {transform_indices = @transform_4, window_bounds = array<i64: 1, 128>}, {transform_indices = @transform_5, window_bounds = array<i64: 1, 128>}, {transform_indices = @transform_6, window_bounds = array<i64: 128, 128>}]} {
    %c0 = arith.constant 0 : index
    %c0_0 = arith.constant 0 : index
    %0 = vector.load %arg2[%c0, %c0_0] : memref<128x128xbf16, #tpu.memory_space<vmem>>, vector<128x128xbf16>
    %1 = arith.extf %0 : vector<128x128xbf16> to vector<128x128xf32>
    %c0_1 = arith.constant 0 : index
    %c0_2 = arith.constant 0 : index
    %2 = vector.load %arg3[%c0_1, %c0_2] : memref<1x128xf32, #tpu.memory_space<vmem>>, vector<1x128xf32>
    %3 = vector.broadcast %2 : vector<1x128xf32> to vector<128x128xf32>
    %4 = arith.mulf %1, %3 : vector<128x128xf32>
    %c0_3 = arith.constant 0 : index
    %c0_4 = arith.constant 0 : index
    %5 = vector.load %arg4[%c0_3, %c0_4] : memref<1x128xf32, #tpu.memory_space<vmem>>, vector<1x128xf32>
    %6 = vector.broadcast %5 : vector<1x128xf32> to vector<128x128xf32>
    %7 = arith.addf %4, %6 : vector<128x128xf32>
    %c0_5 = arith.constant 0 : index
    %c0_6 = arith.constant 0 : index
    %8 = vector.load %arg5[%c0_5, %c0_6] : memref<128x128xbf16, #tpu.memory_space<vmem>>, vector<128x128xbf16>
    %9 = arith.extf %8 : vector<128x128xbf16> to vector<128x128xf32>
    %c0_7 = arith.constant 0 : index
    %c0_8 = arith.constant 0 : index
    %10 = vector.load %arg6[%c0_7, %c0_8] : memref<1x128xf32, #tpu.memory_space<vmem>>, vector<1x128xf32>
    %11 = vector.broadcast %10 : vector<1x128xf32> to vector<128x128xf32>
    %12 = arith.mulf %9, %11 : vector<128x128xf32>
    %c0_9 = arith.constant 0 : index
    %c0_10 = arith.constant 0 : index
    %13 = vector.load %arg7[%c0_9, %c0_10] : memref<1x128xf32, #tpu.memory_space<vmem>>, vector<1x128xf32>
    %14 = vector.broadcast %13 : vector<1x128xf32> to vector<128x128xf32>
    %15 = arith.addf %12, %14 : vector<128x128xf32>
    %16 = arith.addf %7, %15 : vector<128x128xf32>
    %cst = arith.constant 0.000000e+00 : f32
    %17 = vector.broadcast %cst : f32 to vector<128x128xf32>
    %18 = arith.maximumf %16, %17 : vector<128x128xf32>
    %c0_11 = arith.constant 0 : index
    %c0_12 = arith.constant 0 : index
    %19 = vector.load %arg8[%c0_11, %c0_12] : memref<128x128xf32, #tpu.memory_space<vmem>>, vector<128x128xf32>
    tpu.vector_store %arg8[%c0_11, %c0_12], %18 {strides = array<i32>} : memref<128x128xf32, #tpu.memory_space<vmem>>, vector<128x128xf32>,
    return
  }
  func.func @transform_0(%arg0: i32, %arg1: i32) -> (i32, i32) {
    %c0_i32 = arith.constant 0 : i32
    return %arg0, %arg1 : i32, i32
  }
  func.func @transform_1(%arg0: i32, %arg1: i32) -> (i32, i32) {
    %c0_i32 = arith.constant 0 : i32
    %c0_i32_0 = arith.constant 0 : i32
    return %c0_i32, %arg1 : i32, i32
  }
  func.func @transform_2(%arg0: i32, %arg1: i32) -> (i32, i32) {
    %c0_i32 = arith.constant 0 : i32
    %c0_i32_0 = arith.constant 0 : i32
    return %c0_i32, %arg1 : i32, i32
  }
  func.func @transform_3(%arg0: i32, %arg1: i32) -> (i32, i32) {
    %c0_i32 = arith.constant 0 : i32
    return %arg0, %arg1 : i32, i32
  }
  func.func @transform_4(%arg0: i32, %arg1: i32) -> (i32, i32) {
    %c0_i32 = arith.constant 0 : i32
    %c0_i32_0 = arith.constant 0 : i32
    return %c0_i32, %arg1 : i32, i32
  }
  func.func @transform_5(%arg0: i32, %arg1: i32) -> (i32, i32) {
    %c0_i32 = arith.constant 0 : i32
    %c0_i32_0 = arith.constant 0 : i32
    return %c0_i32, %arg1 : i32, i32
  }
  func.func @transform_6(%arg0: i32, %arg1: i32) -> (i32, i32) {
    %c0_i32 = arith.constant 0 : i32
    return %arg0, %arg1 : i32, i32
  }
}

</mosaic_0001>

<bundles_post_ra>
// kernel: _forward_impl.6
= control target key start
LH: loop header
LB: loop body
LE: loop exit
PB: predicated region body
PF: predicated region fallthrough
CT: control target
= control target key end

     0   :  { %s646_s1 = inlined_call_operand.vmem [shape: bf16[1,128,128], index: 1, kind: input, shape index: {}]   ;;  %s647_s0 = inlined_call_operand.vmem [shape: bf16[2,8,8,128], index: 0, kind: input, shape index: {}]   ;;  %s648_s2 = inlined_call_operand.vmem [shape: bf16[128,128], index: 2, kind: output, shape index: {0}]   ;;  %s649_s3 = inlined_call_operand.vmem [shape: f32[1,8,128], index: 3, kind: output, shape index: {1}]  }
   0x1   :  { %v535_v0 = vld [vmem:[%s646_s1 + $0x38] sm:$0xff]   ;;  %v536_v1 = vld [vmem:[%s646_s1 + $0x30] sm:$0xff]   ;;  %v537_v2 = vld [vmem:[%s646_s1 + $0x28] sm:$0xff]  }
   0x2   :  { %487 = vmatprep.subr.bf16.mxu0 %v535_v0  ;;  %519 = vmatprep.subr.bf16.mxu1 %v535_v0  ;;  %v538_v3 = vld [vmem:[%s646_s1 + $0x20] sm:$0xff]   ;;  %v539_v5 = vld [vmem:[%s646_s1 + $0x18] sm:$0xff]   ;;  %v540_v7 = vld [vmem:[%s646_s1 + $0x10] sm:$0xff]  }
   0x3   :  { %488 = vmatpush3.bf16.msra.mxu0 %v535_v0  ;;  %527 = vmatpush3.bf16.msra.mxu1 %v535_v0  ;;  %v543_v4 = vld [vmem:[%s647_s0] sm:$0xff]   ;;  %v541_v8 = vld [vmem:[%s646_s1 + $0x8] sm:$0xff]   ;;  %v545_v12 = vld [vmem:[%s647_s0 + $0x10] sm:$0xff]  }
   0x4   :  { %489 = vmatprep.subr.bf16.mxu0 %v536_v1  ;;  %520 = vmatprep.subr.bf16.mxu1 %v536_v1  ;;  %v547_v6 = vld [vmem:[%s647_s0 + $0x20] sm:$0xff]   ;;  %v544_v10 = vld [vmem:[%s647_s0 + $0x8] sm:$0xff]   ;;  %v549_v13 = vld [vmem:[%s647_s0 + $0x30] sm:$0xff]  }
   0x5   :  { %503 = vmatprep.mubr.bf16.mxu0 %v543_v4  ;;  %511 = vmatprep.mubr.bf16.mxu1 %v547_v6  ;;  %v542_v9 = vld [vmem:[%s646_s1] sm:$0xff]   ;;  %v548_v11 = vld [vmem:[%s647_s0 + $0x28] sm:$0xff]   ;;  %v546_v14 = vld [vmem:[%s647_s0 + $0x18] sm:$0xff]  }
   0x6   :  { %v550_v15 = vld [vmem:[%s647_s0 + $0x38] sm:$0xff]  }
   0x7   :  { %490 = vmatpush3.bf16.msra.mxu0 %v536_v1  ;;  %528 = vmatpush3.bf16.msra.mxu1 %v536_v1 }
   0x8   :  { %491 = vmatprep.subr.bf16.mxu0 %v537_v2  ;;  %521 = vmatprep.subr.bf16.mxu1 %v537_v2 }
   0xb   :  { %492 = vmatpush3.bf16.msra.mxu0 %v537_v2  ;;  %529 = vmatpush3.bf16.msra.mxu1 %v537_v2 }
   0xc   :  { %493 = vmatprep.subr.bf16.mxu0 %v538_v3  ;;  %522 = vmatprep.subr.bf16.mxu1 %v538_v3 }
   0xf   :  { %494 = vmatpush3.bf16.msra.mxu0 %v538_v3  ;;  %530 = vmatpush3.bf16.msra.mxu1 %v538_v3 }
  0x10   :  { %495 = vmatprep.subr.bf16.mxu0 %v539_v5  ;;  %523 = vmatprep.subr.bf16.mxu1 %v539_v5 }
  0x13   :  { %496 = vmatpush3.bf16.msra.mxu0 %v539_v5  ;;  %531 = vmatpush3.bf16.msra.mxu1 %v539_v5 }
  0x14   :  { %497 = vmatprep.subr.bf16.mxu0 %v540_v7  ;;  %524 = vmatprep.subr.bf16.mxu1 %v540_v7 }
  0x17   :  { %498 = vmatpush3.bf16.msra.mxu0 %v540_v7  ;;  %532 = vmatpush3.bf16.msra.mxu1 %v540_v7 }
  0x18   :  { %499 = vmatprep.subr.bf16.mxu0 %v541_v8  ;;  %525 = vmatprep.subr.bf16.mxu1 %v541_v8 }
  0x1b   :  { %500 = vmatpush3.bf16.msra.mxu0 %v541_v8  ;;  %533 = vmatpush3.bf16.msra.mxu1 %v541_v8 }
  0x1c   :  { %501 = vmatprep.subr.bf16.mxu0 %v542_v9  ;;  %526 = vmatprep.subr.bf16.mxu1 %v542_v9 }
  0x1f   :  { %502 = vmatpush3.bf16.msra.mxu0 %v542_v9  ;;  %534 = vmatpush3.bf16.msra.mxu1 %v542_v9 }
  0x22   :  { %504 = vmatmul.mubr.bf16.vlgmr.msra.gmra.mxu0 %v544_v10  ;;  %512 = vmatmul.mubr.bf16.vlgmr.msra.gmra.mxu1 %v548_v11 }
  0x23   :  { %507 = vmatprep.mubr.bf16.mxu0 %v545_v12  ;;  %515 = vmatprep.mubr.bf16.mxu1 %v549_v13 }
  0x2a   :  { %508 = vmatmul.mubr.bf16.gmra.mxu0 %v546_v14  ;;  %516 = vmatmul.mubr.bf16.gmra.mxu1 %v550_v15 }
  0xe2   :  { %v505_v16 = vpop.f32.mrf.mxu0  ;;  %v513_v17 = vpop.f32.mrf.mxu1 }
  0xe3   :  { %v323_v33 = vmul.f32 %v505_v16, %v505_v16  ;;  %v331_v3 = vmul.f32 %v513_v17, %v513_v17 }
  0xe4   :  { %v157_v18 = vpop.f32.mrf.mxu0  ;;  %v189_v19 = vpop.f32.mrf.mxu1 }
  0xe5   :  { %v321_v24 = vmul.f32 %v157_v18, %v157_v18  ;;  %v329_v61 = vmul.f32 %v189_v19, %v189_v19 }
  0xe6   :  { %v506_v20 = vpop.f32.mrf.mxu0  ;;  %v514_v21 = vpop.f32.mrf.mxu1 }
  0xe7   :  { %v432_v22 = vpack.c.bf16 %v506_v20, %v505_v16  ;;  %v452_v23 = vpack.c.bf16 %v514_v21, %v513_v17  ;;  %v324_v38 = vmul.f32 %v506_v20, %v506_v20  ;;  %v332_v6 = vmul.f32 %v514_v21, %v514_v21 }
  0xe8   :  { %v160_v25 = vpop.f32.mrf.mxu0  ;;  %v192_v26 = vpop.f32.mrf.mxu1 }
  0xe9   :  { %464 = vst [vmem:[%s648_s2 + $0x8] sm:$0xff] %v432_v22   ;;  %v427_v27 = vpack.c.bf16 %v160_v25, %v157_v18  ;;  %v300_v28 = vadd.f32 %v160_v25, %v157_v18  ;;  %v322_v29 = vmul.f32 %v160_v25, %v160_v25  ;;  %468 = vst [vmem:[%s648_s2 + $0x28] sm:$0xff] %v452_v23  }
  0xea   :  { %v447_v30 = vpack.c.bf16 %v192_v26, %v189_v19  ;;  %v509_v31 = vpop.f32.mrf.mxu0  ;;  %v517_v32 = vpop.f32.mrf.mxu1  ;;  %v330_v1 = vmul.f32 %v192_v26, %v192_v26 }
  0xeb   :  { %428 = vst [vmem:[%s648_s2] sm:$0xff] %v427_v27   ;;  %v301_v34 = vadd.f32 %v505_v16, %v300_v28  ;;  %v337_v35 = vadd.f32 %v322_v29, %v321_v24  ;;  %v327_v55 = vmul.f32 %v509_v31, %v509_v31  ;;  %v335_v15 = vmul.f32 %v517_v32, %v517_v32 }
  0xec   :  { %467 = vst [vmem:[%s648_s2 + $0x20] sm:$0xff] %v447_v30   ;;  %v173_v36 = vpop.f32.mrf.mxu0  ;;  %v205_v37 = vpop.f32.mrf.mxu1 }
  0xed   :  { %v338_v39 = vadd.f32 %v337_v35, %v323_v33  ;;  %v302_v40 = vadd.f32 %v506_v20, %v301_v34  ;;  %v325_v44 = vmul.f32 %v173_v36, %v173_v36  ;;  %v333_v10 = vmul.f32 %v205_v37, %v205_v37 }
  0xee   :  { %v510_v41 = vpop.f32.mrf.mxu0  ;;  %v518_v42 = vpop.f32.mrf.mxu1 }
  0xef   :  { %v303_v43 = vadd.f32 %v302_v40, %v173_v36  ;;  %v339_v45 = vadd.f32 %v338_v39, %v324_v38  ;;  %v442_v46 = vpack.c.bf16 %v510_v41, %v509_v31  ;;  %v462_v48 = vpack.c.bf16 %v518_v42, %v517_v32 }
  0xf0   :  { %v176_v47 = vpop.f32.mrf.mxu0  ;;  %v208_v49 = vpop.f32.mrf.mxu1  ;;  %v328_v58 = vmul.f32 %v510_v41, %v510_v41  ;;  %v336_v20 = vmul.f32 %v518_v42, %v518_v42 }
  0xf1   :  { %v340_v50 = vadd.f32 %v339_v45, %v325_v44  ;;  %466 = vst [vmem:[%s648_s2 + $0x18] sm:$0xff] %v442_v46   ;;  %v437_v51 = vpack.c.bf16 %v176_v47, %v173_v36  ;;  %v304_v52 = vadd.f32 %v303_v43, %v176_v47  ;;  %v326_v53 = vmul.f32 %v176_v47, %v176_v47 }
  0xf2   :  { %470 = vst [vmem:[%s648_s2 + $0x38] sm:$0xff] %v462_v48   ;;  %v457_v54 = vpack.c.bf16 %v208_v49, %v205_v37  ;;  %v334_v14 = vmul.f32 %v208_v49, %v208_v49 }
  0xf3   :  { %465 = vst [vmem:[%s648_s2 + $0x10] sm:$0xff] %v437_v51   ;;  %v305_v56 = vadd.f32 %v509_v31, %v304_v52  ;;  %v341_v57 = vadd.f32 %v340_v50, %v326_v53 }
  0xf4   :  { %469 = vst [vmem:[%s648_s2 + $0x30] sm:$0xff] %v457_v54  }
  0xf5   :  { %v306_v59 = vadd.f32 %v510_v41, %v305_v56  ;;  %v342_v60 = vadd.f32 %v341_v57, %v327_v55 }
  0xf7   :  { %v343_v62 = vadd.f32 %v342_v60, %v328_v58  ;;  %v307_v63 = vadd.f32 %v306_v59, %v189_v19 }
  0xf9   :  { %v308_v0 = vadd.f32 %v307_v63, %v192_v26  ;;  %v344_v2 = vadd.f32 %v343_v62, %v329_v61  ;;  %v358_v26 = vlaneseq }
  0xfb   :  { %v309_v4 = vadd.f32 %v513_v17, %v308_v0  ;;  %v345_v5 = vadd.f32 %v344_v2, %v330_v1  ;;  %v359_v30 = vshrl.u32 %v358_v26, 7 }
  0xfd   :  { %v346_v7 = vadd.f32 %v345_v5, %v331_v3  ;;  %v310_v8 = vadd.f32 %v514_v21, %v309_v4  ;;  %vm360_vm0 = vcmp.eq.s32.totalorder %v359_v30, 0  ;;  %vm362_vm1 = vcmp.eq.s32.totalorder %v359_v30, 1 }
  0xff   :  { %v311_v9 = vadd.f32 %v310_v8, %v205_v37  ;;  %v347_v11 = vadd.f32 %v346_v7, %v332_v6 }
 0x101   :  { %v348_v12 = vadd.f32 %v347_v11, %v333_v10  ;;  %v312_v13 = vadd.f32 %v311_v9, %v208_v49 }
 0x103   :  { %v313_v16 = vadd.f32 %v517_v32, %v312_v13  ;;  %v349_v18 = vadd.f32 %v348_v12, %v334_v14 }
 0x105   :  { %v314_v19 = vadd.f32 %v518_v42, %v313_v16  ;;  %v350_v22 = vadd.f32 %v349_v18, %v335_v15 }
 0x107   :  { %v315_v23 = vrot.slane %v314_v19, 4  ;;  %v351_v24 = vadd.f32 %v350_v22, %v336_v20 }
 0x109   :  { %v316_v25 = vadd.f32 %v315_v23, %v314_v19  ;;  %v352_v17 = vrot.slane %v351_v24, 4 }
 0x10b   :  { %v317_v27 = vrot.slane %v316_v25, 2  ;;  %v353_v28 = vadd.f32 %v352_v17, %v351_v24 }
 0x10d   :  { %v318_v21 = vadd.f32 %v317_v27, %v316_v25  ;;  %v354_v29 = vrot.slane %v353_v28, 2 }
 0x10f   :  { %v319_v31 = vrot.slane %v318_v21, 1  ;;  %v355_v33 = vadd.f32 %v354_v29, %v353_v28 }
 0x111   :  { %v320_v34 = vadd.f32 %v319_v31, %v318_v21  ;;  %v356_v35 = vrot.slane %v355_v33, 1 }
 0x113   :  { %v357_v32 = vadd.f32 %v356_v35, %v355_v33  ;;  %v361_v36 = vsel %vm360_vm0, %v320_v34, 0.0 }
 0x115   :  { %v363_v37 = vsel %vm362_vm1, %v357_v32, 0.0 }
 0x116   :  { %v364_v38 = vadd.f32 %v363_v37, %v361_v36 }
 0x118   :  { %365 = vst [vmem:[%s649_s3] sm:$0xff] %v364_v38 }

// kernel: _forward_impl.7
= control target key start
LH: loop header
LB: loop body
LE: loop exit
PB: predicated region body
PF: predicated region fallthrough
CT: control target
= control target key end

     0   :  { %s528_s0 = inlined_call_operand.vmem [shape: bf16[128,128], index: 0, kind: input, shape index: {}]   ;;  %s529_s1 = inlined_call_operand.vmem [shape: f32[1,128], index: 1, kind: input, shape index: {}]   ;;  %s530_s2 = inlined_call_operand.vmem [shape: f32[1,128], index: 2, kind: input, shape index: {}]   ;;  %s531_s3 = inlined_call_operand.vmem [shape: bf16[128,128], index: 3, kind: input, shape index: {}]   ;;  %s532_s4 = inlined_call_operand.vmem [shape: f32[1,128], index: 4, kind: input, shape index: {}]   ;;  %s533_s5 = inlined_call_operand.vmem [shape: f32[1,128], index: 5, kind: input, shape index: {}]   ;;  %s534_s6 = inlined_call_operand.vmem [shape: f32[128,128], index: 6, kind: output, shape index: {}]  }
   0x1   :  { %v236_v0 = vld [vmem:[%s528_s0] sm:$0xff]   ;;  %v299_v9 = vld [vmem:[%s528_s0 + $0x8] sm:$0xff]   ;;  %v300_v20 = vld [vmem:[%s528_s0 + $0x10] sm:$0xff]  }
   0x2   :  { %v354_v1 = vld [vmem:[%s529_s1] ss:$0 sm:$0xff]  ;;  %v237_v2 = vunpack.c.l.bf16 %v236_v0  ;;  %v238_v5 = vunpack.c.h.bf16 %v236_v0  ;;  %v306_v10 = vld [vmem:[%s531_s3 + $0x8] sm:$0xff]   ;;  %v241_v14 = vunpack.c.l.bf16 %v299_v9  ;;  %v242_v18 = vunpack.c.h.bf16 %v299_v9  ;;  %v307_v21 = vld [vmem:[%s531_s3 + $0x10] sm:$0xff]  }
   0x3   :  { %v268_v3 = vld [vmem:[%s531_s3] sm:$0xff]   ;;  %v273_v15 = vunpack.c.l.bf16 %v306_v10  ;;  %v274_v19 = vunpack.c.h.bf16 %v306_v10  ;;  %v245_v32 = vunpack.c.l.bf16 %v300_v20  ;;  %v277_v33 = vunpack.c.l.bf16 %v307_v21  ;;  %v301_v42 = vld [vmem:[%s528_s0 + $0x18] sm:$0xff]  }
   0x4   :  { %v362_v4 = vld [vmem:[%s532_s4] ss:$0 sm:$0xff]  ;;  %v269_v7 = vunpack.c.l.bf16 %v268_v3  ;;  %v270_v8 = vunpack.c.h.bf16 %v268_v3  ;;  %v62_v11 = vmul.f32 %v237_v2, %v354_v1  ;;  %v63_v13 = vmul.f32 %v238_v5, %v354_v1  ;;  %v308_v43 = vld [vmem:[%s531_s3 + $0x18] sm:$0xff]  }
   0x5   :  { %v367_v6 = vld [vmem:[%s530_s2] ss:$0 sm:$0xff]  ;;  %v64_v24 = vmul.f32 %v241_v14, %v354_v1  ;;  %v142_v25 = vmul.f32 %v273_v15, %v362_v4  ;;  %v65_v28 = vmul.f32 %v242_v18, %v354_v1  ;;  %v143_v29 = vmul.f32 %v274_v19, %v362_v4  ;;  %v303_v14 = vld [vmem:[%s528_s0 + $0x28] sm:$0xff]  }
   0x6   :  { %v379_v12 = vld [vmem:[%s533_s5] ss:$0 sm:$0xff]  ;;  %v140_v16 = vmul.f32 %v269_v7, %v362_v4  ;;  %v141_v17 = vmul.f32 %v270_v8, %v362_v4  ;;  %v85_v22 = vadd.f32 %v367_v6, %v62_v11  ;;  %v86_v23 = vadd.f32 %v367_v6, %v63_v13  ;;  %v310_v19 = vld [vmem:[%s531_s3 + $0x28] sm:$0xff]  }
   0x7   :  { %v87_v30 = vadd.f32 %v367_v6, %v64_v24  ;;  %v165_v31 = vadd.f32 %v379_v12, %v142_v25  ;;  %v88_v36 = vadd.f32 %v367_v6, %v65_v28  ;;  %v166_v37 = vadd.f32 %v379_v12, %v143_v29  ;;  %v302_v52 = vld [vmem:[%s528_s0 + $0x20] sm:$0xff]  }
   0x8   :  { %v163_v26 = vadd.f32 %v379_v12, %v140_v16  ;;  %v164_v27 = vadd.f32 %v379_v12, %v141_v17  ;;  %v66_v39 = vmul.f32 %v245_v32, %v354_v1  ;;  %v144_v40 = vmul.f32 %v277_v33, %v362_v4  ;;  %v309_v57 = vld [vmem:[%s531_s3 + $0x20] sm:$0xff]   ;;  %v304_v32 = vld [vmem:[%s528_s0 + $0x30] sm:$0xff]  }
   0x9   :  { %v181_v38 = vadd.f32 %v165_v31, %v87_v30  ;;  %v246_v41 = vunpack.c.h.bf16 %v300_v20  ;;  %v182_v46 = vadd.f32 %v166_v37, %v88_v36  ;;  %v278_v47 = vunpack.c.h.bf16 %v307_v21  ;;  %v311_v33 = vld [vmem:[%s531_s3 + $0x30] sm:$0xff]  }
   0xa   :  { %v179_v34 = vadd.f32 %v163_v26, %v85_v22  ;;  %v180_v35 = vadd.f32 %v164_v27, %v86_v23  ;;  %v89_v49 = vadd.f32 %v367_v6, %v66_v39  ;;  %v167_v50 = vadd.f32 %v379_v12, %v144_v40 }
   0xb   :  { %v197_v48 = vmax.f32 %v181_v38, 0.0  ;;  %v67_v51 = vmul.f32 %v246_v41, %v354_v1  ;;  %v198_v53 = vmax.f32 %v182_v46, 0.0  ;;  %v145_v54 = vmul.f32 %v278_v47, %v362_v4  ;;  %v305_v46 = vld [vmem:[%s528_s0 + $0x38] sm:$0xff]  }
   0xc   :  { %v195_v44 = vmax.f32 %v179_v34, 0.0  ;;  %v196_v45 = vmax.f32 %v180_v35, 0.0  ;;  %v249_v55 = vunpack.c.l.bf16 %v301_v42  ;;  %v281_v56 = vunpack.c.l.bf16 %v308_v43 }
   0xd   :  { %213 = vst [vmem:[%s534_s6 + $0x10] sm:$0xff] %v197_v48  ;;  %v183_v58 = vadd.f32 %v167_v50, %v89_v49  ;;  %v90_v59 = vadd.f32 %v367_v6, %v67_v51  ;;  %v250_v60 = vunpack.c.h.bf16 %v301_v42  ;;  %v282_v61 = vunpack.c.h.bf16 %v308_v43  ;;  %214 = vst [vmem:[%s534_s6 + $0x18] sm:$0xff] %v198_v53 }
   0xe   :  { %211 = vst [vmem:[%s534_s6] sm:$0xff] %v195_v44  ;;  %212 = vst [vmem:[%s534_s6 + $0x8] sm:$0xff] %v196_v45  ;;  %v168_v62 = vadd.f32 %v379_v12, %v145_v54  ;;  %v68_v63 = vmul.f32 %v249_v55, %v354_v1  ;;  %v146_v0 = vmul.f32 %v281_v56, %v362_v4  ;;  %v253_v2 = vunpack.c.l.bf16 %v302_v52  ;;  %v312_v55 = vld [vmem:[%s531_s3 + $0x38] sm:$0xff]  }
   0xf   :  { %v199_v3 = vmax.f32 %v183_v58, 0.0  ;;  %v69_v5 = vmul.f32 %v250_v60, %v354_v1  ;;  %v147_v7 = vmul.f32 %v282_v61, %v362_v4  ;;  %v285_v8 = vunpack.c.l.bf16 %v309_v57 }
  0x10   :  { %v184_v9 = vadd.f32 %v168_v62, %v90_v59  ;;  %v91_v10 = vadd.f32 %v367_v6, %v68_v63  ;;  %v169_v11 = vadd.f32 %v379_v12, %v146_v0  ;;  %v70_v13 = vmul.f32 %v253_v2, %v354_v1 }
  0x11   :  { %215 = vst [vmem:[%s534_s6 + $0x20] sm:$0xff] %v199_v3  ;;  %v92_v15 = vadd.f32 %v367_v6, %v69_v5  ;;  %v170_v16 = vadd.f32 %v379_v12, %v147_v7  ;;  %v148_v17 = vmul.f32 %v285_v8, %v362_v4  ;;  %v254_v18 = vunpack.c.h.bf16 %v302_v52 }
  0x12   :  { %v200_v20 = vmax.f32 %v184_v9, 0.0  ;;  %v185_v21 = vadd.f32 %v169_v11, %v91_v10  ;;  %v93_v22 = vadd.f32 %v367_v6, %v70_v13  ;;  %v286_v23 = vunpack.c.h.bf16 %v309_v57 }
  0x13   :  { %v186_v24 = vadd.f32 %v170_v16, %v92_v15  ;;  %v171_v25 = vadd.f32 %v379_v12, %v148_v17  ;;  %v71_v26 = vmul.f32 %v254_v18, %v354_v1  ;;  %v257_v27 = vunpack.c.l.bf16 %v303_v14 }
  0x14   :  { %216 = vst [vmem:[%s534_s6 + $0x28] sm:$0xff] %v200_v20  ;;  %v201_v28 = vmax.f32 %v185_v21, 0.0  ;;  %v149_v29 = vmul.f32 %v286_v23, %v362_v4  ;;  %v289_v30 = vunpack.c.l.bf16 %v310_v19  ;;  %v258_v31 = vunpack.c.h.bf16 %v303_v14 }
  0x15   :  { %v202_v34 = vmax.f32 %v186_v24, 0.0  ;;  %v187_v35 = vadd.f32 %v171_v25, %v93_v22  ;;  %v94_v36 = vadd.f32 %v367_v6, %v71_v26  ;;  %v72_v37 = vmul.f32 %v257_v27, %v354_v1 }
  0x16   :  { %217 = vst [vmem:[%s534_s6 + $0x30] sm:$0xff] %v201_v28  ;;  %v172_v38 = vadd.f32 %v379_v12, %v149_v29  ;;  %v150_v39 = vmul.f32 %v289_v30, %v362_v4  ;;  %v73_v40 = vmul.f32 %v258_v31, %v354_v1  ;;  %v290_v41 = vunpack.c.h.bf16 %v310_v19 }
  0x17   :  { %218 = vst [vmem:[%s534_s6 + $0x38] sm:$0xff] %v202_v34  ;;  %v203_v42 = vmax.f32 %v187_v35, 0.0  ;;  %v95_v43 = vadd.f32 %v367_v6, %v72_v37  ;;  %v261_v44 = vunpack.c.l.bf16 %v304_v32  ;;  %v293_v45 = vunpack.c.l.bf16 %v311_v33 }
  0x18   :  { %v188_v47 = vadd.f32 %v172_v38, %v94_v36  ;;  %v173_v48 = vadd.f32 %v379_v12, %v150_v39  ;;  %v96_v49 = vadd.f32 %v367_v6, %v73_v40  ;;  %v151_v50 = vmul.f32 %v290_v41, %v362_v4 }
  0x19   :  { %219 = vst [vmem:[%s534_s6 + $0x40] sm:$0xff] %v203_v42  ;;  %v74_v51 = vmul.f32 %v261_v44, %v354_v1  ;;  %v152_v52 = vmul.f32 %v293_v45, %v362_v4  ;;  %v262_v53 = vunpack.c.h.bf16 %v304_v32  ;;  %v294_v54 = vunpack.c.h.bf16 %v311_v33 }
  0x1a   :  { %v204_v56 = vmax.f32 %v188_v47, 0.0  ;;  %v189_v57 = vadd.f32 %v173_v48, %v95_v43  ;;  %v174_v58 = vadd.f32 %v379_v12, %v151_v50  ;;  %v265_v59 = vunpack.c.l.bf16 %v305_v46 }
  0x1b   :  { %v97_v60 = vadd.f32 %v367_v6, %v74_v51  ;;  %v175_v61 = vadd.f32 %v379_v12, %v152_v52  ;;  %v75_v62 = vmul.f32 %v262_v53, %v354_v1  ;;  %v153_v63 = vmul.f32 %v294_v54, %v362_v4 }
  0x1c   :  { %220 = vst [vmem:[%s534_s6 + $0x48] sm:$0xff] %v204_v56  ;;  %v205_v0 = vmax.f32 %v189_v57, 0.0  ;;  %v190_v2 = vadd.f32 %v174_v58, %v96_v49  ;;  %v76_v3 = vmul.f32 %v265_v59, %v354_v1  ;;  %v297_v5 = vunpack.c.l.bf16 %v312_v55 }
  0x1d   :  { %v191_v7 = vadd.f32 %v175_v61, %v97_v60  ;;  %v98_v8 = vadd.f32 %v367_v6, %v75_v62  ;;  %v176_v9 = vadd.f32 %v379_v12, %v153_v63  ;;  %v266_v10 = vunpack.c.h.bf16 %v305_v46 }
  0x1e   :  { %221 = vst [vmem:[%s534_s6 + $0x50] sm:$0xff] %v205_v0  ;;  %v206_v11 = vmax.f32 %v190_v2, 0.0  ;;  %v99_v13 = vadd.f32 %v367_v6, %v76_v3  ;;  %v154_v14 = vmul.f32 %v297_v5, %v362_v4  ;;  %v298_v15 = vunpack.c.h.bf16 %v312_v55 }
  0x1f   :  { %v207_v16 = vmax.f32 %v191_v7, 0.0  ;;  %v192_v17 = vadd.f32 %v176_v9, %v98_v8  ;;  %v77_v18 = vmul.f32 %v266_v10, %v354_v1 }
  0x20   :  { %222 = vst [vmem:[%s534_s6 + $0x58] sm:$0xff] %v206_v11  ;;  %v177_v19 = vadd.f32 %v379_v12, %v154_v14  ;;  %v155_v20 = vmul.f32 %v298_v15, %v362_v4 }
  0x21   :  { %223 = vst [vmem:[%s534_s6 + $0x60] sm:$0xff] %v207_v16  ;;  %v208_v21 = vmax.f32 %v192_v17, 0.0  ;;  %v100_v22 = vadd.f32 %v367_v6, %v77_v18 }
  0x22   :  { %v193_v23 = vadd.f32 %v177_v19, %v99_v13  ;;  %v178_v24 = vadd.f32 %v379_v12, %v155_v20 }
  0x23   :  { %224 = vst [vmem:[%s534_s6 + $0x68] sm:$0xff] %v208_v21 }
  0x24   :  { %v209_v1 = vmax.f32 %v193_v23, 0.0  ;;  %v194_v25 = vadd.f32 %v178_v24, %v100_v22 }
  0x26   :  { %225 = vst [vmem:[%s534_s6 + $0x70] sm:$0xff] %v209_v1  ;;  %v210_v4 = vmax.f32 %v194_v25, 0.0 }
  0x28   :  { %226 = vst [vmem:[%s534_s6 + $0x78] sm:$0xff] %v210_v4 }

// kernel: _forward_impl.5
= control target key start
LH: loop header
LB: loop body
LE: loop exit
PB: predicated region body
PF: predicated region fallthrough
CT: control target
= control target key end

     0   :  { %v235_v6 = vlaneseq  ;;  %vm350_vm0 = vcmask 1046528   ;;  %v4402_v47 = vmov 0.0   ;;  %vm3191_vm3 = vmmov 1   ;;  %s4396_s1 = inlined_call_operand.vmem [shape: bf16[9,128,128], index: 1, kind: input, shape index: {}]   ;;  %s4397_s0 = inlined_call_operand.vmem [shape: bf16[2,10,10,128], index: 0, kind: input, shape index: {}]   ;;  %s4398_s2 = inlined_call_operand.vmem [shape: f32[1,128], index: 2, kind: input, shape index: {}]   ;;  %s4399_s3 = inlined_call_operand.vmem [shape: f32[1,128], index: 3, kind: input, shape index: {}]   ;;  %s4400_s4 = inlined_call_operand.vmem [shape: bf16[128,128], index: 4, kind: output, shape index: {0}]   ;;  %s4401_s5 = inlined_call_operand.vmem [shape: f32[1,8,128], index: 5, kind: output, shape index: {1}]  }
   0x1   :  { %v3116_v0 = vld [vmem:[%s4396_s1 + $0x78] sm:$0xff]   ;;  %v3118_v2 = vld [vmem:[%s4396_s1 + $0x70] sm:$0xff]   ;;  %v3120_v4 = vld [vmem:[%s4396_s1 + $0x68] sm:$0xff]   ;;  %v3315_v48 = vrot.slane %v4402_v47, 1  ;;  %vm732_vm6 = vcmask 1045504  }
   0x2   :  { %v3117_v1 = vld [vmem:[%s4396_s1 + $0x38] sm:$0xff]   ;;  %2810 = vmatprep.subr.bf16.mxu0 %v3116_v0  ;;  %v3119_v3 = vld [vmem:[%s4396_s1 + $0x30] sm:$0xff]   ;;  %v3121_v5 = vld [vmem:[%s4396_s1 + $0x28] sm:$0xff]   ;;  %v3246_v9 = vshrl.u32 %v235_v6, 7 }
   0x3   :  { %2842 = vmatprep.subr.bf16.mxu1 %v3117_v1  ;;  %2811 = vmatpush3.bf16.msra.mxu0 %v3116_v0  ;;  %v3122_v7 = vld [vmem:[%s4396_s1 + $0x60] sm:$0xff]   ;;  %v3124_v10 = vld [vmem:[%s4396_s1 + $0x58] sm:$0xff]   ;;  %v3126_v12 = vld [vmem:[%s4396_s1 + $0x50] sm:$0xff]   ;;  %4428 = vst [vmem:[#allocation3_spill] sm:$0xff] %v3315_v48 }
   0x4   :  { %2843 = vmatpush3.bf16.msra.mxu1 %v3117_v1  ;;  %2812 = vmatprep.subr.bf16.mxu0 %v3118_v2  ;;  %v3123_v8 = vld [vmem:[%s4396_s1 + $0x20] sm:$0xff]   ;;  %4427 = vst [vmem:[#allocation2_spill] sm:$0xff] %v3246_v9  ;;  %v3125_v11 = vld [vmem:[%s4396_s1 + $0x18] sm:$0xff]   ;;  %v3258_v13 = vadd.s32 8, %v3246_v9  ;;  %v23_v14 = vld [vmem:[%s4397_s0 + $0x8] ss:$8 sps:$4 sm:$0xff]  }
   0x5   :  { %2844 = vmatprep.subr.bf16.mxu1 %v3119_v3  ;;  %v24_v15 = vld [vmem:[%s4397_s0 + $0xc] sm:$0x1]  ;;  %v26_v16 = vld [vmem:[%s4397_s0 + $0x14] sm:$0x1]  ;;  %v63_v18 = vunpack.c.l.bf16 %v23_v14  ;;  %v65_v20 = vunpack.c.h.bf16 %v23_v14  ;;  %v3275_v22 = vld [vmem:[%s4398_s2] ss:$0 sm:$0xff] }
   0x6   :  { %v3127_v17 = vld [vmem:[%s4396_s1 + $0x10] sm:$0xff]   ;;  %v64_v19 = vunpack.c.l.bf16 %v24_v15  ;;  %v66_v21 = vunpack.c.l.bf16 %v26_v16  ;;  %v3280_v23 = vld [vmem:[%s4399_s3] ss:$0 sm:$0xff]  ;;  %v28_v25 = vld [vmem:[%s4397_s0 + $0x1c] sm:$0x1]  ;;  %vm238_vm1 = vcmp.ge.s32.totalorder %v3246_v9, 1 }
   0x7   :  { %2813 = vmatpush3.bf16.msra.mxu0 %v3118_v2  ;;  %v27_v24 = vld [vmem:[%s4397_s0 + $0x18] ss:$8 sps:$4 sm:$0xff]   ;;  %v111_v26 = vmul.f32 %v3275_v22, %v63_v18  ;;  %v113_v28 = vmul.f32 %v3275_v22, %v65_v20  ;;  %v3128_v30 = vld [vmem:[%s4396_s1 + $0x48] sm:$0xff]   ;;  %v68_v32 = vunpack.c.l.bf16 %v28_v25  ;;  %vm245_vm2 = vcmp.lt.s32.totalorder %v3258_v13, 9  ;;  %v30_v60 = vld [vmem:[%s4397_s0 + $0x24] sm:$0x1] }
   0x8   :  { %2845 = vmatpush3.bf16.msra.mxu1 %v3119_v3  ;;  %2814 = vmatprep.subr.bf16.mxu0 %v3120_v4  ;;  %v112_v27 = vmul.f32 %v3275_v22, %v64_v19  ;;  %v114_v29 = vmul.f32 %v3275_v22, %v66_v21  ;;  %v67_v31 = vunpack.c.l.bf16 %v27_v24  ;;  %v69_v33 = vunpack.c.h.bf16 %v27_v24  ;;  %v3129_v34 = vld [vmem:[%s4396_s1 + $0x8] sm:$0xff]   ;;  %v3130_v46 = vld [vmem:[%s4396_s1 + $0x40] sm:$0xff]   ;;  %vm3350_vm4 = vmpackc.low %vm238_vm1, %vm3191_vm3 }
   0x9   :  { %2846 = vmatprep.subr.bf16.mxu1 %v3121_v5  ;;  %v157_v35 = vadd.f32 %v3280_v23, %v111_v26  ;;  %v159_v37 = vadd.f32 %v3280_v23, %v113_v28  ;;  %v116_v40 = vmul.f32 %v3275_v22, %v68_v32  ;;  %v3131_v51 = vld [vmem:[%s4396_s1] sm:$0xff]   ;;  %v31_v62 = vld [vmem:[%s4397_s0 + $0x28] ss:$8 sps:$4 sm:$0xff]   ;;  %v32_v63 = vld [vmem:[%s4397_s0 + $0x2c] sm:$0x1]  ;;  %v3362_v1 = vrot.slane %v4402_v47, 2 }
   0xa   :  { %v158_v36 = vadd.f32 %v3280_v23, %v112_v27  ;;  %v160_v38 = vadd.f32 %v3280_v23, %v114_v29  ;;  %v115_v39 = vmul.f32 %v3275_v22, %v67_v31  ;;  %v117_v41 = vmul.f32 %v3275_v22, %v69_v33  ;;  %v3132_v6 = vld [vmem:[%s4396_s1 + $0xb8] sm:$0xff]   ;;  %vm3415_vm5 = vmpackc.low %vm238_vm1, %vm238_vm1  ;;  %v3135_v32 = vld [vmem:[%s4396_s1 + $0xf0] sm:$0xff]  }
   0xb   :  { %2815 = vmatpush3.bf16.msra.mxu0 %v3120_v4  ;;  %v3307_v42 = vmax.f32 %v157_v35, 0.0  ;;  %v3309_v44 = vmax.f32 %v159_v37, 0.0  ;;  %v162_v50 = vadd.f32 %v3280_v23, %v116_v40  ;;  %v70_v14 = vunpack.c.l.bf16 %v30_v60  ;;  %v3408_v25 = vld [vmem:[%s4397_s0 + $0x38] ss:$40 sps:$4 sm:$0xff]   ;;  %v36_v31 = vld [vmem:[%s4397_s0 + $0x3c] sm:$0x1]  ;;  %vm4170_vm7 = vmpackc.low %vm3191_vm3, %vm238_vm1 }
   0xc   :  { %2847 = vmatpush3.bf16.msra.mxu1 %v3121_v5  ;;  %2816 = vmatprep.subr.bf16.mxu0 %v3122_v7  ;;  %v198_v43 = vmax.f32 %v158_v36, 0.0  ;;  %v200_v45 = vmax.f32 %v160_v38, 0.0  ;;  %v161_v49 = vadd.f32 %v3280_v23, %v115_v39  ;;  %v163_v0 = vadd.f32 %v3280_v23, %v117_v41  ;;  %v3134_v38 = vld [vmem:[%s4396_s1 + $0xb0] sm:$0xff]   ;;  %v3172_v13 = vld [vmem:[%s4396_s1 + $0x198] sm:$0xff]  }
   0xd   :  { %2848 = vmatprep.subr.bf16.mxu1 %v3123_v8  ;;  %v3325_v52 = vsel %vm238_vm1, %v3307_v42, 0.0  ;;  %v3334_v54 = vsel %vm238_vm1, %v3309_v44, 0.0  ;;  %v2348_v4 = vpack.c.bf16 %v3307_v42, %v4402_v47  ;;  %v72_v18 = vunpack.c.l.bf16 %v32_v63 }
   0xe   :  { %v3329_v53 = vsel %vm245_vm2, %v198_v43, 0.0  ;;  %v3338_v55 = vsel %vm245_vm2, %v200_v45, 0.0  ;;  %v354_v56 = vrot.slane %v3325_v52, 1  ;;  %v357_v58 = vrot.slane %v3334_v54, 1 }
   0xf   :  { %2817 = vmatpush3.bf16.msra.mxu0 %v3122_v7  ;;  %v355_v57 = vrot.slane %v3329_v53, 1  ;;  %v358_v59 = vrot.slane %v3338_v55, 1  ;;  %v3372_v5 = vmax.f32 %v161_v49, 0.0  ;;  %v34_v7 = vld [vmem:[%s4397_s0 + $0x34] sm:$0x1]  ;;  %2858 = vmatprep.mubr.msk.bf16.mxu1 %vm3350_vm4, %v2348_v4  ;;  %v118_v24 = vmul.f32 %v3275_v22, %v70_v14 }
  0x10   :  { %2849 = vmatpush3.bf16.msra.mxu1 %v3123_v8  ;;  %2818 = vmatprep.subr.bf16.mxu0 %v3124_v10  ;;  %v73_v35 = vunpack.c.h.bf16 %v31_v62  ;;  %v74_v36 = vunpack.c.l.bf16 %v34_v7  ;;  %v75_v41 = vunpack.c.l.bf16 %v3408_v25  ;;  %v76_v49 = vunpack.c.l.bf16 %v36_v31 }
  0x11   :  { %2850 = vmatprep.subr.bf16.mxu1 %v3125_v11  ;;  %v3365_v2 = vsel %vm350_vm0, %v354_v56, %v355_v57  ;;  %v3368_v3 = vsel %vm350_vm0, %v357_v58, %v358_v59  ;;  %v3393_v16 = vsel %vm238_vm1, %v3372_v5, 0.0  ;;  %v3402_v21 = vpack.c.bf16 %v3372_v5, %v3309_v44 }
  0x12   :  { %4431 = vst [vmem:[#allocation4_spill] sm:$0xff] %v3365_v2  ;;  %4432 = vst [vmem:[#allocation5_spill] sm:$0xff] %v3368_v3  ;;  %v415_v8 = vpack.c.bf16 %v3365_v2, %v3315_v48  ;;  %v360_v20 = vrot.slane %v3393_v16, 1  ;;  %v164_v33 = vadd.f32 %v3280_v23, %v118_v24  ;;  %v121_v58 = vmul.f32 %v3275_v22, %v73_v35 }
  0x13   :  { %2819 = vmatpush3.bf16.msra.mxu0 %v3124_v10  ;;  %4433 = vst [vmem:[#allocation6_spill] sm:$0xff] %v3402_v21  ;;  %v122_v60 = vmul.f32 %v3275_v22, %v74_v36  ;;  %v124_v63 = vmul.f32 %v3275_v22, %v76_v49 }
  0x14   :  { %2851 = vmatpush3.bf16.msra.mxu1 %v3125_v11  ;;  %2820 = vmatprep.subr.bf16.mxu0 %v3126_v12  ;;  %v202_v11 = vmax.f32 %v162_v50, 0.0  ;;  %v204_v45 = vmax.f32 %v164_v33, 0.0  ;;  %v3454_v50 = vld [vmem:[%s4397_s0 + $0x58] ss:$16 sps:$4 sm:$0xff]   ;;  %v167_v14 = vadd.f32 %v3280_v23, %v121_v58 }
  0x15   :  { %2852 = vmatprep.subr.bf16.mxu1 %v3127_v17  ;;  %2826 = vmatprep.mubr.bf16.mxu0 %v415_v8  ;;  %v83_v31 = vunpack.c.l.bf16 %v3454_v50 }
  0x16   :  { %v3397_v19 = vsel %vm245_vm2, %v202_v11, 0.0  ;;  %v3463_v59 = vsel %vm245_vm2, %v204_v45, 0.0  ;;  %v3512_v35 = vmax.f32 %v167_v14, 0.0 }
  0x17   :  { %2821 = vmatpush3.bf16.msra.mxu0 %v3126_v12  ;;  %v3133_v12 = vld [vmem:[%s4396_s1 + $0xf8] sm:$0xff]   ;;  %v361_v27 = vrot.slane %v3397_v19, 1  ;;  %v364_v8 = vrot.slane %v3463_v59, 1 }
  0x18   :  { %2853 = vmatpush3.bf16.msra.mxu1 %v3127_v17  ;;  %2822 = vmatprep.subr.bf16.mxu0 %v3128_v30  ;;  %v71_v17 = vunpack.c.l.bf16 %v31_v62  ;;  %v123_v62 = vmul.f32 %v3275_v22, %v75_v41 }
  0x19   :  { %2854 = vmatprep.subr.bf16.mxu1 %v3129_v34  ;;  %v3431_v37 = vsel %vm350_vm0, %v360_v20, %v361_v27  ;;  %v44_v20 = vld [vmem:[%s4397_s0 + $0x5c] sm:$0x1] }
  0x1a   :  { %v119_v29 = vmul.f32 %v3275_v22, %v71_v17  ;;  %4436 = vst [vmem:[#allocation7_spill] sm:$0xff] %v3431_v37  ;;  %v3441_v43 = vpack.c.bf16 %v3431_v37, %v3368_v3  ;;  %v168_v17 = vadd.f32 %v3280_v23, %v122_v60  ;;  %v169_v27 = vadd.f32 %v3280_v23, %v123_v62  ;;  %v48_v60 = vld [vmem:[%s4397_s0 + $0x6c] sm:$0x1] }
  0x1b   :  { %2823 = vmatpush3.bf16.msra.mxu0 %v3128_v30  ;;  %v120_v30 = vmul.f32 %v3275_v22, %v72_v18  ;;  %v3136_v18 = vld [vmem:[%s4396_s1 + $0xa8] sm:$0xff]   ;;  %v85_v62 = vunpack.c.h.bf16 %v3408_v25 }
  0x1c   :  { %2855 = vmatpush3.bf16.msra.mxu1 %v3129_v34  ;;  %2824 = vmatprep.subr.bf16.mxu0 %v3130_v46  ;;  %v3428_v34 = vmax.f32 %v163_v0, 0.0  ;;  %v165_v39 = vadd.f32 %v3280_v23, %v119_v29  ;;  %4437 = vst [vmem:[#allocation8_spill] sm:$0xff] %v3441_v43  ;;  %v3137_v0 = vld [vmem:[%s4396_s1 + $0xe8] sm:$0xff]   ;;  %v170_v29 = vadd.f32 %v3280_v23, %v124_v63  ;;  %v208_v36 = vmax.f32 %v168_v17, 0.0  ;;  %v3141_v63 = vld [vmem:[%s4396_s1 + $0xd8] sm:$0xff]  }
  0x1d   :  { %2856 = vmatprep.subr.bf16.mxu1 %v3131_v51  ;;  %v166_v40 = vadd.f32 %v3280_v23, %v120_v30  ;;  %v3139_v30 = vld [vmem:[%s4396_s1 + $0xe0] sm:$0xff]   ;;  %v3524_v45 = vmax.f32 %v169_v27, 0.0 }
  0x1e   :  { %v210_v49 = vmax.f32 %v170_v29, 0.0  ;;  %v3533_v58 = vsel %vm245_vm2, %v208_v36, 0.0 }
  0x1f   :  { %2825 = vmatpush3.bf16.msra.mxu0 %v3130_v46  ;;  %v3449_v46 = vsel %vm238_vm1, %v3428_v34, 0.0  ;;  %v206_v56 = vmax.f32 %v166_v40, 0.0  ;;  %v46_v40 = vld [vmem:[%s4397_s0 + $0x64] sm:$0x1]  ;;  %v370_v14 = vrot.slane %v3533_v58, 1 }
  0x20   :  { %2857 = vmatpush3.bf16.msra.mxu1 %v3131_v51  ;;  %2874 = vmatprep.subr.bf16.mxu0 %v3132_v6  ;;  %v3456_v51 = vmax.f32 %v165_v39, 0.0  ;;  %v363_v57 = vrot.slane %v3449_v46, 1  ;;  %v3138_v39 = vld [vmem:[%s4396_s1 + $0xa0] sm:$0xff]   ;;  %v86_v36 = vunpack.c.l.bf16 %v46_v40  ;;  %v133_v40 = vmul.f32 %v3275_v22, %v85_v62 }
  0x21   :  { %2906 = vmatprep.subr.bf16.mxu1 %v3133_v12  ;;  %v3478_v7 = vsel %vm245_vm2, %v206_v56, 0.0  ;;  %v84_v56 = vunpack.c.l.bf16 %v44_v20  ;;  %v3559_v20 = vpack.c.bf16 %v3524_v45, %v3512_v35 }
  0x22   :  { %2827 = vmatmul.mubr.bf16.vlgmr.msra.gmra.mxu0 %v3441_v43  ;;  %v3474_v4 = vsel %vm238_vm1, %v3456_v51, 0.0  ;;  %v3483_v11 = vpack.c.bf16 %v3456_v51, %v3428_v34  ;;  %v3496_v24 = vsel %vm350_vm0, %v363_v57, %v364_v8  ;;  %v3529_v57 = vsel %vm238_vm1, %v3512_v35, 0.0  ;;  %v3144_v43 = vld [vmem:[%s4396_s1 + $0x88] sm:$0xff]  }
  0x23   :  { %2859 = vmatmul.mubr.msk.bf16.vlgmr.msra.gmra.mxu1 %vm3415_vm5, %v3402_v21  ;;  %2875 = vmatpush3.bf16.msra.mxu0 %v3132_v6  ;;  %v367_v6 = vrot.slane %v3478_v7, 1  ;;  %4439 = vst [vmem:[#allocation10_spill] sm:$0xff] %v3496_v24  ;;  %v3547_v8 = vsel %vm238_vm1, %v3524_v45, 0.0  ;;  %4441 = vst [vmem:[#allocation12_spill] sm:$0xff] %v3559_v20  ;;  %v132_v27 = vmul.f32 %v3275_v22, %v84_v56  ;;  %v88_v56 = vunpack.c.l.bf16 %v48_v60  ;;  %v3140_v60 = vld [vmem:[%s4396_s1 + $0x98] sm:$0xff]  }
  0x24   :  { %2907 = vmatpush3.bf16.msra.mxu1 %v3133_v12  ;;  %4438 = vst [vmem:[#allocation9_spill] sm:$0xff] %v3483_v11  ;;  %2876 = vmatprep.subr.bf16.mxu0 %v3134_v38  ;;  %v366_v12 = vrot.slane %v3474_v4, 1  ;;  %v372_v25 = vrot.slane %v3547_v8, 1 }
  0x25   :  { %2908 = vmatprep.subr.bf16.mxu1 %v3135_v32  ;;  %2862 = vmatprep.mubr.msk.bf16.mxu1 %vm3415_vm5, %v3483_v11 }
  0x26   :  { %v3508_v33 = vsel %vm350_vm0, %v366_v12, %v367_v6  ;;  %v3551_v12 = vsel %vm245_vm2, %v210_v49, 0.0  ;;  %v369_v6 = vrot.slane %v3529_v57, 1  ;;  %v3570_v49 = vld [vmem:[%s4397_s0 + $0x70] ss:$8 sps:$4 sm:$0xff]  }
  0x27   :  { %2877 = vmatpush3.bf16.msra.mxu0 %v3134_v38  ;;  %v3522_v41 = vpack.c.bf16 %v3508_v33, %v3496_v24  ;;  %v131_v38 = vmul.f32 %v3275_v22, %v83_v31  ;;  %v373_v17 = vrot.slane %v3551_v12, 1  ;;  %v89_v10 = vunpack.c.l.bf16 %v3570_v49 }
  0x28   :  { %2909 = vmatpush3.bf16.msra.mxu1 %v3135_v32  ;;  %2878 = vmatprep.subr.bf16.mxu0 %v3136_v18  ;;  %v3563_v29 = vsel %vm350_vm0, %v369_v6, %v370_v14  ;;  %v134_v14 = vmul.f32 %v3275_v22, %v86_v36  ;;  %v91_v61 = vunpack.c.h.bf16 %v3570_v49  ;;  %v3145_v49 = vld [vmem:[%s4396_s1 + $0xc8] sm:$0xff]  }
  0x29   :  { %2910 = vmatprep.subr.bf16.mxu1 %v3137_v0  ;;  %4440 = vst [vmem:[#allocation11_spill] sm:$0xff] %v3522_v41  ;;  %2830 = vmatprep.mubr.bf16.mxu0 %v3522_v41  ;;  %v177_v31 = vadd.f32 %v3280_v23, %v131_v38  ;;  %v3573_v32 = vsel %vm350_vm0, %v372_v25, %v373_v17 }
  0x2a   :  { %4442 = vst [vmem:[#allocation13_spill] sm:$0xff] %v3573_v32  ;;  %v3585_v38 = vpack.c.bf16 %v3573_v32, %v3563_v29  ;;  %v136_v17 = vmul.f32 %v3275_v22, %v88_v56  ;;  %v180_v36 = vadd.f32 %v3280_v23, %v134_v14  ;;  %v52_v56 = vld [vmem:[%s4397_s0 + $0x7c] sm:$0x1]  ;;  %v139_v32 = vmul.f32 %v3275_v22, %v91_v61 }
  0x2b   :  { %2879 = vmatpush3.bf16.msra.mxu0 %v3136_v18  ;;  %2863 = vmatmul.mubr.msk.bf16.gmra.mxu1 %vm3415_vm5, %v3559_v20  ;;  %v178_v18 = vadd.f32 %v3280_v23, %v132_v27  ;;  %v3587_v6 = vmax.f32 %v177_v31, 0.0  ;;  %v179_v27 = vadd.f32 %v3280_v23, %v133_v40 }
  0x2c   :  { %2911 = vmatpush3.bf16.msra.mxu1 %v3137_v0  ;;  %v87_v0 = vunpack.c.h.bf16 %v3454_v50  ;;  %2880 = vmatprep.subr.bf16.mxu0 %v3138_v39  ;;  %v50_v50 = vld [vmem:[%s4397_s0 + $0x74] sm:$0x1]  ;;  %4443 = vst [vmem:[#allocation14_spill] sm:$0xff] %v3585_v38  ;;  %v220_v26 = vmax.f32 %v180_v36, 0.0  ;;  %v54_v36 = vld [vmem:[%s4397_s0 + $0x84] sm:$0x1] }
  0x2d   :  { %2912 = vmatprep.subr.bf16.mxu1 %v3139_v30  ;;  %v218_v62 = vmax.f32 %v178_v18, 0.0  ;;  %2831 = vmatmul.mubr.bf16.gmra.mxu0 %v3585_v38  ;;  %v2360_v31 = vpack.c.bf16 %v3587_v6, %v4402_v47  ;;  %v3143_v18 = vld [vmem:[%s4396_s1 + $0xd0] sm:$0xff]   ;;  %v182_v47 = vadd.f32 %v3280_v23, %v136_v17  ;;  %v3619_v14 = vmax.f32 %v179_v27, 0.0  ;;  %v53_v17 = vld [vmem:[%s4397_s0 + $0x80] ss:$8 sps:$4 sm:$0xff]  }
  0x2e   :  { %v135_v25 = vmul.f32 %v3275_v22, %v87_v0  ;;  %v56_v38 = vld [vmem:[%s4397_s0 + $0x8c] sm:$0x1]  ;;  %v93_v24 = vunpack.c.l.bf16 %v53_v17 }
  0x2f   :  { %2881 = vmatpush3.bf16.msra.mxu0 %v3138_v39  ;;  %v3615_v40 = vsel %vm245_vm2, %v218_v62, 0.0  ;;  %2866 = vmatprep.mubr.msk.bf16.mxu1 %vm3350_vm4, %v2360_v31  ;;  %v3142_v39 = vld [vmem:[%s4396_s1 + $0x90] sm:$0xff]   ;;  %v90_v62 = vunpack.c.l.bf16 %v50_v50  ;;  %v222_v27 = vmax.f32 %v182_v47, 0.0  ;;  %v3635_v11 = vsel %vm238_vm1, %v3619_v14, 0.0 }
  0x30   :  { %2913 = vmatpush3.bf16.msra.mxu1 %v3139_v30  ;;  %v3601_v30 = vsel %vm238_vm1, %v3587_v6, 0.0  ;;  %v181_v0 = vadd.f32 %v3280_v23, %v135_v25  ;;  %v379_v25 = vrot.slane %v3615_v40, 1  ;;  %2882 = vmatprep.subr.bf16.mxu0 %v3140_v60  ;;  %v92_v31 = vunpack.c.l.bf16 %v52_v56 }
  0x31   :  { %2914 = vmatprep.subr.bf16.mxu1 %v3141_v63  ;;  %v378_v15 = vrot.slane %v3601_v30, 1  ;;  %v3661_v56 = vsel %vm245_vm2, %v222_v27, 0.0  ;;  %v138_v27 = vmul.f32 %v3275_v22, %v90_v62 }
  0x32   :  { %v3624_v20 = vmax.f32 %v181_v0, 0.0  ;;  %v3646_v0 = vsel %vm245_vm2, %v220_v26, 0.0  ;;  %v385_v41 = vrot.slane %v3661_v56, 1  ;;  %v140_v37 = vmul.f32 %v3275_v22, %v92_v31 }
  0x33   :  { %v3642_v50 = vsel %vm350_vm0, %v378_v15, %v379_v25  ;;  %v382_v26 = vrot.slane %v3646_v0, 1  ;;  %2883 = vmatpush3.bf16.msra.mxu0 %v3140_v60  ;;  %v184_v62 = vadd.f32 %v3280_v23, %v138_v27  ;;  %v3146_v27 = vld [vmem:[%s4396_s1 + $0x80] sm:$0xff]  }
  0x34   :  { %4444 = vst [vmem:[#allocation15_spill] sm:$0xff] %v3624_v20  ;;  %2915 = vmatpush3.bf16.msra.mxu1 %v3141_v63  ;;  %v3651_v47 = vsel %vm238_vm1, %v3624_v20, 0.0  ;;  %v381_v63 = vrot.slane %v3635_v11, 1  ;;  %v419_v15 = vpack.c.bf16 %v3642_v50, %v3315_v48  ;;  %v3671_v21 = vpack.c.bf16 %v3624_v20, %v3619_v14  ;;  %2884 = vmatprep.subr.bf16.mxu0 %v3142_v39 }
  0x35   :  { %2916 = vmatprep.subr.bf16.mxu1 %v3143_v18  ;;  %v384_v25 = vrot.slane %v3651_v47, 1  ;;  %v137_v48 = vmul.f32 %v3275_v22, %v89_v10  ;;  %v186_v31 = vadd.f32 %v3280_v23, %v140_v37  ;;  %v739_v20 = vrot.slane %v3334_v54, 2 }
  0x36   :  { %4445 = vst [vmem:[#allocation16_spill] sm:$0xff] %v3671_v21  ;;  %2834 = vmatprep.mubr.bf16.mxu0 %v419_v15  ;;  %v3679_v60 = vsel %vm350_vm0, %v381_v63, %v382_v26  ;;  %2867 = vmatmul.mubr.msk.bf16.gmra.mxu1 %vm3415_vm5, %v3671_v21  ;;  %v94_v63 = vunpack.c.l.bf16 %v54_v36  ;;  %v95_v15 = vunpack.c.h.bf16 %v53_v17  ;;  %v141_v36 = vmul.f32 %v3275_v22, %v93_v24 }
  0x37   :  { %v3684_v2 = vsel %vm350_vm0, %v384_v25, %v385_v41  ;;  %v183_v10 = vadd.f32 %v3280_v23, %v137_v48  ;;  %2885 = vmatpush3.bf16.msra.mxu0 %v3142_v39  ;;  %v185_v41 = vadd.f32 %v3280_v23, %v139_v32  ;;  %v224_v48 = vmax.f32 %v184_v62, 0.0  ;;  %v3709_v39 = vld [vmem:[%s4396_s1 + $0x178] sm:$0xff]  }
  0x38   :  { %2917 = vmatpush3.bf16.msra.mxu1 %v3143_v18  ;;  %4446 = vst [vmem:[#allocation17_spill] sm:$0xff] %v3684_v2  ;;  %v3147_v18 = vld [vmem:[%s4396_s1 + $0xc0] sm:$0xff]   ;;  %v3696_v61 = vpack.c.bf16 %v3684_v2, %v3679_v60  ;;  %v96_v25 = vunpack.c.l.bf16 %v56_v38  ;;  %2886 = vmatprep.subr.bf16.mxu0 %v3144_v43  ;;  %v226_v32 = vmax.f32 %v186_v31, 0.0  ;;  %v142_v17 = vmul.f32 %v3275_v22, %v94_v63 }
  0x39   :  { %2918 = vmatprep.subr.bf16.mxu1 %v3145_v49  ;;  %v3700_v26 = vmax.f32 %v183_v10, 0.0  ;;  %v3712_v37 = vmax.f32 %v185_v41, 0.0  ;;  %v143_v38 = vmul.f32 %v3275_v22, %v95_v15  ;;  %v3723_v10 = vsel %vm245_vm2, %v224_v48, 0.0  ;;  %v3741_v48 = vld [vmem:[%s4396_s1 + $0x138] sm:$0xff]  }
  0x3a   :  { %4447 = vst [vmem:[#allocation18_spill] sm:$0xff] %v3696_v61  ;;  %2835 = vmatmul.mubr.bf16.gmra.mxu0 %v3696_v61  ;;  %v144_v62 = vmul.f32 %v3275_v22, %v96_v25  ;;  %v187_v41 = vadd.f32 %v3280_v23, %v141_v36  ;;  %v388_v15 = vrot.slane %v3723_v10, 1 }
  0x3b   :  { %v3719_v24 = vsel %vm238_vm1, %v3700_v26, 0.0  ;;  %v3730_v63 = vsel %vm238_vm1, %v3712_v37, 0.0  ;;  %2887 = vmatpush3.bf16.msra.mxu0 %v3144_v43  ;;  %v3747_v21 = vpack.c.bf16 %v3712_v37, %v3700_v26  ;;  %v189_v43 = vadd.f32 %v3280_v23, %v143_v38 }
  0x3c   :  { %2919 = vmatpush3.bf16.msra.mxu1 %v3145_v49  ;;  %v3734_v49 = vsel %vm245_vm2, %v226_v32, 0.0  ;;  %v387_v31 = vrot.slane %v3719_v24, 1  ;;  %v390_v25 = vrot.slane %v3730_v63, 1  ;;  %v188_v32 = vadd.f32 %v3280_v23, %v142_v17  ;;  %2888 = vmatprep.subr.bf16.mxu0 %v3146_v27 }
  0x3d   :  { %2920 = vmatprep.subr.bf16.mxu1 %v3147_v18  ;;  %4448 = vst [vmem:[#allocation19_spill] sm:$0xff] %v3734_v49  ;;  %v391_v36 = vrot.slane %v3734_v49, 1  ;;  %4449 = vst [vmem:[#allocation20_spill] sm:$0xff] %v3747_v21  ;;  %v190_v2 = vadd.f32 %v3280_v23, %v144_v62  ;;  %v3755_v3 = vmax.f32 %v187_v41, 0.0  ;;  %2870 = vmatprep.mubr.msk.bf16.mxu1 %vm3415_vm5, %v3747_v21  ;;  %v3769_v62 = vmax.f32 %v189_v43, 0.0 }
  0x3e   :  { %v3751_v61 = vsel %vm350_vm0, %v387_v31, %v388_v15  ;;  %v228_v17 = vmax.f32 %v188_v32, 0.0  ;;  %v4451_v15 = vrot.slane %v3329_v53, 2  ;;  %v740_v43 = vrot.slane %v3338_v55, 2  ;;  %v37_v55 = vld [vmem:[%s4397_s0 + $0x40] ss:$80 sps:$4 sm:$0xff]  }
  0x3f   :  { %v3759_v49 = vsel %vm350_vm0, %v390_v25, %v391_v36  ;;  %v230_v41 = vmax.f32 %v190_v2, 0.0  ;;  %v3774_v54 = vsel %vm238_vm1, %v3755_v3, 0.0  ;;  %2889 = vmatpush3.bf16.msra.mxu0 %v3146_v27  ;;  %v4452_v25 = vrot.slane %v3325_v52, 2 }
  0x40   :  { %2921 = vmatpush3.bf16.msra.mxu1 %v3147_v18  ;;  %v3767_v38 = vpack.c.bf16 %v3759_v49, %v3751_v61  ;;  %v3778_v18 = vsel %vm245_vm2, %v228_v17, 0.0  ;;  %v393_v31 = vrot.slane %v3774_v54, 1  ;;  %v2420_v2 = vpack.c.bf16 %v3309_v44, %v3307_v42  ;;  %2938 = vmatprep.subr.bf16.mxu0 %v3741_v48 }
  0x41   :  { %2970 = vmatprep.subr.bf16.mxu1 %v3709_v39  ;;  %v3786_v36 = vsel %vm732_vm6, %v4452_v25, %v4451_v15  ;;  %v3795_v27 = vsel %vm238_vm1, %v3769_v62, 0.0  ;;  %v3799_v53 = vsel %vm245_vm2, %v230_v41, 0.0  ;;  %v394_v52 = vrot.slane %v3778_v18, 1 }
  0x42   :  { %4450 = vst [vmem:[#allocation21_spill] sm:$0xff] %v3767_v38  ;;  %2838 = vmatprep.mubr.bf16.mxu0 %v3767_v38  ;;  %v3804_v32 = vpack.c.bf16 %v3769_v62, %v3755_v3  ;;  %v396_v42 = vrot.slane %v3795_v27, 1  ;;  %v397_v44 = vrot.slane %v3799_v53, 1  ;;  %v742_v17 = vrot.slane %v3393_v16, 2 }
  0x43   :  { %v743_v15 = vrot.slane %v3397_v19, 2  ;;  %v3812_v25 = vsel %vm350_vm0, %v393_v31, %v394_v52  ;;  %v797_v21 = vpack.c.bf16 %v3786_v36, %v3362_v1  ;;  %v745_v19 = vrot.slane %v3449_v46, 2 }
  0x44   :  { %4453 = vst [vmem:[#allocation22_spill] sm:$0xff] %v3804_v32  ;;  %2871 = vmatmul.mubr.msk.bf16.gmra.mxu1 %vm3415_vm5, %v3804_v32  ;;  %v3818_v41 = vsel %vm350_vm0, %v396_v42, %v397_v44  ;;  %v746_v31 = vrot.slane %v3463_v59, 2  ;;  %v748_v52 = vrot.slane %v3474_v4, 2  ;;  %v749_v42 = vrot.slane %v3478_v7, 2  ;;  %v3151_v59 = vld [vmem:[%s4396_s1 + $0x170] sm:$0xff]  }
  0x45   :  { %2922 = vmatprep.mubr.msk.bf16.mxu1 %vm3415_vm5, %v2420_v2  ;;  %v3829_v16 = vpack.c.bf16 %v3818_v41, %v3812_v25  ;;  %v2423_v2 = vpack.c.bf16 %v3428_v34, %v3372_v5  ;;  %v77_v44 = vunpack.c.l.bf16 %v37_v55  ;;  %v3839_v32 = vsel %vm732_vm6, %v739_v20, %v740_v43 }
  0x46   :  { %v3842_v38 = vsel %vm732_vm6, %v742_v17, %v743_v15  ;;  %v2426_v46 = vpack.c.bf16 %v3512_v35, %v3456_v51  ;;  %v3851_v7 = vsel %vm732_vm6, %v745_v19, %v746_v31  ;;  %v3854_v5 = vsel %vm732_vm6, %v748_v52, %v749_v42  ;;  %v3150_v17 = vld [vmem:[%s4396_s1 + $0x130] sm:$0xff]  }
  0x47   :  { %2839 = vmatmul.mubr.bf16.gmra.mxu0 %v3829_v16  ;;  %v125_v4 = vmul.f32 %v3275_v22, %v77_v44  ;;  %v751_v34 = vrot.slane %v3529_v57, 2  ;;  %v752_v51 = vrot.slane %v3533_v58, 2  ;;  %v754_v20 = vrot.slane %v3547_v8, 2  ;;  %v3153_v8 = vld [vmem:[%s4396_s1 + $0x168] sm:$0xff]  }
  0x48   :  { %2890 = vmatprep.mubr.bf16.mxu0 %v797_v21  ;;  %v3858_v21 = vpack.c.bf16 %v3842_v38, %v3839_v32  ;;  %v755_v43 = vrot.slane %v3551_v12, 2  ;;  %v3875_v57 = vpack.c.bf16 %v3854_v5, %v3851_v7  ;;  %v760_v12 = vrot.slane %v3601_v30, 2  ;;  %v3152_v30 = vld [vmem:[%s4396_s1 + $0x128] sm:$0xff]  }
  0x49   :  { %v171_v35 = vadd.f32 %v3280_v23, %v125_v4  ;;  %v761_v15 = vrot.slane %v3615_v40, 2  ;;  %v97_v31 = vunpack.c.h.bf16 %v37_v55  ;;  %v3892_v52 = vsel %vm732_vm6, %v751_v34, %v752_v51  ;;  %v3157_v51 = vld [vmem:[%s4396_s1 + $0x158] sm:$0xff]  }
  0x4a   :  { %v3895_v42 = vsel %vm732_vm6, %v754_v20, %v755_v43  ;;  %v1187_v40 = vpack.c.bf16 %v3563_v29, %v3508_v33  ;;  %v763_v55 = vrot.slane %v3635_v11, 2  ;;  %v1189_v4 = vpack.c.bf16 %v3679_v60, %v3642_v50  ;;  %v3154_v11 = vld [vmem:[%s4396_s1 + $0x120] sm:$0xff]  }
  0x4b   :  { %v3877_v58 = vmax.f32 %v171_v35, 0.0  ;;  %v3910_v44 = vsel %vm732_vm6, %v760_v12, %v761_v15  ;;  %v3918_v34 = vpack.c.bf16 %v3895_v42, %v3892_v52  ;;  %v769_v35 = vrot.slane %v3719_v24, 2  ;;  %v4454_v24 = vld [vmem:[#allocation19_spill] sm:$0xff]  ;;  %v3170_v33 = vld [vmem:[%s4396_s1 + $0x1a0] sm:$0xff]  }
  0x4c   :  { %2923 = vmatmul.mubr.msk.bf16.vlgmr.msra.gmra.mxu1 %vm3415_vm5, %v2423_v2  ;;  %v770_v20 = vrot.slane %v3723_v10, 2 }
  0x4d   :  { %2971 = vmatpush3.bf16.msra.mxu1 %v3709_v39  ;;  %2926 = vmatprep.mubr.msk.bf16.mxu1 %vm3415_vm5, %v2426_v46  ;;  %v38_v39 = vld [vmem:[%s4397_s0 + $0x44] sm:$0x1]  ;;  %v2429_v19 = vpack.c.bf16 %v3877_v58, %v3524_v45  ;;  %v764_v46 = vrot.slane %v3646_v0, 2  ;;  %v145_v0 = vmul.f32 %v3275_v22, %v97_v31 }
  0x4e   :  { %2972 = vmatprep.subr.bf16.mxu1 %v3151_v59  ;;  %v78_v2 = vunpack.c.l.bf16 %v38_v39  ;;  %v3155_v45 = vld [vmem:[%s4396_s1 + $0x160] sm:$0xff]   ;;  %v4455_v39 = vld [vmem:[#allocation15_spill] sm:$0xff] }
  0x4f   :  { %2891 = vmatmul.mubr.bf16.vlgmr.msra.gmra.mxu0 %v3858_v21  ;;  %v191_v12 = vadd.f32 %v3280_v23, %v145_v0  ;;  %v779_v0 = vrot.slane %v3799_v53, 2 }
  0x50   :  { %2939 = vmatpush3.bf16.msra.mxu0 %v3741_v48  ;;  %2894 = vmatprep.mubr.bf16.mxu0 %v3875_v57  ;;  %v2432_v48 = vpack.c.bf16 %v3619_v14, %v3587_v6  ;;  %v766_v6 = vrot.slane %v3651_v47, 2  ;;  %v767_v14 = vrot.slane %v3661_v56, 2  ;;  %v801_v47 = vpack.c.bf16 %v3910_v44, %v3362_v1 }
  0x51   :  { %2973 = vmatpush3.bf16.msra.mxu1 %v3151_v59  ;;  %2940 = vmatprep.subr.bf16.mxu0 %v3150_v17  ;;  %v126_v59 = vmul.f32 %v3275_v22, %v78_v2  ;;  %v772_v56 = vrot.slane %v3730_v63, 2  ;;  %v3940_v22 = vsel %vm238_vm1, %v3877_v58, 0.0  ;;  %v3950_v63 = vsel %vm732_vm6, %v763_v55, %v764_v46 }
  0x52   :  { %2974 = vmatprep.subr.bf16.mxu1 %v3153_v8  ;;  %v3953_v15 = vsel %vm732_vm6, %v766_v6, %v767_v14  ;;  %v1373_v31 = vrot.slane %v3940_v22, 2  ;;  %v3968_v2 = vsel %vm732_vm6, %v769_v35, %v770_v20  ;;  %v775_v46 = vrot.slane %v3774_v54, 2  ;;  %v3160_v35 = vld [vmem:[%s4396_s1 + $0x108] sm:$0xff]   ;;  %v3163_v20 = vld [vmem:[%s4396_s1 + $0x140] sm:$0xff]  }
  0x53   :  { %v172_v43 = vadd.f32 %v3280_v23, %v126_v59  ;;  %v3156_v23 = vld [vmem:[%s4396_s1 + $0x118] sm:$0xff]   ;;  %v3977_v55 = vpack.c.bf16 %v3953_v15, %v3950_v63  ;;  %v3982_v59 = vmax.f32 %v191_v12, 0.0  ;;  %v776_v6 = vrot.slane %v3778_v18, 2  ;;  %v3167_v12 = vld [vmem:[%s4396_s1 + $0x1f0] sm:$0xff]  }
  0x54   :  { %2927 = vmatmul.mubr.msk.bf16.gmra.mxu1 %vm3415_vm5, %v2429_v19  ;;  %2941 = vmatpush3.bf16.msra.mxu0 %v3150_v17  ;;  %v773_v17 = vrot.slane %v4454_v24, 2  ;;  %v778_v14 = vrot.slane %v3795_v27, 2  ;;  %v3161_v27 = vld [vmem:[%s4396_s1 + $0x148] sm:$0xff]   ;;  %v1382_v24 = vpack.c.bf16 %v3851_v7, %v3842_v38  ;;  %v3188_v38 = vld [vmem:[%s4398_s2] ss:$0 sm:$0xff] }
  0x55   :  { %2975 = vmatpush3.bf16.msra.mxu1 %v3153_v8  ;;  %2942 = vmatprep.subr.bf16.mxu0 %v3152_v30  ;;  %v212_v10 = vmax.f32 %v172_v43, 0.0  ;;  %v2435_v8 = vpack.c.bf16 %v3700_v26, %v4455_v39  ;;  %v3159_v26 = vld [vmem:[%s4396_s1 + $0x150] sm:$0xff]   ;;  %v2441_v53 = vpack.c.bf16 %v3982_v59, %v3769_v62  ;;  %v1381_v62 = vpack.c.bf16 %v3839_v32, %v3786_v36  ;;  %v3165_v32 = vld [vmem:[%s4396_s1 + $0x1f8] sm:$0xff]  }
  0x56   :  { %2976 = vmatprep.subr.bf16.mxu1 %v3155_v45  ;;  %2930 = vmatprep.mubr.msk.bf16.mxu1 %vm3415_vm5, %v2432_v48  ;;  %v2438_v48 = vpack.c.bf16 %v3755_v3, %v3712_v37  ;;  %v3158_v37 = vld [vmem:[%s4396_s1 + $0x110] sm:$0xff]   ;;  %v286_v29 = vsel %vm238_vm1, %v3982_v59, 0.0 }
  0x57   :  { %2895 = vmatmul.mubr.bf16.gmra.mxu0 %v3918_v34  ;;  %v3957_v19 = vsel %vm245_vm2, %v212_v10, 0.0  ;;  %v58_v43 = vld [vmem:[%s4397_s0 + $0x94] sm:$0x1]  ;;  %v1180_v50 = vrot.slane %v286_v29, 1 }
  0x58   :  { %2943 = vmatpush3.bf16.msra.mxu0 %v3152_v30  ;;  %2898 = vmatprep.mubr.bf16.mxu0 %v801_v47  ;;  %v1374_v30 = vrot.slane %v3957_v19, 2  ;;  %v98_v36 = vunpack.c.l.bf16 %v58_v43  ;;  %v4457_v10 = vld [vmem:[#allocation4_spill] sm:$0xff] }
  0x59   :  { %2977 = vmatpush3.bf16.msra.mxu1 %v3155_v45  ;;  %2944 = vmatprep.subr.bf16.mxu0 %v3154_v11  ;;  %v3971_v45 = vsel %vm732_vm6, %v772_v56, %v773_v17  ;;  %v3162_v56 = vld [vmem:[%s4396_s1 + $0x100] sm:$0xff]   ;;  %v4456_v17 = vld [vmem:[#allocation5_spill] sm:$0xff]  ;;  %v3175_v43 = vld [vmem:[%s4396_s1 + $0x1d0] sm:$0xff]  }
  0x5a   :  { %2978 = vmatprep.subr.bf16.mxu1 %v3157_v51  ;;  %v3988_v3 = vsel %vm732_vm6, %v1373_v31, %v1374_v30  ;;  %v3995_v54 = vpack.c.bf16 %v3971_v45, %v3968_v2  ;;  %v4458_v39 = vpack.c.bf16 %v4456_v17, %v4457_v10  ;;  %v146_v7 = vmul.f32 %v3188_v38, %v98_v36  ;;  %v3166_v30 = vld [vmem:[%s4396_s1 + $0x1b0] sm:$0xff]   ;;  %v3180_v10 = vld [vmem:[%s4396_s1 + $0x238] sm:$0xff]   ;;  %v3182_v38 = vld [vmem:[%s4396_s1 + $0x228] sm:$0xff]  }
  0x5b   :  { %v1953_v18 = vpack.c.bf16 %v3362_v1, %v3988_v3  ;;  %v1383_v31 = vpack.c.bf16 %v3892_v52, %v3854_v5  ;;  %v3169_v5 = vld [vmem:[%s4396_s1 + $0x1e8] sm:$0xff]   ;;  %v4459_v52 = vld [vmem:[#allocation10_spill] sm:$0xff]  ;;  %v3174_v36 = vld [vmem:[%s4396_s1 + $0x190] sm:$0xff]  }
  0x5c   :  { %2931 = vmatmul.mubr.msk.bf16.gmra.mxu1 %vm3415_vm5, %v2435_v8  ;;  %2945 = vmatpush3.bf16.msra.mxu0 %v3154_v11  ;;  %v4008_v11 = vsel %vm732_vm6, %v775_v46, %v776_v6  ;;  %v3164_v8 = vld [vmem:[%s4396_s1 + $0x1b8] sm:$0xff]   ;;  %v4464_v17 = vld [vmem:[#allocation8_spill] sm:$0xff] }
  0x5d   :  { %2979 = vmatpush3.bf16.msra.mxu1 %v3157_v51  ;;  %2946 = vmatprep.subr.bf16.mxu0 %v3156_v23  ;;  %v4011_v51 = vsel %vm732_vm6, %v778_v14, %v779_v0  ;;  %v3168_v0 = vld [vmem:[%s4396_s1 + $0x1a8] sm:$0xff]  }
  0x5e   :  { %2980 = vmatprep.subr.bf16.mxu1 %v3159_v26  ;;  %2934 = vmatprep.mubr.msk.bf16.mxu1 %vm3415_vm5, %v2438_v48  ;;  %v4027_v47 = vpack.c.bf16 %v4011_v51, %v4008_v11  ;;  %v3189_v48 = vld [vmem:[%s4399_s3] ss:$0 sm:$0xff] }
  0x5f   :  { %2899 = vmatmul.mubr.bf16.gmra.mxu0 %v3977_v55  ;;  %v192_v46 = vadd.f32 %v3189_v48, %v146_v7  ;;  %v4468_v7 = vld [vmem:[#allocation9_spill] sm:$0xff]  ;;  %v4471_v48 = vmov 0.0  }
  0x60   :  { %2947 = vmatpush3.bf16.msra.mxu0 %v3156_v23  ;;  %2902 = vmatprep.mubr.bf16.mxu0 %v3995_v54  ;;  %v1177_v23 = vrot.slane %v3940_v22, 1  ;;  %v4460_v22 = vld [vmem:[#allocation7_spill] sm:$0xff] }
  0x61   :  { %2981 = vmatpush3.bf16.msra.mxu1 %v3159_v26  ;;  %2948 = vmatprep.subr.bf16.mxu0 %v3158_v37  ;;  %v1178_v26 = vrot.slane %v3957_v19, 1  ;;  %v4461_v6 = vpack.c.bf16 %v4459_v52, %v4460_v22  ;;  %v1384_v19 = vpack.c.bf16 %v3988_v3, %v3895_v42  ;;  %v1385_v42 = vpack.c.bf16 %v3950_v63, %v3910_v44  ;;  %v3173_v44 = vld [vmem:[%s4396_s1 + $0x1d8] sm:$0xff]   ;;  %v4474_v52 = vld [vmem:[#allocation18_spill] sm:$0xff] }
  0x62   :  { %2982 = vmatprep.subr.bf16.mxu1 %v3161_v27  ;;  %v1386_v63 = vpack.c.bf16 %v3968_v2, %v3953_v15  ;;  %v1387_v15 = vpack.c.bf16 %v4008_v11, %v3971_v45  ;;  %v4463_v2 = vld [vmem:[#allocation17_spill] sm:$0xff]  ;;  %v1191_v45 = vpack.c.bf16 %v3812_v25, %v3759_v49  ;;  %v3176_v49 = vld [vmem:[%s4396_s1 + $0x188] sm:$0xff]   ;;  %v3179_v25 = vld [vmem:[%s4396_s1 + $0x1c0] sm:$0xff]  }
  0x63   :  { %v4071_v14 = vsel %vm350_vm0, %v1177_v23, %v1178_v26  ;;  %v4470_v26 = vld [vmem:[#allocation12_spill] sm:$0xff]  ;;  %v3184_v22 = vld [vmem:[%s4396_s1 + $0x218] sm:$0xff]  }
  0x64   :  { %2935 = vmatmul.mubr.msk.bf16.gmra.mxu1 %vm3415_vm5, %v2441_v53  ;;  %2949 = vmatpush3.bf16.msra.mxu0 %v3158_v37  ;;  %v3171_v37 = vld [vmem:[%s4396_s1 + $0x1e0] sm:$0xff]   ;;  %v4462_v53 = vld [vmem:[#allocation13_spill] sm:$0xff] }
  0x65   :  { %2983 = vmatpush3.bf16.msra.mxu1 %v3161_v27  ;;  %2950 = vmatprep.subr.bf16.mxu0 %v3160_v35  ;;  %v232_v27 = vmax.f32 %v192_v46, 0.0  ;;  %v2525_v46 = vpack.c.bf16 %v4471_v48, %v3877_v58  ;;  %v4475_v58 = vld [vmem:[#allocation16_spill] sm:$0xff] }
  0x66   :  { %2984 = vmatprep.subr.bf16.mxu1 %v3163_v20  ;;  %2986 = vmatprep.mubr.bf16.mxu1 %v1381_v62 }
  0x67   :  { %2903 = vmatmul.mubr.bf16.gmra.mxu0 %v4027_v47 }
  0x68   :  { %2951 = vmatpush3.bf16.msra.mxu0 %v3160_v35  ;;  %2954 = vmatprep.mubr.bf16.mxu0 %v4458_v39  ;;  %v1188_v35 = vpack.c.bf16 %v4071_v14, %v4462_v53  ;;  %v3181_v39 = vld [vmem:[%s4396_s1 + $0x230] sm:$0xff]  }
  0x69   :  { %2985 = vmatpush3.bf16.msra.mxu1 %v3163_v20  ;;  %2952 = vmatprep.subr.bf16.mxu0 %v3162_v56  ;;  %v1376_v20 = vrot.slane %v286_v29, 2 }
  0x6a   :  { %3034 = vmatprep.subr.bf16.mxu1 %v3165_v32 }
  0x6c   :  { %2987 = vmatmul.mubr.bf16.vlgmr.msra.gmra.mxu1 %v1382_v24  ;;  %2953 = vmatpush3.bf16.msra.mxu0 %v3162_v56  ;;  %v1190_v56 = vpack.c.bf16 %v3751_v61, %v4463_v2  ;;  %v3177_v61 = vld [vmem:[%s4396_s1 + $0x1c8] sm:$0xff]  }
  0x6d   :  { %3035 = vmatpush3.bf16.msra.mxu1 %v3165_v32  ;;  %3002 = vmatprep.subr.bf16.mxu0 %v3164_v8 }
  0x6e   :  { %3036 = vmatprep.subr.bf16.mxu1 %v3167_v12  ;;  %2990 = vmatprep.mubr.bf16.mxu1 %v1383_v31  ;;  %v4469_v31 = vld [vmem:[#allocation3_spill] sm:$0xff] }
  0x6f   :  { %2955 = vmatmul.mubr.bf16.vlgmr.msra.gmra.mxu0 %v4461_v6  ;;  %v1763_v23 = vpack.c.bf16 %v4469_v31, %v4071_v14  ;;  %v3185_v6 = vld [vmem:[%s4396_s1 + $0x210] sm:$0xff]   ;;  %v3186_v14 = vld [vmem:[%s4396_s1 + $0x208] sm:$0xff]  }
  0x70   :  { %3003 = vmatpush3.bf16.msra.mxu0 %v3164_v8  ;;  %2958 = vmatprep.mubr.bf16.mxu0 %v1187_v40  ;;  %v287_v40 = vsel %vm245_vm2, %v232_v27, 0.0  ;;  %v4466_v8 = vld [vmem:[#allocation11_spill] sm:$0xff]  ;;  %v4478_v27 = vld [vmem:[#allocation22_spill] sm:$0xff] }
  0x71   :  { %3037 = vmatpush3.bf16.msra.mxu1 %v3167_v12  ;;  %3004 = vmatprep.subr.bf16.mxu0 %v3166_v30  ;;  %v1377_v62 = vrot.slane %v287_v40, 2  ;;  %v1181_v60 = vrot.slane %v287_v40, 1  ;;  %v4467_v12 = vld [vmem:[#allocation14_spill] sm:$0xff] }
  0x72   :  { %3038 = vmatprep.subr.bf16.mxu1 %v3169_v5 }
  0x73   :  { %v4126_v32 = vsel %vm350_vm0, %v1180_v50, %v1181_v60 }
  0x74   :  { %2991 = vmatmul.mubr.bf16.gmra.mxu1 %v1384_v19  ;;  %3005 = vmatpush3.bf16.msra.mxu0 %v3166_v30  ;;  %v1192_v24 = vpack.c.bf16 %v4126_v32, %v3818_v41  ;;  %v4465_v41 = vld [vmem:[#allocation6_spill] sm:$0xff]  ;;  %v4476_v19 = vld [vmem:[#allocation21_spill] sm:$0xff] }
  0x75   :  { %3039 = vmatpush3.bf16.msra.mxu1 %v3169_v5  ;;  %3006 = vmatprep.subr.bf16.mxu0 %v3168_v0  ;;  %v3183_v30 = vld [vmem:[%s4396_s1 + $0x220] sm:$0xff]  }
  0x76   :  { %3040 = vmatprep.subr.bf16.mxu1 %v3171_v37  ;;  %2994 = vmatprep.mubr.bf16.mxu1 %v1385_v42  ;;  %v2537_v42 = vpack.c.bf16 %v4471_v48, %v3982_v59 }
  0x77   :  { %2959 = vmatmul.mubr.bf16.gmra.mxu0 %v1188_v35 }
  0x78   :  { %3007 = vmatpush3.bf16.msra.mxu0 %v3168_v0  ;;  %2962 = vmatprep.mubr.bf16.mxu0 %v1189_v4  ;;  %v4113_v4 = vsel %vm732_vm6, %v1376_v20, %v1377_v62  ;;  %v4477_v0 = vld [vmem:[#allocation20_spill] sm:$0xff] }
  0x79   :  { %3041 = vmatpush3.bf16.msra.mxu1 %v3171_v37  ;;  %3008 = vmatprep.subr.bf16.mxu0 %v3170_v33  ;;  %v1388_v11 = vpack.c.bf16 %v4113_v4, %v4011_v51  ;;  %v3178_v51 = vld [vmem:[%s4396_s1 + $0x180] sm:$0xff]   ;;  %v1764_v37 = vpack.c.bf16 %v4469_v31, %v4126_v32  ;;  %v1954_v28 = vpack.c.bf16 %v3362_v1, %v4113_v4 }
  0x7a   :  { %3042 = vmatprep.subr.bf16.mxu1 %v3173_v44 }
  0x7c   :  { %2995 = vmatmul.mubr.bf16.gmra.mxu1 %v1386_v63  ;;  %3009 = vmatpush3.bf16.msra.mxu0 %v3170_v33 }
  0x7d   :  { %3043 = vmatpush3.bf16.msra.mxu1 %v3173_v44  ;;  %3010 = vmatprep.subr.bf16.mxu0 %v3172_v13 }
  0x7e   :  { %3044 = vmatprep.subr.bf16.mxu1 %v3175_v43  ;;  %2998 = vmatprep.mubr.bf16.mxu1 %v1387_v15 }
  0x7f   :  { %2963 = vmatmul.mubr.bf16.gmra.mxu0 %v1190_v56 }
  0x80   :  { %3011 = vmatpush3.bf16.msra.mxu0 %v3172_v13  ;;  %2966 = vmatprep.mubr.bf16.mxu0 %v1191_v45 }
  0x81   :  { %3045 = vmatpush3.bf16.msra.mxu1 %v3175_v43  ;;  %3012 = vmatprep.subr.bf16.mxu0 %v3174_v36 }
  0x82   :  { %3046 = vmatprep.subr.bf16.mxu1 %v3177_v61 }
  0x84   :  { %2999 = vmatmul.mubr.bf16.gmra.mxu1 %v1388_v11  ;;  %3013 = vmatpush3.bf16.msra.mxu0 %v3174_v36 }
  0x85   :  { %3047 = vmatpush3.bf16.msra.mxu1 %v3177_v61  ;;  %3014 = vmatprep.subr.bf16.mxu0 %v3176_v49 }
  0x86   :  { %3048 = vmatprep.subr.bf16.mxu1 %v3179_v25  ;;  %3050 = vmatprep.mubr.bf16.mxu1 %v4464_v17 }
  0x87   :  { %2967 = vmatmul.mubr.bf16.gmra.mxu0 %v1192_v24 }
  0x88   :  { %3015 = vmatpush3.bf16.msra.mxu0 %v3176_v49  ;;  %3018 = vmatprep.mubr.msk.bf16.mxu0 %vm3415_vm5, %v4465_v41 }
  0x89   :  { %3049 = vmatpush3.bf16.msra.mxu1 %v3179_v25  ;;  %3016 = vmatprep.subr.bf16.mxu0 %v3178_v51 }
  0x8a   :  { %3098 = vmatprep.subr.bf16.mxu1 %v3180_v10 }
  0x8c   :  { %3051 = vmatmul.mubr.bf16.vlgmr.msra.gmra.mxu1 %v4466_v8  ;;  %3017 = vmatpush3.bf16.msra.mxu0 %v3178_v51 }
  0x8d   :  { %3106 = vmatpush3.bf16.msra.mxu1 %v3180_v10  ;;  %3066 = vmatprep.subr.bf16.mxu0 %v3180_v10 }
  0x8e   :  { %3099 = vmatprep.subr.bf16.mxu1 %v3181_v39  ;;  %3054 = vmatprep.mubr.bf16.mxu1 %v4467_v12 }
  0x8f   :  { %3019 = vmatmul.mubr.msk.bf16.vlgmr.msra.gmra.mxu0 %vm3415_vm5, %v4468_v7 }
  0x90   :  { %3067 = vmatpush3.bf16.msra.mxu0 %v3180_v10  ;;  %3022 = vmatprep.mubr.msk.bf16.mxu0 %vm3415_vm5, %v4470_v26 }
  0x91   :  { %3107 = vmatpush3.bf16.msra.mxu1 %v3181_v39  ;;  %3068 = vmatprep.subr.bf16.mxu0 %v3181_v39 }
  0x92   :  { %3100 = vmatprep.subr.bf16.mxu1 %v3182_v38 }
  0x94   :  { %3055 = vmatmul.mubr.bf16.gmra.mxu1 %v1763_v23  ;;  %3069 = vmatpush3.bf16.msra.mxu0 %v3181_v39 }
  0x95   :  { %3108 = vmatpush3.bf16.msra.mxu1 %v3182_v38  ;;  %3070 = vmatprep.subr.bf16.mxu0 %v3182_v38 }
  0x96   :  { %3101 = vmatprep.subr.bf16.mxu1 %v3183_v30  ;;  %3058 = vmatprep.mubr.bf16.mxu1 %v4474_v52 }
  0x97   :  { %3023 = vmatmul.mubr.msk.bf16.gmra.mxu0 %vm4170_vm7, %v2525_v46 }
  0x98   :  { %3071 = vmatpush3.bf16.msra.mxu0 %v3182_v38  ;;  %3026 = vmatprep.mubr.msk.bf16.mxu0 %vm3415_vm5, %v4475_v58 }
  0x99   :  { %3109 = vmatpush3.bf16.msra.mxu1 %v3183_v30  ;;  %3072 = vmatprep.subr.bf16.mxu0 %v3183_v30 }
  0x9a   :  { %3102 = vmatprep.subr.bf16.mxu1 %v3184_v22 }
  0x9c   :  { %3059 = vmatmul.mubr.bf16.gmra.mxu1 %v4476_v19  ;;  %3073 = vmatpush3.bf16.msra.mxu0 %v3183_v30 }
  0x9d   :  { %3110 = vmatpush3.bf16.msra.mxu1 %v3184_v22  ;;  %3074 = vmatprep.subr.bf16.mxu0 %v3184_v22 }
  0x9e   :  { %3103 = vmatprep.subr.bf16.mxu1 %v3185_v6  ;;  %3062 = vmatprep.mubr.bf16.mxu1 %v3829_v16  ;;  %v3187_v16 = vld [vmem:[%s4396_s1 + $0x200] sm:$0xff]  }
  0x9f   :  { %3027 = vmatmul.mubr.msk.bf16.gmra.mxu0 %vm3415_vm5, %v4477_v0 }
  0xa0   :  { %3075 = vmatpush3.bf16.msra.mxu0 %v3184_v22  ;;  %3030 = vmatprep.mubr.msk.bf16.mxu0 %vm3415_vm5, %v4478_v27 }
  0xa1   :  { %3111 = vmatpush3.bf16.msra.mxu1 %v3185_v6  ;;  %3076 = vmatprep.subr.bf16.mxu0 %v3185_v6 }
  0xa2   :  { %3104 = vmatprep.subr.bf16.mxu1 %v3186_v14 }
  0xa4   :  { %3063 = vmatmul.mubr.bf16.gmra.mxu1 %v1764_v37  ;;  %3077 = vmatpush3.bf16.msra.mxu0 %v3185_v6 }
  0xa5   :  { %3112 = vmatpush3.bf16.msra.mxu1 %v3186_v14  ;;  %3078 = vmatprep.subr.bf16.mxu0 %v3186_v14 }
  0xa6   :  { %3105 = vmatprep.subr.bf16.mxu1 %v3187_v16  ;;  %3090 = vmatprep.mubr.bf16.mxu1 %v3977_v55 }
  0xa7   :  { %3031 = vmatmul.mubr.msk.bf16.gmra.mxu0 %vm4170_vm7, %v2537_v42 }
  0xa8   :  { %3079 = vmatpush3.bf16.msra.mxu0 %v3186_v14  ;;  %3082 = vmatprep.mubr.bf16.mxu0 %v3858_v21 }
  0xa9   :  { %3113 = vmatpush3.bf16.msra.mxu1 %v3187_v16  ;;  %3080 = vmatprep.subr.bf16.mxu0 %v3187_v16 }
  0xac   :  { %3091 = vmatmul.mubr.bf16.vlgmr.msra.gmra.mxu1 %v3995_v54  ;;  %3081 = vmatpush3.bf16.msra.mxu0 %v3187_v16 }
  0xad   :  { %3094 = vmatprep.mubr.bf16.mxu1 %v4027_v47 }
  0xaf   :  { %3083 = vmatmul.mubr.bf16.vlgmr.msra.gmra.mxu0 %v3875_v57 }
  0xb0   :  { %3086 = vmatprep.mubr.bf16.mxu0 %v3918_v34 }
  0xb4   :  { %3095 = vmatmul.mubr.bf16.gmra.mxu1 %v1954_v28 }
  0xb7   :  { %3087 = vmatmul.mubr.bf16.gmra.mxu0 %v1953_v18 }
  0xe2   :  { %v2828_v59 = vpop.f32.mrf.mxu0 }
  0xe3   :  { %v2860_v55 = vpop.f32.mrf.mxu1 }
  0xe4   :  { %v678_v53 = vadd.f32 %v2860_v55, %v2828_v59  ;;  %v524_v54 = vpop.f32.mrf.mxu0 }
  0xe5   :  { %v669_v21 = vpop.f32.mrf.mxu1 }
  0xe6   :  { %v670_v33 = vadd.f32 %v669_v21, %v524_v54  ;;  %v2829_v47 = vpop.f32.mrf.mxu0 }
  0xe7   :  { %v2861_v35 = vpop.f32.mrf.mxu1 }
  0xe8   :  { %v681_v57 = vadd.f32 %v2861_v35, %v2829_v47  ;;  %v527_v40 = vpop.f32.mrf.mxu0 }
  0xe9   :  { %v672_v29 = vpop.f32.mrf.mxu1 }
  0xea   :  { %v673_v44 = vadd.f32 %v672_v29, %v527_v40 }
  0xeb   :  { %v2864_v63 = vpop.f32.mrf.mxu1 }
  0xed   :  { %v685_v20 = vpop.f32.mrf.mxu1  ;;  %v2832_v34 = vpop.f32.mrf.mxu0 }
  0xee   :  { %v694_v62 = vadd.f32 %v2864_v63, %v2832_v34 }
  0xef   :  { %v2865_v13 = vpop.f32.mrf.mxu1  ;;  %v540_v43 = vpop.f32.mrf.mxu0 }
  0xf0   :  { %v686_v1 = vadd.f32 %v685_v20, %v540_v43 }
  0xf1   :  { %v2833_v3 = vpop.f32.mrf.mxu0  ;;  %v688_v18 = vpop.f32.mrf.mxu1 }
  0xf2   :  { %v697_v15 = vadd.f32 %v2865_v13, %v2833_v3 }
  0xf3   :  { %v543_v2 = vpop.f32.mrf.mxu0 }
  0xf4   :  { %v689_v56 = vadd.f32 %v688_v18, %v543_v2 }
  0xf6   :  { %v2868_v50 = vpop.f32.mrf.mxu1 }
  0xf8   :  { %v701_v60 = vpop.f32.mrf.mxu1 }
  0xfa   :  { %v2836_v4 = vpop.f32.mrf.mxu0  ;;  %v2869_v45 = vpop.f32.mrf.mxu1 }
  0xfb   :  { %v710_v36 = vadd.f32 %v2868_v50, %v2836_v4 }
  0xfc   :  { %v556_v61 = vpop.f32.mrf.mxu0  ;;  %v704_v49 = vpop.f32.mrf.mxu1 }
  0xfd   :  { %v702_v11 = vadd.f32 %v701_v60, %v556_v61 }
  0xfe   :  { %v2837_v32 = vpop.f32.mrf.mxu0 }
  0xff   :  { %v713_v25 = vadd.f32 %v2869_v45, %v2837_v32 }
 0x100   :  { %v559_v24 = vpop.f32.mrf.mxu0 }
 0x101   :  { %v705_v51 = vadd.f32 %v704_v49, %v559_v24 }
 0x104   :  { %v2872_v17 = vpop.f32.mrf.mxu1 }
 0x106   :  { %v717_v10 = vpop.f32.mrf.mxu1 }
 0x107   :  { %v2840_v41 = vpop.f32.mrf.mxu0 }
 0x108   :  { %v2873_v39 = vpop.f32.mrf.mxu1  ;;  %v726_v8 = vadd.f32 %v2872_v17, %v2840_v41 }
 0x109   :  { %v572_v12 = vpop.f32.mrf.mxu0 }
 0x10a   :  { %v720_v38 = vpop.f32.mrf.mxu1  ;;  %v718_v7 = vadd.f32 %v717_v10, %v572_v12 }
 0x10b   :  { %v2841_v31 = vpop.f32.mrf.mxu0 }
 0x10c   :  { %v2924_v23 = vpop.f32.mrf.mxu1  ;;  %v729_v26 = vadd.f32 %v2873_v39, %v2841_v31 }
 0x10d   :  { %v575_v30 = vpop.f32.mrf.mxu0 }
 0x10e   :  { %v1094_v48 = vpop.f32.mrf.mxu1  ;;  %v4217_v46 = vadd.f32 %v720_v38, %v575_v30 }
 0x10f   :  { %v2892_v5 = vpop.f32.mrf.mxu0 }
 0x110   :  { %v2925_v52 = vpop.f32.mrf.mxu1  ;;  %v971_v22 = vadd.f32 %v2892_v5, %v678_v53 }
 0x111   :  { %v906_v58 = vpop.f32.mrf.mxu0 }
 0x112   :  { %v1097_v6 = vpop.f32.mrf.mxu1  ;;  %v1159_v19 = vadd.f32 %v2924_v23, %v971_v22  ;;  %v969_v14 = vadd.f32 %v906_v58, %v670_v33 }
 0x113   :  { %v2893_v0 = vpop.f32.mrf.mxu0 }
 0x114   :  { %v2928_v37 = vpop.f32.mrf.mxu1  ;;  %v1157_v27 = vadd.f32 %v1094_v48, %v969_v14  ;;  %v972_v16 = vadd.f32 %v2893_v0, %v681_v57 }
 0x115   :  { %v909_v42 = vpop.f32.mrf.mxu0 }
 0x116   :  { %v1110_v28 = vpop.f32.mrf.mxu1  ;;  %v4219_v55 = vadd.f32 %v2925_v52, %v972_v16  ;;  %v970_v59 = vadd.f32 %v909_v42, %v673_v44 }
 0x117   :  { %v2896_v21 = vpop.f32.mrf.mxu0 }
 0x118   :  { %v2929_v54 = vpop.f32.mrf.mxu1  ;;  %v4221_v35 = vadd.f32 %v1097_v6, %v970_v59  ;;  %v975_v47 = vadd.f32 %v2896_v21, %v694_v62 }
 0x119   :  { %v922_v29 = vpop.f32.mrf.mxu0 }
 0x11a   :  { %v1113_v53 = vpop.f32.mrf.mxu1  ;;  %v1163_v40 = vadd.f32 %v2928_v37, %v975_v47  ;;  %v973_v63 = vadd.f32 %v922_v29, %v686_v1 }
 0x11b   :  { %v2897_v20 = vpop.f32.mrf.mxu0 }
 0x11c   :  { %v2932_v33 = vpop.f32.mrf.mxu1  ;;  %v1161_v34 = vadd.f32 %v1110_v28, %v973_v63  ;;  %v976_v13 = vadd.f32 %v2897_v20, %v697_v15 }
 0x11d   :  { %v925_v43 = vpop.f32.mrf.mxu0 }
 0x11e   :  { %v1126_v57 = vpop.f32.mrf.mxu1  ;;  %v4223_v3 = vadd.f32 %v2929_v54, %v976_v13  ;;  %v974_v18 = vadd.f32 %v925_v43, %v689_v56 }
 0x11f   :  { %v2900_v2 = vpop.f32.mrf.mxu0 }
 0x120   :  { %v2933_v44 = vpop.f32.mrf.mxu1  ;;  %v4225_v50 = vadd.f32 %v1113_v53, %v974_v18  ;;  %v979_v60 = vadd.f32 %v2900_v2, %v710_v36 }
 0x121   :  { %v938_v4 = vpop.f32.mrf.mxu0 }
 0x122   :  { %v1129_v62 = vpop.f32.mrf.mxu1  ;;  %v4227_v45 = vadd.f32 %v2932_v33, %v979_v60  ;;  %v977_v61 = vadd.f32 %v938_v4, %v702_v11 }
 0x123   :  { %v2901_v1 = vpop.f32.mrf.mxu0 }
 0x124   :  { %v2936_v32 = vpop.f32.mrf.mxu1  ;;  %v4229_v49 = vadd.f32 %v1126_v57, %v977_v61  ;;  %v980_v15 = vadd.f32 %v2901_v1, %v713_v25 }
 0x125   :  { %v941_v24 = vpop.f32.mrf.mxu0 }
 0x126   :  { %v1142_v17 = vpop.f32.mrf.mxu1  ;;  %v4231_v10 = vadd.f32 %v2933_v44, %v980_v15  ;;  %v978_v56 = vadd.f32 %v941_v24, %v705_v51 }
 0x127   :  { %v2904_v41 = vpop.f32.mrf.mxu0 }
 0x128   :  { %v2937_v39 = vpop.f32.mrf.mxu1  ;;  %v4233_v12 = vadd.f32 %v1129_v62, %v978_v56  ;;  %v983_v36 = vadd.f32 %v2904_v41, %v726_v8 }
 0x129   :  { %v954_v38 = vpop.f32.mrf.mxu0 }
 0x12a   :  { %v1145_v31 = vpop.f32.mrf.mxu1  ;;  %v4235_v23 = vadd.f32 %v2936_v32, %v983_v36  ;;  %v981_v11 = vadd.f32 %v954_v38, %v718_v7 }
 0x12b   :  { %v2905_v30 = vpop.f32.mrf.mxu0 }
 0x12c   :  { %v2988_v48 = vpop.f32.mrf.mxu1  ;;  %v4237_v5 = vadd.f32 %v1142_v17, %v981_v11  ;;  %v984_v25 = vadd.f32 %v2905_v30, %v729_v26 }
 0x12d   :  { %v957_v52 = vpop.f32.mrf.mxu0 }
 0x12e   :  { %v1490_v22 = vpop.f32.mrf.mxu1  ;;  %v4239_v58 = vadd.f32 %v2937_v39, %v984_v25  ;;  %v982_v51 = vadd.f32 %v957_v52, %v4217_v46 }
 0x12f   :  { %v2956_v6 = vpop.f32.mrf.mxu0 }
 0x130   :  { %v4242_v14 = vpop.f32.mrf.mxu1  ;;  %v4244_v8 = vadd.f32 %v1145_v31, %v982_v51  ;;  %v1359_v0 = vadd.f32 %v2956_v6, %v1159_v19 }
 0x131   :  { %v1294_v37 = vpop.f32.mrf.mxu0 }
 0x132   :  { %v4246_v16 = vpop.f32.mrf.mxu1  ;;  %v4248_v7 = vadd.f32 %v2988_v48, %v1359_v0  ;;  %v1357_v42 = vadd.f32 %v1294_v37, %v1157_v27 }
 0x133   :  { %v2957_v28 = vpop.f32.mrf.mxu0 }
 0x134   :  { %v2992_v26 = vpop.f32.mrf.mxu1  ;;  %v4250_v59 = vadd.f32 %v1490_v22, %v1357_v42 }
 0x135   :  { %v1297_v21 = vpop.f32.mrf.mxu0 }
 0x136   :  { %v1506_v54 = vpop.f32.mrf.mxu1 }
 0x137   :  { %v2960_v47 = vpop.f32.mrf.mxu0 }
 0x138   :  { %v4252_v46 = vpop.f32.mrf.mxu1  ;;  %v1363_v29 = vadd.f32 %v2960_v47, %v1163_v40 }
 0x139   :  { %v1310_v53 = vpop.f32.mrf.mxu0 }
 0x13a   :  { %v4254_v63 = vpop.f32.mrf.mxu1  ;;  %v4256_v19 = vadd.f32 %v2992_v26, %v1363_v29  ;;  %v1361_v20 = vadd.f32 %v1310_v53, %v1161_v34 }
 0x13b   :  { %4479 = vst [vmem:[#allocation19_spill] sm:$0xff] %v4254_v63  ;;  %v2961_v33 = vpop.f32.mrf.mxu0 }
 0x13c   :  { %v2996_v13 = vpop.f32.mrf.mxu1  ;;  %v4258_v43 = vadd.f32 %v1506_v54, %v1361_v20 }
 0x13d   :  { %v4260_v27 = vpop.f32.mrf.mxu0 }
 0x13e   :  { %4480 = vst [vmem:[#allocation15_spill] sm:$0xff] %v4258_v43  ;;  %v1522_v57 = vpop.f32.mrf.mxu1  ;;  %v1358_v43 = vadd.f32 %v1297_v21, %v4221_v35 }
 0x13f   :  { %v2964_v18 = vpop.f32.mrf.mxu0 }
 0x140   :  { %v2997_v2 = vpop.f32.mrf.mxu1 }
 0x141   :  { %v1326_v44 = vpop.f32.mrf.mxu0 }
 0x142   :  { %v1525_v60 = vpop.f32.mrf.mxu1 }
 0x143   :  { %v2965_v4 = vpop.f32.mrf.mxu0 }
 0x144   :  { %v4262_v62 = vpop.f32.mrf.mxu1 }
 0x145   :  { %v1329_v40 = vpop.f32.mrf.mxu0 }
 0x146   :  { %v4264_v61 = vpop.f32.mrf.mxu1 }
 0x147   :  { %v2968_v1 = vpop.f32.mrf.mxu0 }
 0x148   :  { %v4266_v32 = vpop.f32.mrf.mxu1 }
 0x149   :  { %v1342_v34 = vpop.f32.mrf.mxu0 }
 0x14a   :  { %v4268_v15 = vpop.f32.mrf.mxu1 }
 0x14b   :  { %v2969_v24 = vpop.f32.mrf.mxu0 }
 0x14c   :  { %v4270_v17 = vpop.f32.mrf.mxu1 }
 0x14d   :  { %v1345_v56 = vpop.f32.mrf.mxu0 }
 0x14e   :  { %v4272_v41 = vpop.f32.mrf.mxu1  ;;  %v1370_v35 = vadd.f32 %v1345_v56, %v4244_v8 }
 0x14f   :  { %v3020_v39 = vpop.f32.mrf.mxu0 }
 0x150   :  { %v4274_v36 = vpop.f32.mrf.mxu1 }
 0x151   :  { %v1672_v38 = vpop.f32.mrf.mxu0 }
 0x152   :  { %v4276_v31 = vpop.f32.mrf.mxu1 }
 0x153   :  { %4481 = vst [vmem:[#allocation5_spill] sm:$0xff] %v4276_v31  ;;  %v3021_v11 = vpop.f32.mrf.mxu0  ;;  %v1365_v31 = vadd.f32 %v1326_v44, %v4229_v49  ;;  %v1369_v44 = vadd.f32 %v1342_v34, %v4237_v5  ;;  %v1362_v5 = vadd.f32 %v4260_v27, %v4225_v50 }
 0x154   :  { %v4278_v30 = vpop.f32.mrf.mxu1 }
 0x155   :  { %4482 = vst [vmem:[#allocation4_spill] sm:$0xff] %v4278_v30  ;;  %v1675_v48 = vpop.f32.mrf.mxu0  ;;  %v1360_v30 = vadd.f32 %v2957_v28, %v4219_v55  ;;  %v1561_v28 = vadd.f32 %v1522_v57, %v1365_v31 }
 0x156   :  { %v4280_v25 = vpop.f32.mrf.mxu1 }
 0x157   :  { %4483 = vst [vmem:[#allocation10_spill] sm:$0xff] %v4280_v25  ;;  %v4282_v52 = vpop.f32.mrf.mxu0  ;;  %v1367_v25 = vadd.f32 %v2964_v18, %v4227_v45  ;;  %v1556_v45 = vadd.f32 %v4242_v14, %v1360_v30  ;;  %v1554_v14 = vadd.f32 %v4246_v16, %v1358_v43  ;;  %v1565_v16 = vadd.f32 %v4264_v61, %v1369_v44 }
 0x158   :  { %4484 = vst [vmem:[#allocation7_spill] sm:$0xff] %v4282_v52  ;;  %v4284_v22 = vpop.f32.mrf.mxu1 }
 0x159   :  { %4485 = vst [vmem:[#allocation13_spill] sm:$0xff] %v4284_v22  ;;  %v4286_v51 = vpop.f32.mrf.mxu0  ;;  %v1368_v22 = vadd.f32 %v2965_v4, %v4231_v10  ;;  %v1563_v52 = vadd.f32 %v2996_v13, %v1367_v25  ;;  %v1364_v10 = vadd.f32 %v2961_v33, %v4223_v3  ;;  %v1737_v3 = vadd.f32 %v3020_v39, %v4248_v7 }
 0x15a   :  { %4486 = vst [vmem:[#allocation17_spill] sm:$0xff] %v4286_v51  ;;  %v4288_v6 = vpop.f32.mrf.mxu1  ;;  %v1735_v33 = vadd.f32 %v1672_v38, %v4250_v59  ;;  %v1738_v57 = vadd.f32 %v3021_v11, %v1556_v45  ;;  %v1566_v59 = vadd.f32 %v4268_v15, %v1370_v35  ;;  %v1736_v56 = vadd.f32 %v1675_v48, %v1554_v14  ;;  %v4493_v11 = vld [vmem:[#allocation15_spill] sm:$0xff] }
 0x15b   :  { %4487 = vst [vmem:[#allocation8_spill] sm:$0xff] %v4288_v6  ;;  %v4290_v0 = vpop.f32.mrf.mxu0 }
 0x15c   :  { %4488 = vst [vmem:[#allocation6_spill] sm:$0xff] %v4290_v0  ;;  %v3060_v37 = vpop.f32.mrf.mxu1  ;;  %v1929_v50 = vadd.f32 %v4272_v41, %v1735_v33 }
 0x15d   :  { %v4292_v42 = vpop.f32.mrf.mxu0 }
 0x15e   :  { %4489 = vst [vmem:[#allocation11_spill] sm:$0xff] %v4292_v42  ;;  %v1898_v26 = vpop.f32.mrf.mxu1  ;;  %v1366_v42 = vadd.f32 %v1329_v40, %v4233_v12  ;;  %v1371_v12 = vadd.f32 %v2968_v1, %v4235_v23  ;;  %v1372_v40 = vadd.f32 %v2969_v24, %v4239_v58  ;;  %v1560_v23 = vadd.f32 %v4252_v46, %v1364_v10  ;;  %v4499_v44 = vld [vmem:[#allocation10_spill] sm:$0xff] }
 0x15f   :  { %v3028_v54 = vpop.f32.mrf.mxu0  ;;  %v1931_v24 = vadd.f32 %v4270_v17, %v1737_v3 }
 0x160   :  { %v3061_v47 = vpop.f32.mrf.mxu1  ;;  %v1562_v4 = vadd.f32 %v1525_v60, %v1366_v42  ;;  %v1567_v1 = vadd.f32 %v4262_v62, %v1371_v12  ;;  %v1568_v7 = vadd.f32 %v4266_v32, %v1372_v40  ;;  %v4492_v32 = vld [vmem:[#allocation7_spill] sm:$0xff] }
 0x161   :  { %v1704_v29 = vpop.f32.mrf.mxu0  ;;  %v1741_v15 = vadd.f32 %v4492_v32, %v4256_v19  ;;  %v4494_v30 = vld [vmem:[#allocation17_spill] sm:$0xff] }
 0x162   :  { %v1901_v53 = vpop.f32.mrf.mxu1  ;;  %v1739_v25 = vadd.f32 %v4494_v30, %v4493_v11  ;;  %v4504_v30 = vld [vmem:[#allocation8_spill] sm:$0xff] }
 0x163   :  { %v3029_v20 = vpop.f32.mrf.mxu0  ;;  %v4495_v17 = vld [vmem:[#allocation6_spill] sm:$0xff] }
 0x164   :  { %v4294_v9 = vpop.f32.mrf.mxu1  ;;  %v1742_v48 = vadd.f32 %v4495_v17, %v1560_v23  ;;  %v1933_v40 = vadd.f32 %v4499_v44, %v1739_v25 }
 0x165   :  { %4490 = vst [vmem:[#allocation14_spill] sm:$0xff] %v4294_v9  ;;  %v1707_v6 = vpop.f32.mrf.mxu0  ;;  %v1564_v9 = vadd.f32 %v2997_v2, %v1368_v22  ;;  %v1743_v2 = vadd.f32 %v1704_v29, %v1561_v28  ;;  %v4501_v3 = vld [vmem:[#allocation11_spill] sm:$0xff] }
 0x166   :  { %v4299_v63 = vpop.f32.mrf.mxu1  ;;  %v1744_v60 = vadd.f32 %v1707_v6, %v1562_v4 }
 0x167   :  { %4491 = vst [vmem:[#allocation9_spill] sm:$0xff] %v4299_v63  ;;  %v3032_v0 = vpop.f32.mrf.mxu0  ;;  %v1745_v63 = vadd.f32 %v3028_v54, %v1563_v52  ;;  %v1746_v49 = vadd.f32 %v3029_v20, %v1564_v9  ;;  %v1937_v27 = vadd.f32 %v1898_v26, %v1743_v2  ;;  %v4496_v26 = vld [vmem:[#allocation5_spill] sm:$0xff] }
 0x168   :  { %v4303_v51 = vpop.f32.mrf.mxu1  ;;  %v1938_v62 = vadd.f32 %v1901_v53, %v1744_v60  ;;  %v1749_v22 = vadd.f32 %v3032_v0, %v1567_v1  ;;  %v1930_v54 = vadd.f32 %v4496_v26, %v1736_v56  ;;  %v4497_v53 = vld [vmem:[#allocation19_spill] sm:$0xff] }
 0x169   :  { %v1720_v18 = vpop.f32.mrf.mxu0  ;;  %v1939_v58 = vadd.f32 %v3060_v37, %v1745_v63  ;;  %v1940_v8 = vadd.f32 %v3061_v47, %v1746_v49  ;;  %v1932_v63 = vadd.f32 %v4274_v36, %v1738_v57  ;;  %v1558_v20 = vadd.f32 %v4497_v53, %v1362_v5  ;;  %v4498_v49 = vld [vmem:[#allocation4_spill] sm:$0xff] }
 0x16a   :  { %v4308_v55 = vpop.f32.mrf.mxu1  ;;  %v1747_v45 = vadd.f32 %v1720_v18, %v1565_v16  ;;  %v1935_v12 = vadd.f32 %v4498_v49, %v1741_v15 }
 0x16b   :  { %v3033_v21 = vpop.f32.mrf.mxu0  ;;  %v1740_v33 = vadd.f32 %v4501_v3, %v1558_v20 }
 0x16c   :  { %v3092_v13 = vpop.f32.mrf.mxu1  ;;  %v1750_v6 = vadd.f32 %v3033_v21, %v1568_v7  ;;  %v4502_v57 = vld [vmem:[#allocation14_spill] sm:$0xff] }
 0x16d   :  { %v1723_v9 = vpop.f32.mrf.mxu0  ;;  %v4325_v39 = vadd.f32 %v3092_v13, %v1939_v58  ;;  %v4500_v13 = vld [vmem:[#allocation13_spill] sm:$0xff]  ;;  %v1943_v2 = vadd.f32 %v4502_v57, %v1749_v22  ;;  %v1934_v25 = vadd.f32 %v4504_v30, %v1740_v33 }
 0x16e   :  { %v2088_v31 = vpop.f32.mrf.mxu1  ;;  %v1748_v0 = vadd.f32 %v1723_v9, %v1566_v59  ;;  %v1936_v14 = vadd.f32 %v4500_v13, %v1742_v48  ;;  %v1944_v18 = vadd.f32 %v4303_v51, %v1750_v6 }
 0x16f   :  { %v3084_v43 = vpop.f32.mrf.mxu0  ;;  %v4338_v41 = vadd.f32 %v2088_v31, %v1937_v27 }
 0x170   :  { %v3093_v34 = vpop.f32.mrf.mxu1  ;;  %v2121_v47 = vadd.f32 %v3084_v43, %v1931_v24  ;;  %v1942_v16 = vadd.f32 %v4308_v55, %v1748_v0 }
 0x171   :  { %v4327_v46 = vadd.f32 %v3093_v34, %v1940_v8  ;;  %v2056_v61 = vpop.f32.mrf.mxu0  ;;  %v4503_v8 = vld [vmem:[#allocation9_spill] sm:$0xff] }
 0x172   :  { %v2091_v38 = vpop.f32.mrf.mxu1  ;;  %v2119_v19 = vadd.f32 %v2056_v61, %v1929_v50  ;;  %v1941_v1 = vadd.f32 %v4503_v8, %v1747_v45  ;;  %v2238_v34 = vmul.f32 %v2121_v47, %v2121_v47 }
 0x173   :  { %v2647_v52 = vpack.c.bf16 %v4327_v46, %v4325_v39  ;;  %v3085_v36 = vpop.f32.mrf.mxu0  ;;  %v4340_v37 = vadd.f32 %v2091_v38, %v1938_v62 }
 0x174   :  { %v3096_v42 = vpop.f32.mrf.mxu1  ;;  %v2122_v29 = vadd.f32 %v3085_v36, %v1932_v63  ;;  %v2236_v31 = vmul.f32 %v2119_v19, %v2119_v19 }
 0x175   :  { %2663 = vst [vmem:[%s4400_s4 + $0x28] sm:$0xff] %v2647_v52   ;;  %v2059_v10 = vpop.f32.mrf.mxu0  ;;  %v2642_v28 = vpack.c.bf16 %v4340_v37, %v4338_v41  ;;  %v2133_v7 = vadd.f32 %v3096_v42, %v1943_v2 }
 0x176   :  { %v2104_v4 = vpop.f32.mrf.mxu1  ;;  %v2627_v35 = vpack.c.bf16 %v2122_v29, %v2121_v47  ;;  %v2120_v21 = vadd.f32 %v2059_v10, %v1930_v54  ;;  %v2239_v63 = vmul.f32 %v2122_v29, %v2122_v29 }
 0x177   :  { %2662 = vst [vmem:[%s4400_s4 + $0x20] sm:$0xff] %v2642_v28   ;;  %v3088_v60 = vpop.f32.mrf.mxu0  ;;  %v2131_v27 = vadd.f32 %v2104_v4, %v1941_v1  ;;  %v2244_v28 = vmul.f32 %v4338_v41, %v4338_v41 }
 0x178   :  { %v3097_v9 = vpop.f32.mrf.mxu1  ;;  %2659 = vst [vmem:[%s4400_s4 + $0x8] sm:$0xff] %v2627_v35   ;;  %v2622_v23 = vpack.c.bf16 %v2120_v21, %v2119_v19  ;;  %v2215_v5 = vadd.f32 %v2120_v21, %v2119_v19  ;;  %v2237_v58 = vmul.f32 %v2120_v21, %v2120_v21  ;;  %v2125_v15 = vadd.f32 %v3088_v60, %v1935_v12 }
 0x179   :  { %v2072_v51 = vpop.f32.mrf.mxu0  ;;  %v2134_v59 = vadd.f32 %v3097_v9, %v1944_v18  ;;  %v2245_v12 = vmul.f32 %v4340_v37, %v4340_v37  ;;  %v2246_v35 = vmul.f32 %v4325_v39, %v4325_v39 }
 0x17a   :  { %v2107_v43 = vpop.f32.mrf.mxu1  ;;  %2623 = vst [vmem:[%s4400_s4] sm:$0xff] %v2622_v23   ;;  %v2216_v24 = vadd.f32 %v2215_v5, %v2121_v47  ;;  %v2252_v56 = vadd.f32 %v2237_v58, %v2236_v31  ;;  %v2123_v50 = vadd.f32 %v2072_v51, %v1933_v40  ;;  %v2250_v31 = vmul.f32 %v2133_v7, %v2133_v7 }
 0x17b   :  { %v3089_v62 = vpop.f32.mrf.mxu0  ;;  %v2657_v61 = vpack.c.bf16 %v2134_v59, %v2133_v7  ;;  %v2132_v38 = vadd.f32 %v2107_v43, %v1942_v16  ;;  %v2251_v5 = vmul.f32 %v2134_v59, %v2134_v59 }
 0x17c   :  { %v2253_v32 = vadd.f32 %v2252_v56, %v2238_v34  ;;  %v2217_v55 = vadd.f32 %v2216_v24, %v2122_v29  ;;  %v2126_v11 = vadd.f32 %v3089_v62, %v1936_v14  ;;  %v2240_v22 = vmul.f32 %v2123_v50, %v2123_v50  ;;  %v4505_v62 = vld [vmem:[#allocation2_spill] sm:$0xff] }
 0x17d   :  { %2665 = vst [vmem:[%s4400_s4 + $0x38] sm:$0xff] %v2657_v61   ;;  %v2075_v17 = vpop.f32.mrf.mxu0  ;;  %v2652_v48 = vpack.c.bf16 %v2132_v38, %v2131_v27  ;;  %v2242_v29 = vmul.f32 %v2125_v15, %v2125_v15  ;;  %v2247_v14 = vmul.f32 %v4327_v46, %v4327_v46  ;;  %v2249_v60 = vmul.f32 %v2132_v38, %v2132_v38 }
 0x17e   :  { %v2218_v52 = vadd.f32 %v2217_v55, %v2123_v50  ;;  %v2254_v6 = vadd.f32 %v2253_v32, %v2239_v63  ;;  %v2637_v36 = vpack.c.bf16 %v2126_v11, %v2125_v15  ;;  %v2124_v42 = vadd.f32 %v2075_v17, %v1934_v25 }
 0x17f   :  { %2664 = vst [vmem:[%s4400_s4 + $0x30] sm:$0xff] %v2652_v48   ;;  %v2243_v45 = vmul.f32 %v2126_v11, %v2126_v11  ;;  %vm2273_vm8 = vcmp.eq.s32.totalorder %v4505_v62, 0  ;;  %vm2275_vm9 = vcmp.eq.s32.totalorder %v4505_v62, 1 }
 0x180   :  { %v2255_v26 = vadd.f32 %v2254_v6, %v2240_v22  ;;  %2661 = vst [vmem:[%s4400_s4 + $0x18] sm:$0xff] %v2637_v36   ;;  %v2632_v54 = vpack.c.bf16 %v2124_v42, %v2123_v50  ;;  %v2219_v47 = vadd.f32 %v2218_v52, %v2124_v42  ;;  %v2241_v19 = vmul.f32 %v2124_v42, %v2124_v42 }
 0x182   :  { %2660 = vst [vmem:[%s4400_s4 + $0x10] sm:$0xff] %v2632_v54   ;;  %v2220_v53 = vadd.f32 %v2219_v47, %v2125_v15  ;;  %v2256_v20 = vadd.f32 %v2255_v26, %v2241_v19 }
 0x184   :  { %v2221_v0 = vadd.f32 %v2220_v53, %v2126_v11  ;;  %v2257_v10 = vadd.f32 %v2256_v20, %v2242_v29 }
 0x186   :  { %v2222_v4 = vadd.f32 %v2221_v0, %v4338_v41  ;;  %v2258_v49 = vadd.f32 %v2257_v10, %v2243_v45  ;;  %v2248_v41 = vmul.f32 %v2131_v27, %v2131_v27 }
 0x188   :  { %v2259_v44 = vadd.f32 %v2258_v49, %v2244_v28  ;;  %v2223_v40 = vadd.f32 %v2222_v4, %v4340_v37 }
 0x18a   :  { %v2224_v21 = vadd.f32 %v2223_v40, %v4325_v39  ;;  %v2260_v13 = vadd.f32 %v2259_v44, %v2245_v12 }
 0x18c   :  { %v2225_v3 = vadd.f32 %v2224_v21, %v4327_v46  ;;  %v2261_v33 = vadd.f32 %v2260_v13, %v2246_v35 }
 0x18e   :  { %v2226_v57 = vadd.f32 %v2225_v3, %v2131_v27  ;;  %v2262_v2 = vadd.f32 %v2261_v33, %v2247_v14 }
 0x190   :  { %v2227_v18 = vadd.f32 %v2226_v57, %v2132_v38  ;;  %v2263_v9 = vadd.f32 %v2262_v2, %v2248_v41 }
 0x192   :  { %v2228_v37 = vadd.f32 %v2227_v18, %v2133_v7  ;;  %v2264_v23 = vadd.f32 %v2263_v9, %v2249_v60 }
 0x194   :  { %v2229_v58 = vadd.f32 %v2228_v37, %v2134_v59  ;;  %v2265_v8 = vadd.f32 %v2264_v23, %v2250_v31 }
 0x196   :  { %v2230_v39 = vrot.slane %v2229_v58, 4  ;;  %v2266_v1 = vadd.f32 %v2265_v8, %v2251_v5 }
 0x198   :  { %v2231_v16 = vadd.f32 %v2230_v39, %v2229_v58  ;;  %v2267_v51 = vrot.slane %v2266_v1, 4 }
 0x19a   :  { %v2232_v43 = vrot.slane %v2231_v16, 2  ;;  %v2268_v34 = vadd.f32 %v2267_v51, %v2266_v1 }
 0x19c   :  { %v2233_v46 = vadd.f32 %v2232_v43, %v2231_v16  ;;  %v2269_v24 = vrot.slane %v2268_v34, 2 }
 0x19e   :  { %v2234_v56 = vrot.slane %v2233_v46, 1  ;;  %v2270_v50 = vadd.f32 %v2269_v24, %v2268_v34 }
 0x1a0   :  { %v2235_v63 = vadd.f32 %v2234_v56, %v2233_v46  ;;  %v2271_v27 = vrot.slane %v2270_v50, 1 }
 0x1a2   :  { %v2272_v7 = vadd.f32 %v2271_v27, %v2270_v50  ;;  %v2274_v61 = vsel %vm2273_vm8, %v2235_v63, 0.0 }
 0x1a4   :  { %v2276_v59 = vsel %vm2275_vm9, %v2272_v7, 0.0 }
 0x1a5   :  { %v2277_v38 = vadd.f32 %v2276_v59, %v2274_v61 }
 0x1a7   :  { %2278 = vst [vmem:[%s4401_s5] sm:$0xff] %v2277_v38 }

// kernel: _forward_impl.4
= control target key start
LH: loop header
LB: loop body
LE: loop exit
PB: predicated region body
PF: predicated region fallthrough
CT: control target
= control target key end

     0   :  { %vm605_vm0 = vcmask 1046528   ;;  %s4261_s4 = inlined_call_operand.vmem [shape: bf16[9,128,128], index: 4, kind: input, shape index: {}]   ;;  %s4262_s1 = inlined_call_operand.vmem [shape: bf16[2,9,9,128], index: 1, kind: input, shape index: {}]   ;;  %s4263_s0 = inlined_call_operand.vmem [shape: bf16[2,9,9,128], index: 0, kind: input, shape index: {}]   ;;  %s4264_s2 = inlined_call_operand.vmem [shape: bf16[2,9,9,128], index: 2, kind: input, shape index: {}]   ;;  %s4265_s3 = inlined_call_operand.vmem [shape: bf16[2,9,9,128], index: 3, kind: input, shape index: {}]   ;;  %s4266_s5 = inlined_call_operand.vmem [shape: bf16[128,128], index: 5, kind: output, shape index: {0}]   ;;  %s4267_s6 = inlined_call_operand.vmem [shape: f32[1,8,128], index: 6, kind: output, shape index: {1}]  }
   0x1   :  { %v3049_v0 = vld [vmem:[%s4261_s4 + $0x78] sm:$0xff]   ;;  %v3051_v2 = vld [vmem:[%s4261_s4 + $0x70] sm:$0xff]   ;;  %v3053_v4 = vld [vmem:[%s4261_s4 + $0x68] sm:$0xff]  }
   0x2   :  { %v3050_v1 = vld [vmem:[%s4261_s4 + $0x38] sm:$0xff]   ;;  %2745 = vmatprep.subr.bf16.mxu0 %v3049_v0  ;;  %v3052_v3 = vld [vmem:[%s4261_s4 + $0x30] sm:$0xff]   ;;  %v3054_v5 = vld [vmem:[%s4261_s4 + $0x28] sm:$0xff]  }
   0x3   :  { %2777 = vmatprep.subr.bf16.mxu1 %v3050_v1  ;;  %2746 = vmatpush3.bf16.msra.mxu0 %v3049_v0  ;;  %v3055_v6 = vld [vmem:[%s4261_s4 + $0x60] sm:$0xff]   ;;  %v3057_v8 = vld [vmem:[%s4261_s4 + $0x58] sm:$0xff]   ;;  %v3059_v10 = vld [vmem:[%s4261_s4 + $0x50] sm:$0xff]  }
   0x4   :  { %2778 = vmatpush3.bf16.msra.mxu1 %v3050_v1  ;;  %2747 = vmatprep.subr.bf16.mxu0 %v3051_v2  ;;  %v3056_v7 = vld [vmem:[%s4261_s4 + $0x20] sm:$0xff]   ;;  %v3058_v9 = vld [vmem:[%s4261_s4 + $0x18] sm:$0xff]   ;;  %v3245_v12 = vld [vmem:[%s4262_s1 + $0x8] sm:$0xf] }
   0x5   :  { %2779 = vmatprep.subr.bf16.mxu1 %v3052_v3  ;;  %v96_v11 = vld [vmem:[%s4262_s1] sm:$0xf]  ;;  %v3250_v13 = vld [vmem:[%s4262_s1 + $0x10] sm:$0xf]  ;;  %v3266_v18 = vld [vmem:[%s4263_s0 + $0x8] sm:$0xf] }
   0x6   :  { %v3060_v14 = vld [vmem:[%s4261_s4 + $0x10] sm:$0xff]   ;;  %v2282_v15 = vcombine.low %v96_v11, %v3245_v12  ;;  %v3261_v17 = vld [vmem:[%s4263_s0] sm:$0xf]  ;;  %v3061_v22 = vld [vmem:[%s4261_s4 + $0x48] sm:$0xff]  }
   0x7   :  { %2748 = vmatpush3.bf16.msra.mxu0 %v3051_v2  ;;  %v2274_v19 = vcombine.low %v3261_v17, %v3266_v18  ;;  %v3273_v20 = vld [vmem:[%s4263_s0 + $0x10] sm:$0xf]  ;;  %v3062_v23 = vld [vmem:[%s4261_s4 + $0x8] sm:$0xff]   ;;  %v3286_v24 = vld [vmem:[%s4262_s1 + $0x18] sm:$0xf] }
   0x8   :  { %2780 = vmatpush3.bf16.msra.mxu1 %v3052_v3  ;;  %2749 = vmatprep.subr.bf16.mxu0 %v3053_v4  ;;  %v3291_v25 = vld [vmem:[%s4263_s0 + $0x18] sm:$0xf]  ;;  %v3296_v26 = vld [vmem:[%s4262_s1 + $0x20] sm:$0xf]  ;;  %v3309_v29 = vld [vmem:[%s4262_s1 + $0x28] sm:$0xf]  ;;  %v2283_v40 = vcombine.low %v3250_v13, %v3286_v24  ;;  %v64_v11 = vunpack.c.l.bf16 %v3273_v20 }
   0x9   :  { %2781 = vmatprep.subr.bf16.mxu1 %v3054_v5  ;;  %2761 = vmatprep.mubr.bf16.mxu0 %v2282_v15  ;;  %v3301_v27 = vld [vmem:[%s4263_s0 + $0x20] sm:$0xf]  ;;  %v3318_v32 = vld [vmem:[%s4262_s1 + $0x30] sm:$0xf]  ;;  %v3326_v34 = vld [vmem:[%s4263_s0 + $0x28] sm:$0xf]  ;;  %v2275_v42 = vcombine.low %v3273_v20, %v3291_v25  ;;  %v2284_v50 = vcombine.low %v3296_v26, %v3309_v29 }
   0xa   :  { %2793 = vmatprep.mubr.bf16.mxu1 %v2274_v19  ;;  %v3063_v28 = vld [vmem:[%s4261_s4 + $0x40] sm:$0xff]   ;;  %v3333_v36 = vld [vmem:[%s4263_s0 + $0x30] sm:$0xf]  ;;  %v3070_v38 = vld [vmem:[%s4261_s4 + $0xb8] sm:$0xff]   ;;  %v2276_v52 = vcombine.low %v3301_v27, %v3326_v34 }
   0xb   :  { %2750 = vmatpush3.bf16.msra.mxu0 %v3053_v4  ;;  %v3064_v33 = vld [vmem:[%s4261_s4] sm:$0xff]   ;;  %v3071_v39 = vld [vmem:[%s4261_s4 + $0xf8] sm:$0xff]   ;;  %v3348_v41 = vld [vmem:[%s4262_s1 + $0x50] sm:$0xf] }
   0xc   :  { %2782 = vmatpush3.bf16.msra.mxu1 %v3054_v5  ;;  %2751 = vmatprep.subr.bf16.mxu0 %v3055_v6  ;;  %v3355_v43 = vld [vmem:[%s4263_s0 + $0x50] sm:$0xf]  ;;  %v3360_v44 = vld [vmem:[%s4262_s1 + $0x58] sm:$0xf]  ;;  %v3080_v54 = vld [vmem:[%s4261_s4 + $0xa8] sm:$0xff]  }
   0xd   :  { %2783 = vmatprep.subr.bf16.mxu1 %v3056_v7  ;;  %v3365_v45 = vld [vmem:[%s4263_s0 + $0x58] sm:$0xf]  ;;  %v3072_v46 = vld [vmem:[%s4261_s4 + $0xb0] sm:$0xff]   ;;  %v3081_v55 = vld [vmem:[%s4261_s4 + $0xe8] sm:$0xff]  }
   0xe   :  { %v3073_v49 = vld [vmem:[%s4261_s4 + $0xf0] sm:$0xff]   ;;  %v103_v51 = vld [vmem:[%s4262_s1 + $0x38] sm:$0xf]  ;;  %v105_v56 = vld [vmem:[%s4262_s1 + $0x48] sm:$0xf]  ;;  %v82_v3 = vunpack.c.l.bf16 %v3365_v45 }
   0xf   :  { %2752 = vmatpush3.bf16.msra.mxu0 %v3055_v6  ;;  %v3387_v53 = vld [vmem:[%s4263_s0 + $0x38] sm:$0xf]  ;;  %v3401_v57 = vld [vmem:[%s4262_s1 + $0x60] sm:$0xf]  ;;  %v3406_v58 = vld [vmem:[%s4262_s1 + $0x68] sm:$0xf]  ;;  %v2285_v63 = vcombine.low %v3318_v32, %v103_v51  ;;  %v60_v6 = vunpack.c.l.bf16 %v3261_v17  ;;  %v2286_v15 = vcombine.low %v105_v56, %v3348_v41  ;;  %v66_v17 = vunpack.c.l.bf16 %v3291_v25 }
  0x10   :  { %2784 = vmatpush3.bf16.msra.mxu1 %v3056_v7  ;;  %2753 = vmatprep.subr.bf16.mxu0 %v3057_v8  ;;  %v3411_v59 = vld [vmem:[%s4263_s0 + $0x48] sm:$0xf]  ;;  %v3416_v60 = vld [vmem:[%s4263_s0 + $0x60] sm:$0xf]  ;;  %v3429_v0 = vld [vmem:[%s4262_s1 + $0x70] sm:$0xf]  ;;  %v2277_v4 = vcombine.low %v3333_v36, %v3387_v53 }
  0x11   :  { %2785 = vmatprep.subr.bf16.mxu1 %v3058_v9  ;;  %v3421_v61 = vld [vmem:[%s4263_s0 + $0x68] sm:$0xf]  ;;  %v3434_v1 = vld [vmem:[%s4263_s0 + $0x70] sm:$0xf]  ;;  %v3439_v2 = vld [vmem:[%s4262_s1 + $0x78] sm:$0xf]  ;;  %v2278_v19 = vcombine.low %v3411_v59, %v3355_v43 }
  0x12   :  { %v3448_v5 = vld [vmem:[%s4263_s0 + $0x78] sm:$0xf]  ;;  %v3082_v7 = vld [vmem:[%s4261_s4 + $0xa0] sm:$0xff]   ;;  %v31_v51 = vld [vmem:[%s4263_s0 + $0x1c] sm:$0x1] }
  0x13   :  { %2754 = vmatpush3.bf16.msra.mxu0 %v3057_v8  ;;  %v39_v8 = vld [vmem:[%s4263_s0 + $0x3c] sm:$0x1]  ;;  %v3625_v47 = vld [vmem:[%s4264_s2 + $0x28] sm:$0xf]  ;;  %v90_v16 = vunpack.c.l.bf16 %v3448_v5 }
  0x14   :  { %2786 = vmatpush3.bf16.msra.mxu1 %v3058_v9  ;;  %2755 = vmatprep.subr.bf16.mxu0 %v3059_v10 }
  0x15   :  { %2787 = vmatprep.subr.bf16.mxu1 %v3060_v14 }
  0x17   :  { %2756 = vmatpush3.bf16.msra.mxu0 %v3059_v10  ;;  %v62_v10 = vunpack.c.l.bf16 %v3266_v18 }
  0x18   :  { %2788 = vmatpush3.bf16.msra.mxu1 %v3060_v14  ;;  %2757 = vmatprep.subr.bf16.mxu0 %v3061_v22  ;;  %v3083_v14 = vld [vmem:[%s4261_s4 + $0xe0] sm:$0xff]  }
  0x19   :  { %2789 = vmatprep.subr.bf16.mxu1 %v3062_v23 }
  0x1b   :  { %2758 = vmatpush3.bf16.msra.mxu0 %v3061_v22  ;;  %v25_v22 = vld [vmem:[%s4263_s0 + $0x4] sm:$0x1] }
  0x1c   :  { %2790 = vmatpush3.bf16.msra.mxu1 %v3062_v23  ;;  %2759 = vmatprep.subr.bf16.mxu0 %v3063_v28  ;;  %v27_v23 = vld [vmem:[%s4263_s0 + $0xc] sm:$0x1] }
  0x1d   :  { %2791 = vmatprep.subr.bf16.mxu1 %v3064_v33 }
  0x1f   :  { %2760 = vmatpush3.bf16.msra.mxu0 %v3063_v28  ;;  %v3473_v28 = vrot.slane %v60_v6, 1  ;;  %v67_v6 = vunpack.c.l.bf16 %v31_v51 }
  0x20   :  { %2792 = vmatpush3.bf16.msra.mxu1 %v3064_v33  ;;  %2809 = vmatprep.subr.bf16.mxu0 %v3070_v38  ;;  %v68_v33 = vunpack.c.l.bf16 %v3301_v27 }
  0x21   :  { %2841 = vmatprep.subr.bf16.mxu1 %v3071_v39 }
  0x22   :  { %2762 = vmatmul.mubr.bf16.vlgmr.msra.gmra.mxu0 %v2283_v40  ;;  %v29_v40 = vld [vmem:[%s4263_s0 + $0x14] sm:$0x1] }
  0x23   :  { %2794 = vmatmul.mubr.bf16.vlgmr.msra.gmra.mxu1 %v2275_v42  ;;  %2810 = vmatpush3.bf16.msra.mxu0 %v3070_v38  ;;  %v3088_v38 = vld [vmem:[%s4261_s4 + $0x98] sm:$0xff]   ;;  %v609_v42 = vrot.slane %v62_v10, 1 }
  0x24   :  { %2842 = vmatpush3.bf16.msra.mxu1 %v3071_v39  ;;  %2811 = vmatprep.subr.bf16.mxu0 %v3072_v46  ;;  %v63_v39 = vunpack.c.l.bf16 %v27_v23 }
  0x25   :  { %2843 = vmatprep.subr.bf16.mxu1 %v3073_v49  ;;  %2765 = vmatprep.mubr.bf16.mxu0 %v2284_v50  ;;  %v61_v50 = vunpack.c.l.bf16 %v25_v22 }
  0x26   :  { %2797 = vmatprep.mubr.bf16.mxu1 %v2276_v52  ;;  %v65_v52 = vunpack.c.l.bf16 %v29_v40  ;;  %v610_v56 = vrot.slane %v63_v39, 1  ;;  %v33_v39 = vld [vmem:[%s4263_s0 + $0x24] sm:$0x1] }
  0x27   :  { %2812 = vmatpush3.bf16.msra.mxu0 %v3072_v46  ;;  %v612_v46 = vrot.slane %v64_v11, 1  ;;  %v618_v11 = vrot.slane %v68_v33, 1  ;;  %v607_v22 = vrot.slane %v61_v50, 1  ;;  %v35_v50 = vld [vmem:[%s4263_s0 + $0x2c] sm:$0x1] }
  0x28   :  { %2844 = vmatpush3.bf16.msra.mxu1 %v3073_v49  ;;  %2813 = vmatprep.subr.bf16.mxu0 %v3080_v54  ;;  %v3089_v49 = vld [vmem:[%s4261_s4 + $0xd8] sm:$0xff]   ;;  %v613_v10 = vrot.slane %v65_v52, 1  ;;  %v3503_v23 = vsel %vm605_vm0, %v609_v42, %v610_v56  ;;  %v3518_v42 = vld [vmem:[%s4262_s1 + $0x80] sm:$0xf]  ;;  %v69_v52 = vunpack.c.l.bf16 %v33_v39 }
  0x29   :  { %2845 = vmatprep.subr.bf16.mxu1 %v3081_v55  ;;  %4283 = vst [vmem:[#allocation2_spill] sm:$0xff] %v3503_v23  ;;  %4285 = vst [vmem:[#allocation4_spill] sm:$0xff] %v3518_v42  ;;  %v3526_v56 = vld [vmem:[%s4263_s0 + $0x80] sm:$0xf]  ;;  %v608_v40 = vsel %vm605_vm0, %v3473_v28, %v607_v22 }
  0x2a   :  { %2766 = vmatmul.mubr.bf16.gmra.mxu0 %v2285_v63  ;;  %v70_v63 = vunpack.c.l.bf16 %v3326_v34  ;;  %v3506_v33 = vsel %vm605_vm0, %v612_v46, %v613_v10  ;;  %v616_v46 = vrot.slane %v67_v6, 1  ;;  %v74_v6 = vunpack.c.l.bf16 %v3387_v53  ;;  %v3541_v10 = vld [vmem:[%s4264_s2] sm:$0xf] }
  0x2b   :  { %2798 = vmatmul.mubr.bf16.gmra.mxu1 %v2277_v4  ;;  %2814 = vmatpush3.bf16.msra.mxu0 %v3080_v54  ;;  %v615_v54 = vrot.slane %v66_v17, 1  ;;  %v2279_v4 = vcombine.low %v3365_v45, %v3416_v60  ;;  %v3090_v17 = vld [vmem:[%s4261_s4 + $0x90] sm:$0xff]   ;;  %4284 = vst [vmem:[#allocation3_spill] sm:$0xff] %v3506_v33  ;;  %v619_v39 = vrot.slane %v69_v52, 1  ;;  %v80_v53 = vunpack.c.l.bf16 %v3355_v43  ;;  %v3098_v28 = vld [vmem:[%s4261_s4 + $0x80] sm:$0xff]  }
  0x2c   :  { %2846 = vmatpush3.bf16.msra.mxu1 %v3081_v55  ;;  %2815 = vmatprep.subr.bf16.mxu0 %v3082_v7  ;;  %v2287_v55 = vcombine.low %v3360_v44, %v3401_v57  ;;  %v621_v51 = vrot.slane %v70_v63, 1  ;;  %v71_v63 = vunpack.c.l.bf16 %v35_v50  ;;  %v2281_v62 = vcombine.low %v3448_v5, %v3526_v56 }
  0x2d   :  { %2847 = vmatprep.subr.bf16.mxu1 %v3083_v14  ;;  %2769 = vmatprep.mubr.bf16.mxu0 %v2286_v15  ;;  %v72_v15 = vunpack.c.l.bf16 %v3333_v36  ;;  %v3559_v52 = vsel %vm605_vm0, %v615_v54, %v616_v46  ;;  %v627_v22 = vrot.slane %v74_v6, 1  ;;  %v3099_v54 = vld [vmem:[%s4261_s4 + $0xc0] sm:$0xff]   ;;  %v3585_v6 = vld [vmem:[%s4264_s2 + $0x10] sm:$0xf] }
  0x2e   :  { %2801 = vmatprep.mubr.bf16.mxu1 %v2278_v19  ;;  %v3091_v19 = vld [vmem:[%s4261_s4 + $0xd0] sm:$0xff]   ;;  %v622_v9 = vrot.slane %v71_v63, 1  ;;  %4286 = vst [vmem:[#allocation5_spill] sm:$0xff] %v3559_v52  ;;  %v633_v63 = vrot.slane %v80_v53, 1 }
  0x2f   :  { %2816 = vmatpush3.bf16.msra.mxu0 %v3082_v7  ;;  %v2288_v7 = vcombine.low %v3406_v58, %v3429_v0 }
  0x30   :  { %2848 = vmatpush3.bf16.msra.mxu1 %v3083_v14  ;;  %2817 = vmatprep.subr.bf16.mxu0 %v3088_v38  ;;  %v2280_v14 = vcombine.low %v3421_v61, %v3434_v1  ;;  %v3575_v46 = vsel %vm605_vm0, %v621_v51, %v622_v9  ;;  %v78_v51 = vunpack.c.l.bf16 %v3411_v59  ;;  %v636_v9 = vrot.slane %v82_v3, 1 }
  0x31   :  { %2849 = vmatprep.subr.bf16.mxu1 %v3089_v49  ;;  %4288 = vst [vmem:[#allocation7_spill] sm:$0xff] %v3575_v46  ;;  %v86_v59 = vunpack.c.l.bf16 %v3421_v61  ;;  %v671_v3 = vpack.c.bf16 %v3559_v52, %v3506_v33  ;;  %v648_v52 = vrot.slane %v90_v16, 1  ;;  %v3108_v16 = vld [vmem:[%s4261_s4 + $0x128] sm:$0xff]  }
  0x32   :  { %2770 = vmatmul.mubr.bf16.gmra.mxu0 %v2287_v55  ;;  %v624_v55 = vrot.slane %v72_v15, 1  ;;  %v3546_v15 = vld [vmem:[%s4264_s2 + $0x8] sm:$0xf]  ;;  %v630_v31 = vrot.slane %v78_v51, 1 }
  0x33   :  { %2802 = vmatmul.mubr.bf16.gmra.mxu1 %v2279_v4  ;;  %2818 = vmatpush3.bf16.msra.mxu0 %v3088_v38  ;;  %v3096_v38 = vld [vmem:[%s4261_s4 + $0x88] sm:$0xff]   ;;  %v37_v4 = vld [vmem:[%s4263_s0 + $0x34] sm:$0x1] }
  0x34   :  { %2850 = vmatpush3.bf16.msra.mxu1 %v3089_v49  ;;  %2819 = vmatprep.subr.bf16.mxu0 %v3090_v17  ;;  %v3097_v49 = vld [vmem:[%s4261_s4 + $0xc8] sm:$0xff]   ;;  %v73_v50 = vunpack.c.l.bf16 %v37_v4 }
  0x35   :  { %2851 = vmatprep.subr.bf16.mxu1 %v3091_v19  ;;  %2773 = vmatprep.mubr.bf16.mxu0 %v2288_v7  ;;  %v2289_v7 = vcombine.low %v3439_v2, %v3518_v42 }
  0x36   :  { %2805 = vmatprep.mubr.bf16.mxu1 %v2280_v14  ;;  %v3562_v14 = vsel %vm605_vm0, %v618_v11, %v619_v39  ;;  %v625_v4 = vrot.slane %v73_v50, 1  ;;  %v670_v11 = vpack.c.bf16 %v3503_v23, %v608_v40  ;;  %v2346_v39 = vcombine.low %v3541_v10, %v3546_v15  ;;  %v45_v40 = vld [vmem:[%s4263_s0 + $0x54] sm:$0x1] }
  0x37   :  { %2820 = vmatpush3.bf16.msra.mxu0 %v3090_v17  ;;  %4287 = vst [vmem:[#allocation6_spill] sm:$0xff] %v3562_v14  ;;  %v75_v50 = vunpack.c.l.bf16 %v39_v8  ;;  %v43_v8 = vld [vmem:[%s4263_s0 + $0x4c] sm:$0x1]  ;;  %v81_v53 = vunpack.c.l.bf16 %v45_v40  ;;  %v49_v40 = vld [vmem:[%s4263_s0 + $0x64] sm:$0x1] }
  0x38   :  { %2852 = vmatpush3.bf16.msra.mxu1 %v3091_v19  ;;  %2821 = vmatprep.subr.bf16.mxu0 %v3096_v38  ;;  %v3578_v19 = vsel %vm605_vm0, %v624_v55, %v625_v4  ;;  %v3596_v55 = vld [vmem:[%s4264_s2 + $0x18] sm:$0xf]  ;;  %v84_v4 = vunpack.c.l.bf16 %v3416_v60  ;;  %v79_v37 = vunpack.c.l.bf16 %v43_v8  ;;  %v85_v30 = vunpack.c.l.bf16 %v49_v40  ;;  %v53_v40 = vld [vmem:[%s4263_s0 + $0x74] sm:$0x1] }
  0x39   :  { %2853 = vmatprep.subr.bf16.mxu1 %v3097_v49  ;;  %4289 = vst [vmem:[#allocation8_spill] sm:$0xff] %v3578_v19  ;;  %v634_v48 = vrot.slane %v81_v53, 1  ;;  %v628_v35 = vrot.slane %v75_v50, 1  ;;  %v2347_v21 = vcombine.low %v3585_v6, %v3596_v55  ;;  %v3104_v50 = vld [vmem:[%s4261_s4 + $0x130] sm:$0xff]   ;;  %v672_v8 = vpack.c.bf16 %v3575_v46, %v3562_v14 }
  0x3a   :  { %2774 = vmatmul.mubr.bf16.gmra.mxu0 %v2289_v7  ;;  %v47_v7 = vld [vmem:[%s4263_s0 + $0x5c] sm:$0x1]  ;;  %v639_v53 = vrot.slane %v84_v4, 1  ;;  %v51_v4 = vld [vmem:[%s4263_s0 + $0x6c] sm:$0x1] }
  0x3b   :  { %2806 = vmatmul.mubr.bf16.gmra.mxu1 %v2281_v62  ;;  %2822 = vmatpush3.bf16.msra.mxu0 %v3096_v38  ;;  %v3102_v62 = vld [vmem:[%s4261_s4 + $0x138] sm:$0xff]   ;;  %v3612_v38 = vld [vmem:[%s4264_s2 + $0x20] sm:$0xf]  ;;  %v83_v17 = vunpack.c.l.bf16 %v47_v7  ;;  %v3638_v51 = vsel %vm605_vm0, %v633_v63, %v634_v48  ;;  %v3653_v48 = vsel %vm605_vm0, %v627_v22, %v628_v35  ;;  %v631_v63 = vrot.slane %v79_v37, 1  ;;  %v3661_v14 = vld [vmem:[%s4264_s2 + $0x30] sm:$0xf] }
  0x3c   :  { %2854 = vmatpush3.bf16.msra.mxu1 %v3097_v49  ;;  %2823 = vmatprep.subr.bf16.mxu0 %v3098_v28  ;;  %v3103_v49 = vld [vmem:[%s4261_s4 + $0x178] sm:$0xff]   ;;  %4290 = vst [vmem:[#allocation9_spill] sm:$0xff] %v3638_v51  ;;  %4292 = vst [vmem:[#allocation11_spill] sm:$0xff] %v3653_v48  ;;  %v92_v22 = vunpack.c.l.bf16 %v3526_v56 }
  0x3d   :  { %2855 = vmatprep.subr.bf16.mxu1 %v3099_v54  ;;  %2825 = vmatprep.mubr.bf16.mxu0 %v670_v11  ;;  %v637_v7 = vrot.slane %v83_v17, 1  ;;  %v88_v11 = vunpack.c.l.bf16 %v3434_v1  ;;  %v3105_v17 = vld [vmem:[%s4261_s4 + $0x170] sm:$0xff]   ;;  %v55_v35 = vld [vmem:[%s4263_s0 + $0x7c] sm:$0x1] }
  0x3e   :  { %2857 = vmatprep.mubr.bf16.mxu1 %v2346_v39  ;;  %v642_v39 = vrot.slane %v86_v59, 1  ;;  %v91_v37 = vunpack.c.l.bf16 %v55_v35 }
  0x3f   :  { %2824 = vmatpush3.bf16.msra.mxu0 %v3098_v28  ;;  %v3641_v28 = vsel %vm605_vm0, %v636_v9, %v637_v7  ;;  %v640_v9 = vrot.slane %v85_v30, 1  ;;  %v87_v7 = vunpack.c.l.bf16 %v51_v4  ;;  %v645_v46 = vrot.slane %v88_v11, 1  ;;  %v3669_v30 = vld [vmem:[%s4264_s2 + $0x38] sm:$0xf]  ;;  %v3683_v11 = vld [vmem:[%s4264_s2 + $0x48] sm:$0xf] }
  0x40   :  { %2856 = vmatpush3.bf16.msra.mxu1 %v3099_v54  ;;  %2873 = vmatprep.subr.bf16.mxu0 %v3102_v62  ;;  %4291 = vst [vmem:[#allocation10_spill] sm:$0xff] %v3641_v28  ;;  %v2348_v54 = vcombine.low %v3612_v38, %v3625_v47  ;;  %v649_v59 = vrot.slane %v91_v37, 1  ;;  %v651_v37 = vrot.slane %v92_v22, 1  ;;  %v178_v23 = vunpack.c.l.bf16 %v3669_v30 }
  0x41   :  { %2905 = vmatprep.subr.bf16.mxu1 %v3103_v49 }
  0x42   :  { %2826 = vmatmul.mubr.bf16.vlgmr.msra.gmra.mxu0 %v671_v3  ;;  %v89_v3 = vunpack.c.l.bf16 %v53_v40  ;;  %v57_v40 = vld [vmem:[%s4263_s0 + $0x84] sm:$0x1] }
  0x43   :  { %2858 = vmatmul.mubr.bf16.vlgmr.msra.gmra.mxu1 %v2347_v21  ;;  %2874 = vmatpush3.bf16.msra.mxu0 %v3102_v62  ;;  %v643_v21 = vrot.slane %v87_v7, 1  ;;  %v673_v62 = vpack.c.bf16 %v3653_v48, %v3578_v19  ;;  %v3690_v7 = vsel %vm605_vm0, %v639_v53, %v640_v9  ;;  %v2349_v48 = vcombine.low %v3661_v14, %v3669_v30  ;;  %v139_v19 = vld [vmem:[%s4264_s2 + $0x1c] sm:$0x1] }
  0x44   :  { %2906 = vmatpush3.bf16.msra.mxu1 %v3103_v49  ;;  %2875 = vmatprep.subr.bf16.mxu0 %v3104_v50  ;;  %v3109_v49 = vld [vmem:[%s4261_s4 + $0x168] sm:$0xff]   ;;  %v646_v4 = vrot.slane %v89_v3, 1  ;;  %4293 = vst [vmem:[#allocation12_spill] sm:$0xff] %v3690_v7  ;;  %v3700_v3 = vld [vmem:[%s4264_s2 + $0x50] sm:$0xf]  ;;  %v166_v53 = vunpack.c.l.bf16 %v3546_v15  ;;  %v168_v9 = vunpack.c.l.bf16 %v3585_v6 }
  0x45   :  { %2907 = vmatprep.subr.bf16.mxu1 %v3105_v17  ;;  %2829 = vmatprep.mubr.bf16.mxu0 %v672_v8  ;;  %v632_v8 = vsel %vm605_vm0, %v630_v31, %v631_v63  ;;  %v3693_v35 = vsel %vm605_vm0, %v642_v39, %v643_v21  ;;  %v164_v31 = vunpack.c.l.bf16 %v3541_v10  ;;  %v3110_v39 = vld [vmem:[%s4261_s4 + $0x120] sm:$0xff]   ;;  %v3713_v63 = vsel %vm605_vm0, %v648_v52, %v649_v59  ;;  %v3727_v52 = vld [vmem:[%s4264_s2 + $0x58] sm:$0xf]  ;;  %v135_v59 = vld [vmem:[%s4264_s2 + $0xc] sm:$0x1] }
  0x46   :  { %2861 = vmatprep.mubr.bf16.mxu1 %v2348_v54  ;;  %4294 = vst [vmem:[#allocation13_spill] sm:$0xff] %v3693_v35  ;;  %4296 = vst [vmem:[#allocation15_spill] sm:$0xff] %v3713_v63  ;;  %v3111_v10 = vld [vmem:[%s4261_s4 + $0x160] sm:$0xff]   ;;  %v674_v15 = vpack.c.bf16 %v3638_v51, %v632_v8  ;;  %v3743_v8 = vrot.slane %v168_v9, 1  ;;  %v167_v54 = vunpack.c.l.bf16 %v135_v59  ;;  %v3117_v9 = vld [vmem:[%s4261_s4 + $0x150] sm:$0xff]   ;;  %v174_v51 = vunpack.c.l.bf16 %v3625_v47 }
  0x47   :  { %2876 = vmatpush3.bf16.msra.mxu0 %v3104_v50  ;;  %v3710_v50 = vsel %vm605_vm0, %v645_v46, %v646_v4  ;;  %v2350_v46 = vcombine.low %v3683_v11, %v3700_v3  ;;  %v133_v6 = vld [vmem:[%s4264_s2 + $0x4] sm:$0x1]  ;;  %v1266_v22 = vrot.slane %v164_v31, 1  ;;  %v3114_v4 = vld [vmem:[%s4261_s4 + $0x118] sm:$0xff]   ;;  %v3116_v31 = vld [vmem:[%s4261_s4 + $0x110] sm:$0xff]  }
  0x48   :  { %2908 = vmatpush3.bf16.msra.mxu1 %v3105_v17  ;;  %2877 = vmatprep.subr.bf16.mxu0 %v3108_v16  ;;  %4295 = vst [vmem:[#allocation14_spill] sm:$0xff] %v3710_v50  ;;  %v93_v17 = vunpack.c.l.bf16 %v57_v40  ;;  %v1269_v40 = vrot.slane %v166_v53, 1  ;;  %v165_v21 = vunpack.c.l.bf16 %v133_v6  ;;  %v676_v6 = vpack.c.bf16 %v3710_v50, %v3693_v35  ;;  %v137_v59 = vld [vmem:[%s4264_s2 + $0x14] sm:$0x1]  ;;  %v3791_v35 = vld [vmem:[%s4264_s2 + $0x80] sm:$0xf] }
  0x49   :  { %2909 = vmatprep.subr.bf16.mxu1 %v3109_v49  ;;  %v3121_v47 = vld [vmem:[%s4261_s4 + $0x148] sm:$0xff]  }
  0x4a   :  { %2830 = vmatmul.mubr.bf16.gmra.mxu0 %v673_v62  ;;  %v3738_v62 = vld [vmem:[%s4264_s2 + $0x60] sm:$0xf]  ;;  %v1267_v50 = vrot.slane %v165_v21, 1  ;;  %v169_v21 = vunpack.c.l.bf16 %v137_v59 }
  0x4b   :  { %2862 = vmatmul.mubr.bf16.gmra.mxu1 %v2349_v48  ;;  %2878 = vmatpush3.bf16.msra.mxu0 %v3108_v16  ;;  %v3115_v48 = vld [vmem:[%s4261_s4 + $0x158] sm:$0xff]   ;;  %v652_v16 = vrot.slane %v93_v17, 1  ;;  %v2351_v53 = vcombine.low %v3727_v52, %v3738_v62  ;;  %v3766_v17 = vld [vmem:[%s4264_s2 + $0x70] sm:$0xf] }
  0x4c   :  { %2910 = vmatpush3.bf16.msra.mxu1 %v3109_v49  ;;  %2879 = vmatprep.subr.bf16.mxu0 %v3110_v39  ;;  %v675_v49 = vpack.c.bf16 %v3690_v7, %v3641_v28  ;;  %v1270_v7 = vrot.slane %v167_v54, 1  ;;  %v3120_v54 = vld [vmem:[%s4261_s4 + $0x108] sm:$0xff]   ;;  %v176_v28 = vunpack.c.l.bf16 %v3661_v14 }
  0x4d   :  { %2911 = vmatprep.subr.bf16.mxu1 %v3111_v10  ;;  %2833 = vmatprep.mubr.bf16.mxu0 %v674_v15  ;;  %v3761_v15 = vld [vmem:[%s4264_s2 + $0x68] sm:$0xf] }
  0x4e   :  { %2865 = vmatprep.mubr.bf16.mxu1 %v2350_v46  ;;  %v170_v46 = vunpack.c.l.bf16 %v3596_v55  ;;  %v2352_v55 = vcombine.low %v3761_v15, %v3766_v17  ;;  %v1271_v14 = vsel %vm605_vm0, %v1269_v40, %v1270_v7  ;;  %v1273_v7 = vrot.slane %v169_v21, 1 }
  0x4f   :  { %2880 = vmatpush3.bf16.msra.mxu0 %v3110_v39  ;;  %v172_v39 = vunpack.c.l.bf16 %v3612_v38  ;;  %v3786_v38 = vld [vmem:[%s4264_s2 + $0x78] sm:$0xf]  ;;  %v1281_v40 = vrot.slane %v174_v51, 1  ;;  %v151_v51 = vld [vmem:[%s4264_s2 + $0x54] sm:$0x1] }
  0x50   :  { %2912 = vmatpush3.bf16.msra.mxu1 %v3111_v10  ;;  %2881 = vmatprep.subr.bf16.mxu0 %v3114_v4  ;;  %v3781_v10 = vsel %vm605_vm0, %v651_v37, %v652_v16  ;;  %v143_v37 = vld [vmem:[%s4264_s2 + $0x2c] sm:$0x1]  ;;  %v1275_v16 = vrot.slane %v170_v46, 1  ;;  %v2353_v59 = vcombine.low %v3786_v38, %v3791_v35 }
  0x51   :  { %2913 = vmatprep.subr.bf16.mxu1 %v3115_v48  ;;  %4297 = vst [vmem:[#allocation16_spill] sm:$0xff] %v3781_v10  ;;  %v677_v46 = vpack.c.bf16 %v3781_v10, %v3713_v63  ;;  %v175_v30 = vunpack.c.l.bf16 %v143_v37  ;;  %v180_v10 = vunpack.c.l.bf16 %v3683_v11  ;;  %v1287_v37 = vrot.slane %v178_v23, 1  ;;  %v3124_v63 = vld [vmem:[%s4265_s3] ss:$8 sps:$4 sm:$0xff]   ;;  %v149_v23 = vld [vmem:[%s4264_s2 + $0x4c] sm:$0x1] }
  0x52   :  { %2834 = vmatmul.mubr.bf16.gmra.mxu0 %v675_v49  ;;  %v141_v49 = vld [vmem:[%s4264_s2 + $0x24] sm:$0x1] }
  0x53   :  { %2866 = vmatmul.mubr.bf16.gmra.mxu1 %v2351_v53  ;;  %2882 = vmatpush3.bf16.msra.mxu0 %v3114_v4  ;;  %v171_v4 = vunpack.c.l.bf16 %v139_v19  ;;  %v1278_v53 = vrot.slane %v172_v39, 1  ;;  %v1268_v19 = vsel %vm605_vm0, %v1266_v22, %v1267_v50  ;;  %v173_v39 = vunpack.c.l.bf16 %v141_v49 }
  0x54   :  { %2914 = vmatpush3.bf16.msra.mxu1 %v3115_v48  ;;  %2883 = vmatprep.subr.bf16.mxu0 %v3116_v31  ;;  %v3122_v48 = vld [vmem:[%s4261_s4 + $0x100] sm:$0xff]   ;;  %v182_v50 = vunpack.c.l.bf16 %v3700_v3  ;;  %v1284_v49 = vrot.slane %v176_v28, 1  ;;  %v1330_v33 = vpack.c.bf16 %v1271_v14, %v1268_v19  ;;  %v1282_v3 = vrot.slane %v175_v30, 1  ;;  %v3126_v19 = vld [vmem:[%s4261_s4 + $0x1b8] sm:$0xff]  }
  0x55   :  { %2915 = vmatprep.subr.bf16.mxu1 %v3117_v9  ;;  %2837 = vmatprep.mubr.bf16.mxu0 %v676_v6  ;;  %v145_v6 = vld [vmem:[%s4264_s2 + $0x34] sm:$0x1]  ;;  %v1276_v22 = vrot.slane %v171_v4, 1  ;;  %v1279_v11 = vrot.slane %v173_v39, 1  ;;  %v1290_v28 = vrot.slane %v180_v10, 1  ;;  %v3127_v10 = vld [vmem:[%s4261_s4 + $0x1f8] sm:$0xff]   ;;  %v183_v30 = vunpack.c.l.bf16 %v151_v51 }
  0x56   :  { %2869 = vmatprep.mubr.bf16.mxu1 %v2352_v55  ;;  %v147_v55 = vld [vmem:[%s4264_s2 + $0x3c] sm:$0x1]  ;;  %v1293_v21 = vrot.slane %v182_v50, 1  ;;  %v3125_v4 = vld [vmem:[%s4265_s3 + $0x10] ss:$8 sps:$4 sm:$0xff]  }
  0x57   :  { %2884 = vmatpush3.bf16.msra.mxu0 %v3116_v31  ;;  %v3123_v31 = vld [vmem:[%s4261_s4 + $0x140] sm:$0xff]   ;;  %v179_v42 = vunpack.c.l.bf16 %v147_v55  ;;  %v1283_v55 = vsel %vm605_vm0, %v1281_v40, %v1282_v3  ;;  %v1294_v40 = vrot.slane %v183_v30, 1 }
  0x58   :  { %2916 = vmatpush3.bf16.msra.mxu1 %v3117_v9  ;;  %2885 = vmatprep.subr.bf16.mxu0 %v3120_v54  ;;  %v177_v9 = vunpack.c.l.bf16 %v145_v6  ;;  %v3129_v6 = vld [vmem:[%s4261_s4 + $0x1f0] sm:$0xff]  }
  0x59   :  { %2917 = vmatprep.subr.bf16.mxu1 %v3121_v47  ;;  %v1288_v39 = vrot.slane %v179_v42, 1  ;;  %v153_v42 = vld [vmem:[%s4264_s2 + $0x5c] sm:$0x1] }
  0x5a   :  { %2838 = vmatmul.mubr.bf16.gmra.mxu0 %v677_v46  ;;  %v1274_v46 = vsel %vm605_vm0, %v3743_v8, %v1273_v7  ;;  %v1285_v14 = vrot.slane %v177_v9, 1  ;;  %v181_v8 = vunpack.c.l.bf16 %v149_v23  ;;  %v3132_v7 = vld [vmem:[%s4261_s4 + $0x1a8] sm:$0xff]   ;;  %v185_v3 = vunpack.c.l.bf16 %v153_v42  ;;  %v159_v23 = vld [vmem:[%s4264_s2 + $0x74] sm:$0x1] }
  0x5b   :  { %2870 = vmatmul.mubr.bf16.gmra.mxu1 %v2353_v59  ;;  %2886 = vmatpush3.bf16.msra.mxu0 %v3120_v54  ;;  %v1277_v54 = vsel %vm605_vm0, %v1275_v16, %v1276_v22  ;;  %v1280_v59 = vsel %vm605_vm0, %v1278_v53, %v1279_v11  ;;  %v186_v53 = vunpack.c.l.bf16 %v3738_v62  ;;  %v157_v11 = vld [vmem:[%s4264_s2 + $0x6c] sm:$0x1]  ;;  %v3131_v62 = vld [vmem:[%s4265_s3 + $0x30] ss:$8 sps:$4 sm:$0xff]   ;;  %v191_v30 = vunpack.c.l.bf16 %v159_v23 }
  0x5c   :  { %2918 = vmatpush3.bf16.msra.mxu1 %v3121_v47  ;;  %2887 = vmatprep.subr.bf16.mxu0 %v3122_v48  ;;  %v3128_v47 = vld [vmem:[%s4261_s4 + $0x1b0] sm:$0xff]   ;;  %v1331_v16 = vpack.c.bf16 %v1277_v54, %v1274_v46  ;;  %v1332_v50 = vpack.c.bf16 %v1283_v55, %v1280_v59  ;;  %v1291_v22 = vrot.slane %v181_v8, 1  ;;  %v190_v46 = vunpack.c.l.bf16 %v3766_v17 }
  0x5d   :  { %2919 = vmatprep.subr.bf16.mxu1 %v3123_v31  ;;  %2889 = vmatprep.mubr.bf16.mxu0 %v3124_v63  ;;  %v184_v63 = vunpack.c.l.bf16 %v3727_v52  ;;  %v1289_v52 = vsel %vm605_vm0, %v1287_v37, %v1288_v39  ;;  %v1299_v37 = vrot.slane %v186_v53, 1  ;;  %v1295_v39 = vsel %vm605_vm0, %v1293_v21, %v1294_v40 }
  0x5e   :  { %2921 = vmatprep.mubr.bf16.mxu1 %v1330_v33  ;;  %v3130_v33 = vld [vmem:[%s4265_s3 + $0x20] ss:$8 sps:$4 sm:$0xff]   ;;  %v189_v8 = vunpack.c.l.bf16 %v157_v11  ;;  %v1305_v59 = vrot.slane %v190_v46, 1  ;;  %v192_v55 = vunpack.c.l.bf16 %v3786_v38 }
  0x5f   :  { %2888 = vmatpush3.bf16.msra.mxu0 %v3122_v48  ;;  %v155_v48 = vld [vmem:[%s4264_s2 + $0x64] sm:$0x1]  ;;  %v1296_v51 = vrot.slane %v184_v63, 1  ;;  %v1306_v63 = vrot.slane %v191_v30, 1  ;;  %v3137_v38 = vld [vmem:[%s4265_s3 + $0x58] ss:$8 sps:$4 sm:$0xff]  }
  0x60   :  { %2920 = vmatpush3.bf16.msra.mxu1 %v3123_v31  ;;  %2937 = vmatprep.subr.bf16.mxu0 %v3126_v19  ;;  %v1286_v31 = vsel %vm605_vm0, %v1284_v49, %v1285_v14  ;;  %v187_v9 = vunpack.c.l.bf16 %v155_v48  ;;  %v3133_v49 = vld [vmem:[%s4261_s4 + $0x1e8] sm:$0xff]   ;;  %v1292_v14 = vsel %vm605_vm0, %v1290_v28, %v1291_v22  ;;  %v163_v28 = vld [vmem:[%s4264_s2 + $0x84] sm:$0x1]  ;;  %v1303_v42 = vrot.slane %v189_v8, 1  ;;  %v3149_v30 = vld [vmem:[%s4261_s4 + $0x238] sm:$0xff]  }
  0x61   :  { %2969 = vmatprep.subr.bf16.mxu1 %v3127_v10  ;;  %v1333_v54 = vpack.c.bf16 %v1289_v52, %v1286_v31  ;;  %v195_v40 = vunpack.c.l.bf16 %v163_v28  ;;  %v1307_v11 = vsel %vm605_vm0, %v1305_v59, %v1306_v63  ;;  %v3147_v8 = vld [vmem:[%s4261_s4 + $0x1c0] sm:$0xff]   ;;  %v3170_v28 = vld [vmem:[%s4262_s1 + $0x38] sm:$0xf]  ;;  %v3162_v59 = vld [vmem:[%s4261_s4 + $0x210] sm:$0xff]  }
  0x62   :  { %2890 = vmatmul.mubr.bf16.vlgmr.msra.gmra.mxu0 %v3125_v4  ;;  %v188_v4 = vunpack.c.l.bf16 %v3761_v15  ;;  %v1297_v15 = vrot.slane %v185_v3, 1  ;;  %v1300_v17 = vrot.slane %v187_v9, 1  ;;  %v3140_v3 = vld [vmem:[%s4261_s4 + $0x190] sm:$0xff]   ;;  %v4311_v63 = vld [vmem:[#allocation3_spill] sm:$0xff] }
  0x63   :  { %2922 = vmatmul.mubr.bf16.vlgmr.msra.gmra.mxu1 %v1331_v16  ;;  %2938 = vmatpush3.bf16.msra.mxu0 %v3126_v19  ;;  %v3134_v19 = vld [vmem:[%s4261_s4 + $0x1a0] sm:$0xff]   ;;  %v3136_v16 = vld [vmem:[%s4265_s3 + $0x48] ss:$8 sps:$4 sm:$0xff]   ;;  %v1312_v23 = vrot.slane %v195_v40, 1 }
  0x64   :  { %2970 = vmatpush3.bf16.msra.mxu1 %v3127_v10  ;;  %2939 = vmatprep.subr.bf16.mxu0 %v3128_v47  ;;  %v3135_v10 = vld [vmem:[%s4261_s4 + $0x1e0] sm:$0xff]   ;;  %v1302_v21 = vrot.slane %v188_v4, 1  ;;  %v1298_v48 = vsel %vm605_vm0, %v1296_v51, %v1297_v15  ;;  %v1301_v53 = vsel %vm605_vm0, %v1299_v37, %v1300_v17  ;;  %v3141_v51 = vld [vmem:[%s4261_s4 + $0x1d0] sm:$0xff]   ;;  %v4298_v15 = vcombine.low %v3266_v18, %v3273_v20  ;;  %v3155_v20 = vld [vmem:[%s4261_s4 + $0x228] sm:$0xff]  }
  0x65   :  { %2971 = vmatprep.subr.bf16.mxu1 %v3129_v6  ;;  %2893 = vmatprep.mubr.bf16.mxu0 %v3130_v33  ;;  %v194_v33 = vunpack.c.l.bf16 %v3791_v35  ;;  %v3139_v35 = vld [vmem:[%s4261_s4 + $0x1d8] sm:$0xff]   ;;  %v1335_v31 = vpack.c.bf16 %v1301_v53, %v1298_v48  ;;  %v4299_v17 = vcombine.low %v3245_v12, %v3250_v13  ;;  %v4301_v18 = vcombine.low %v3286_v24, %v3296_v26  ;;  %v3966_v12 = vld [vmem:[%s4263_s0 + $0x40] sm:$0xf] }
  0x66   :  { %2925 = vmatprep.mubr.bf16.mxu1 %v1332_v50  ;;  %v3138_v50 = vld [vmem:[%s4261_s4 + $0x198] sm:$0xff]   ;;  %v1304_v52 = vsel %vm605_vm0, %v1302_v21, %v1303_v42  ;;  %v104_v13 = vld [vmem:[%s4262_s1 + $0x40] sm:$0xf]  ;;  %v4302_v24 = vcombine.low %v3326_v34, %v3333_v36  ;;  %v4305_v36 = vcombine.low %v3348_v41, %v3360_v44  ;;  %v58_v41 = vld [vmem:[%s4263_s0 + $0x88] sm:$0xf] }
  0x67   :  { %2940 = vmatpush3.bf16.msra.mxu0 %v3128_v47  ;;  %v161_v47 = vld [vmem:[%s4264_s2 + $0x7c] sm:$0x1]  ;;  %v1336_v37 = vpack.c.bf16 %v1307_v11, %v1304_v52  ;;  %v3169_v26 = vld [vmem:[%s4263_s0 + $0x38] sm:$0xf]  ;;  %v2469_v21 = vcombine.low %v3170_v28, %v104_v13  ;;  %v3156_v34 = vld [vmem:[%s4261_s4 + $0x220] sm:$0xff]  }
  0x68   :  { %2972 = vmatpush3.bf16.msra.mxu1 %v3129_v6  ;;  %2941 = vmatprep.subr.bf16.mxu0 %v3132_v7  ;;  %v1334_v6 = vpack.c.bf16 %v1295_v39, %v1292_v14  ;;  %v193_v22 = vunpack.c.l.bf16 %v161_v47  ;;  %v3146_v39 = vld [vmem:[%s4261_s4 + $0x180] sm:$0xff]   ;;  %v4300_v47 = vcombine.low %v3291_v25, %v3301_v27  ;;  %v4303_v25 = vcombine.low %v3309_v29, %v3318_v32  ;;  %v3161_v29 = vld [vmem:[%s4261_s4 + $0x218] sm:$0xff]   ;;  %v113_v44 = vld [vmem:[%s4262_s1 + $0x88] sm:$0xf] }
  0x69   :  { %2973 = vmatprep.subr.bf16.mxu1 %v3133_v49  ;;  %v2437_v27 = vcombine.low %v3169_v26, %v3966_v12  ;;  %v4304_v32 = vcombine.low %v3355_v43, %v3365_v45  ;;  %v4307_v43 = vcombine.low %v3401_v57, %v3406_v58  ;;  %v3167_v45 = vld [vmem:[%s4261_s4 + $0x208] sm:$0xff]   ;;  %v4308_v57 = vcombine.low %v3434_v1, %v3448_v5  ;;  %v41_v1 = vld [vmem:[%s4263_s0 + $0x44] sm:$0x1]  ;;  %v4318_v11 = vld [vmem:[#allocation5_spill] sm:$0xff] }
  0x6a   :  { %2894 = vmatmul.mubr.bf16.gmra.mxu0 %v3131_v62  ;;  %v1311_v62 = vrot.slane %v194_v33, 1  ;;  %v1309_v9 = vrot.slane %v193_v22, 1  ;;  %v4309_v58 = vcombine.low %v3429_v0, %v3439_v2  ;;  %v3168_v33 = vld [vmem:[%s4261_s4 + $0x200] sm:$0xff]   ;;  %v59_v0 = vld [vmem:[%s4263_s0 + $0x8c] sm:$0x1]  ;;  %v76_v2 = vunpack.c.l.bf16 %v3966_v12  ;;  %v4315_v22 = vld [vmem:[#allocation9_spill] sm:$0xff] }
  0x6b   :  { %2926 = vmatmul.mubr.bf16.gmra.mxu1 %v1333_v54  ;;  %2942 = vmatpush3.bf16.msra.mxu0 %v3132_v7  ;;  %v1308_v7 = vrot.slane %v192_v55, 1  ;;  %v3144_v54 = vld [vmem:[%s4261_s4 + $0x188] sm:$0xff]   ;;  %v77_v5 = vunpack.c.l.bf16 %v41_v1  ;;  %v95_v42 = vunpack.c.l.bf16 %v59_v0  ;;  %v4312_v48 = vld [vmem:[#allocation2_spill] sm:$0xff] }
  0x6c   :  { %2974 = vmatpush3.bf16.msra.mxu1 %v3133_v49  ;;  %2943 = vmatprep.subr.bf16.mxu0 %v3134_v19  ;;  %v3142_v49 = vld [vmem:[%s4265_s3 + $0x68] ss:$8 sps:$4 sm:$0xff]   ;;  %v1313_v46 = vsel %vm605_vm0, %v1311_v62, %v1312_v23  ;;  %v4313_v53 = vpack.c.bf16 %v4311_v63, %v4312_v48  ;;  %v4317_v52 = vld [vmem:[#allocation6_spill] sm:$0xff] }
  0x6d   :  { %2975 = vmatprep.subr.bf16.mxu1 %v3135_v10  ;;  %2897 = vmatprep.mubr.bf16.mxu0 %v3136_v16  ;;  %v1310_v4 = vsel %vm605_vm0, %v1308_v7, %v1309_v9  ;;  %v3150_v16 = vld [vmem:[%s4261_s4 + $0x230] sm:$0xff]   ;;  %v4319_v62 = vpack.c.bf16 %v4317_v52, %v4318_v11 }
  0x6e   :  { %2929 = vmatprep.mubr.bf16.mxu1 %v1334_v6  ;;  %v1337_v14 = vpack.c.bf16 %v1313_v46, %v1310_v4  ;;  %v4306_v6 = vcombine.low %v3416_v60, %v3421_v61  ;;  %v2441_v60 = vcombine.low %v3526_v56, %v58_v41  ;;  %v4310_v61 = vld [vmem:[#allocation4_spill] sm:$0xff]  ;;  %v94_v56 = vunpack.c.l.bf16 %v58_v41  ;;  %v4326_v46 = vld [vmem:[#allocation15_spill] sm:$0xff] }
  0x6f   :  { %2944 = vmatpush3.bf16.msra.mxu0 %v3134_v19  ;;  %v3145_v19 = vld [vmem:[%s4261_s4 + $0x1c8] sm:$0xff]   ;;  %v2473_v55 = vcombine.low %v4310_v61, %v113_v44  ;;  %v4321_v9 = vld [vmem:[#allocation12_spill] sm:$0xff] }
  0x70   :  { %2976 = vmatpush3.bf16.msra.mxu1 %v3135_v10  ;;  %2945 = vmatprep.subr.bf16.mxu0 %v3138_v50  ;;  %v3143_v10 = vld [vmem:[%s4265_s3 + $0x78] ss:$8 sps:$4 sm:$0xff]   ;;  %v1901_v7 = vrot.slane %v94_v56, 1 }
  0x71   :  { %2977 = vmatprep.subr.bf16.mxu1 %v3139_v35 }
  0x72   :  { %2898 = vmatmul.mubr.bf16.gmra.mxu0 %v3137_v38  ;;  %v1899_v38 = vrot.slane %v77_v5, 1 }
  0x73   :  { %2930 = vmatmul.mubr.bf16.gmra.mxu1 %v1335_v31  ;;  %2946 = vmatpush3.bf16.msra.mxu0 %v3138_v50  ;;  %v4314_v50 = vld [vmem:[#allocation10_spill] sm:$0xff]  ;;  %v1902_v31 = vrot.slane %v95_v42, 1 }
  0x74   :  { %2978 = vmatpush3.bf16.msra.mxu1 %v3139_v35  ;;  %2947 = vmatprep.subr.bf16.mxu0 %v3140_v3  ;;  %v4316_v40 = vpack.c.bf16 %v4314_v50, %v4315_v22  ;;  %v1898_v35 = vrot.slane %v76_v2, 1 }
  0x75   :  { %2979 = vmatprep.subr.bf16.mxu1 %v3141_v51  ;;  %2901 = vmatprep.mubr.bf16.mxu0 %v3142_v49  ;;  %v4324_v49 = vld [vmem:[#allocation7_spill] sm:$0xff] }
  0x76   :  { %2933 = vmatprep.mubr.bf16.mxu1 %v1336_v37  ;;  %v1900_v4 = vsel %vm605_vm0, %v1898_v35, %v1899_v38 }
  0x77   :  { %2948 = vmatpush3.bf16.msra.mxu0 %v3140_v3  ;;  %v4320_v3 = vld [vmem:[#allocation13_spill] sm:$0xff] }
  0x78   :  { %2980 = vmatpush3.bf16.msra.mxu1 %v3141_v51  ;;  %2949 = vmatprep.subr.bf16.mxu0 %v3144_v54  ;;  %v4322_v23 = vpack.c.bf16 %v4320_v3, %v4321_v9  ;;  %v4323_v51 = vld [vmem:[#allocation8_spill] sm:$0xff] }
  0x79   :  { %2981 = vmatprep.subr.bf16.mxu1 %v3145_v19  ;;  %v4325_v37 = vpack.c.bf16 %v4323_v51, %v4324_v49 }
  0x7a   :  { %2902 = vmatmul.mubr.bf16.gmra.mxu0 %v3143_v10  ;;  %v1903_v10 = vsel %vm605_vm0, %v1901_v7, %v1902_v31 }
  0x7b   :  { %2934 = vmatmul.mubr.bf16.gmra.mxu1 %v1337_v14  ;;  %2950 = vmatpush3.bf16.msra.mxu0 %v3144_v54  ;;  %v4327_v54 = vld [vmem:[#allocation14_spill] sm:$0xff]  ;;  %v4329_v14 = vld [vmem:[#allocation11_spill] sm:$0xff] }
  0x7c   :  { %2982 = vmatpush3.bf16.msra.mxu1 %v3145_v19  ;;  %2951 = vmatprep.subr.bf16.mxu0 %v3146_v39  ;;  %v4328_v19 = vpack.c.bf16 %v4326_v46, %v4327_v54 }
  0x7d   :  { %2983 = vmatprep.subr.bf16.mxu1 %v3147_v8  ;;  %2953 = vmatprep.mubr.bf16.mxu0 %v4298_v15 }
  0x7e   :  { %2985 = vmatprep.mubr.bf16.mxu1 %v4299_v17 }
  0x7f   :  { %2952 = vmatpush3.bf16.msra.mxu0 %v3146_v39  ;;  %v1909_v39 = vpack.c.bf16 %v1900_v4, %v4329_v14 }
  0x80   :  { %2984 = vmatpush3.bf16.msra.mxu1 %v3147_v8  ;;  %3001 = vmatprep.subr.bf16.mxu0 %v3149_v30  ;;  %v4330_v8 = vld [vmem:[#allocation16_spill] sm:$0xff] }
  0x81   :  { %3033 = vmatprep.subr.bf16.mxu1 %v3149_v30 }
  0x82   :  { %2954 = vmatmul.mubr.bf16.vlgmr.msra.gmra.mxu0 %v4300_v47 }
  0x83   :  { %2986 = vmatmul.mubr.bf16.vlgmr.msra.gmra.mxu1 %v4301_v18  ;;  %3002 = vmatpush3.bf16.msra.mxu0 %v3149_v30 }
  0x84   :  { %3041 = vmatpush3.bf16.msra.mxu1 %v3149_v30  ;;  %3003 = vmatprep.subr.bf16.mxu0 %v3150_v16  ;;  %v1913_v30 = vpack.c.bf16 %v1903_v10, %v4330_v8 }
  0x85   :  { %3034 = vmatprep.subr.bf16.mxu1 %v3150_v16  ;;  %2957 = vmatprep.mubr.bf16.mxu0 %v4302_v24 }
  0x86   :  { %2989 = vmatprep.mubr.bf16.mxu1 %v4303_v25 }
  0x87   :  { %3004 = vmatpush3.bf16.msra.mxu0 %v3150_v16 }
  0x88   :  { %3042 = vmatpush3.bf16.msra.mxu1 %v3150_v16  ;;  %3005 = vmatprep.subr.bf16.mxu0 %v3155_v20 }
  0x89   :  { %3035 = vmatprep.subr.bf16.mxu1 %v3155_v20 }
  0x8a   :  { %2958 = vmatmul.mubr.bf16.gmra.mxu0 %v2437_v27 }
  0x8b   :  { %2990 = vmatmul.mubr.bf16.gmra.mxu1 %v2469_v21  ;;  %3006 = vmatpush3.bf16.msra.mxu0 %v3155_v20 }
  0x8c   :  { %3043 = vmatpush3.bf16.msra.mxu1 %v3155_v20  ;;  %3007 = vmatprep.subr.bf16.mxu0 %v3156_v34 }
  0x8d   :  { %3036 = vmatprep.subr.bf16.mxu1 %v3156_v34  ;;  %2961 = vmatprep.mubr.bf16.mxu0 %v4304_v32 }
  0x8e   :  { %2993 = vmatprep.mubr.bf16.mxu1 %v4305_v36 }
  0x8f   :  { %3008 = vmatpush3.bf16.msra.mxu0 %v3156_v34 }
  0x90   :  { %3044 = vmatpush3.bf16.msra.mxu1 %v3156_v34  ;;  %3009 = vmatprep.subr.bf16.mxu0 %v3161_v29 }
  0x91   :  { %3037 = vmatprep.subr.bf16.mxu1 %v3161_v29 }
  0x92   :  { %2962 = vmatmul.mubr.bf16.gmra.mxu0 %v4306_v6 }
  0x93   :  { %2994 = vmatmul.mubr.bf16.gmra.mxu1 %v4307_v43  ;;  %3010 = vmatpush3.bf16.msra.mxu0 %v3161_v29 }
  0x94   :  { %3045 = vmatpush3.bf16.msra.mxu1 %v3161_v29  ;;  %3011 = vmatprep.subr.bf16.mxu0 %v3162_v59 }
  0x95   :  { %3038 = vmatprep.subr.bf16.mxu1 %v3162_v59  ;;  %2965 = vmatprep.mubr.bf16.mxu0 %v4308_v57 }
  0x96   :  { %2997 = vmatprep.mubr.bf16.mxu1 %v4309_v58 }
  0x97   :  { %3012 = vmatpush3.bf16.msra.mxu0 %v3162_v59 }
  0x98   :  { %3046 = vmatpush3.bf16.msra.mxu1 %v3162_v59  ;;  %3013 = vmatprep.subr.bf16.mxu0 %v3167_v45 }
  0x99   :  { %3039 = vmatprep.subr.bf16.mxu1 %v3167_v45 }
  0x9a   :  { %2966 = vmatmul.mubr.bf16.gmra.mxu0 %v2441_v60 }
  0x9b   :  { %2998 = vmatmul.mubr.bf16.gmra.mxu1 %v2473_v55  ;;  %3014 = vmatpush3.bf16.msra.mxu0 %v3167_v45 }
  0x9c   :  { %3047 = vmatpush3.bf16.msra.mxu1 %v3167_v45  ;;  %3015 = vmatprep.subr.bf16.mxu0 %v3168_v33 }
  0x9d   :  { %3040 = vmatprep.subr.bf16.mxu1 %v3168_v33  ;;  %3017 = vmatprep.mubr.bf16.mxu0 %v4313_v53 }
  0x9e   :  { %3025 = vmatprep.mubr.bf16.mxu1 %v4316_v40 }
  0x9f   :  { %3016 = vmatpush3.bf16.msra.mxu0 %v3168_v33 }
  0xa0   :  { %3048 = vmatpush3.bf16.msra.mxu1 %v3168_v33 }
  0xa2   :  { %3018 = vmatmul.mubr.bf16.vlgmr.msra.gmra.mxu0 %v4319_v62 }
  0xa3   :  { %3026 = vmatmul.mubr.bf16.vlgmr.msra.gmra.mxu1 %v4322_v23  ;;  %3021 = vmatprep.mubr.bf16.mxu0 %v4325_v37 }
  0xa4   :  { %3029 = vmatprep.mubr.bf16.mxu1 %v4328_v19 }
  0xaa   :  { %3022 = vmatmul.mubr.bf16.gmra.mxu0 %v1909_v39 }
  0xab   :  { %3030 = vmatmul.mubr.bf16.gmra.mxu1 %v1913_v30 }
  0xe2   :  { %v2763_v15 = vpop.f32.mrf.mxu0 }
  0xe3   :  { %v2795_v17 = vpop.f32.mrf.mxu1 }
  0xe4   :  { %v519_v16 = vadd.f32 %v2795_v17, %v2763_v15  ;;  %v365_v47 = vpop.f32.mrf.mxu0 }
  0xe5   :  { %v510_v18 = vpop.f32.mrf.mxu1 }
  0xe6   :  { %v511_v12 = vadd.f32 %v510_v18, %v365_v47  ;;  %v2764_v13 = vpop.f32.mrf.mxu0 }
  0xe7   :  { %v2796_v20 = vpop.f32.mrf.mxu1 }
  0xe8   :  { %v522_v24 = vadd.f32 %v2796_v20, %v2764_v13  ;;  %v368_v25 = vpop.f32.mrf.mxu0 }
  0xe9   :  { %v513_v26 = vpop.f32.mrf.mxu1 }
  0xea   :  { %v514_v27 = vadd.f32 %v513_v26, %v368_v25  ;;  %v2767_v28 = vpop.f32.mrf.mxu0 }
  0xeb   :  { %v2799_v21 = vpop.f32.mrf.mxu1 }
  0xec   :  { %v535_v34 = vadd.f32 %v2799_v21, %v2767_v28  ;;  %v381_v29 = vpop.f32.mrf.mxu0 }
  0xed   :  { %v526_v32 = vpop.f32.mrf.mxu1 }
  0xee   :  { %v527_v36 = vadd.f32 %v526_v32, %v381_v29  ;;  %v2768_v59 = vpop.f32.mrf.mxu0 }
  0xef   :  { %v2800_v6 = vpop.f32.mrf.mxu1 }
  0xf0   :  { %v538_v43 = vadd.f32 %v2800_v6, %v2768_v59  ;;  %v384_v41 = vpop.f32.mrf.mxu0 }
  0xf1   :  { %v529_v44 = vpop.f32.mrf.mxu1 }
  0xf2   :  { %v530_v45 = vadd.f32 %v529_v44, %v384_v41  ;;  %v2771_v57 = vpop.f32.mrf.mxu0 }
  0xf3   :  { %v2803_v58 = vpop.f32.mrf.mxu1 }
  0xf4   :  { %v551_v60 = vadd.f32 %v2803_v58, %v2771_v57  ;;  %v397_v61 = vpop.f32.mrf.mxu0 }
  0xf5   :  { %v542_v55 = vpop.f32.mrf.mxu1 }
  0xf6   :  { %v543_v33 = vadd.f32 %v542_v55, %v397_v61  ;;  %v2772_v1 = vpop.f32.mrf.mxu0 }
  0xf7   :  { %v2804_v0 = vpop.f32.mrf.mxu1 }
  0xf8   :  { %v554_v2 = vadd.f32 %v2804_v0, %v2772_v1  ;;  %v400_v5 = vpop.f32.mrf.mxu0 }
  0xf9   :  { %v545_v56 = vpop.f32.mrf.mxu1 }
  0xfa   :  { %v546_v42 = vadd.f32 %v545_v56, %v400_v5  ;;  %v2775_v63 = vpop.f32.mrf.mxu0 }
  0xfb   :  { %v2807_v48 = vpop.f32.mrf.mxu1 }
  0xfc   :  { %v567_v53 = vadd.f32 %v2807_v48, %v2775_v63  ;;  %v413_v50 = vpop.f32.mrf.mxu0 }
  0xfd   :  { %v558_v22 = vpop.f32.mrf.mxu1 }
  0xfe   :  { %v559_v40 = vadd.f32 %v558_v22, %v413_v50  ;;  %v2776_v35 = vpop.f32.mrf.mxu0 }
  0xff   :  { %v2808_v38 = vpop.f32.mrf.mxu1 }
 0x100   :  { %v570_v7 = vadd.f32 %v2808_v38, %v2776_v35  ;;  %v416_v31 = vpop.f32.mrf.mxu0 }
 0x101   :  { %v561_v52 = vpop.f32.mrf.mxu1 }
 0x102   :  { %v562_v11 = vadd.f32 %v561_v52, %v416_v31  ;;  %v2827_v62 = vpop.f32.mrf.mxu0 }
 0x103   :  { %v844_v3 = vadd.f32 %v2827_v62, %v519_v16  ;;  %v2859_v9 = vpop.f32.mrf.mxu1 }
 0x104   :  { %v779_v23 = vpop.f32.mrf.mxu0 }
 0x105   :  { %v4057_v51 = vadd.f32 %v2859_v9, %v844_v3  ;;  %v842_v49 = vadd.f32 %v779_v23, %v511_v12  ;;  %v967_v37 = vpop.f32.mrf.mxu1 }
 0x106   :  { %v2828_v4 = vpop.f32.mrf.mxu0 }
 0x107   :  { %v4059_v46 = vadd.f32 %v967_v37, %v842_v49  ;;  %v845_v54 = vadd.f32 %v2828_v4, %v522_v24  ;;  %v2860_v19 = vpop.f32.mrf.mxu1 }
 0x108   :  { %v782_v10 = vpop.f32.mrf.mxu0 }
 0x109   :  { %v4061_v14 = vadd.f32 %v2860_v19, %v845_v54  ;;  %v843_v39 = vadd.f32 %v782_v10, %v514_v27  ;;  %v970_v8 = vpop.f32.mrf.mxu1 }
 0x10a   :  { %v2831_v30 = vpop.f32.mrf.mxu0 }
 0x10b   :  { %v4063_v15 = vadd.f32 %v970_v8, %v843_v39  ;;  %v848_v17 = vadd.f32 %v2831_v30, %v535_v34  ;;  %v2863_v16 = vpop.f32.mrf.mxu1 }
 0x10c   :  { %v795_v47 = vpop.f32.mrf.mxu0 }
 0x10d   :  { %v4065_v18 = vadd.f32 %v2863_v16, %v848_v17  ;;  %v846_v12 = vadd.f32 %v795_v47, %v527_v36  ;;  %v983_v13 = vpop.f32.mrf.mxu1 }
 0x10e   :  { %v2832_v20 = vpop.f32.mrf.mxu0 }
 0x10f   :  { %v4067_v25 = vadd.f32 %v983_v13, %v846_v12  ;;  %v849_v24 = vadd.f32 %v2832_v20, %v538_v43  ;;  %v2864_v26 = vpop.f32.mrf.mxu1 }
 0x110   :  { %v798_v28 = vpop.f32.mrf.mxu0 }
 0x111   :  { %v4069_v21 = vadd.f32 %v2864_v26, %v849_v24  ;;  %v847_v27 = vadd.f32 %v798_v28, %v530_v45  ;;  %v986_v29 = vpop.f32.mrf.mxu1 }
 0x112   :  { %v2835_v32 = vpop.f32.mrf.mxu0 }
 0x113   :  { %v4071_v59 = vadd.f32 %v986_v29, %v847_v27  ;;  %v852_v34 = vadd.f32 %v2835_v32, %v551_v60  ;;  %v2867_v6 = vpop.f32.mrf.mxu1 }
 0x114   :  { %v811_v41 = vpop.f32.mrf.mxu0 }
 0x115   :  { %v4073_v44 = vadd.f32 %v2867_v6, %v852_v34  ;;  %v850_v36 = vadd.f32 %v811_v41, %v543_v33  ;;  %v999_v57 = vpop.f32.mrf.mxu1 }
 0x116   :  { %v2836_v58 = vpop.f32.mrf.mxu0 }
 0x117   :  { %v4075_v61 = vadd.f32 %v999_v57, %v850_v36  ;;  %v853_v43 = vadd.f32 %v2836_v58, %v554_v2  ;;  %v2868_v55 = vpop.f32.mrf.mxu1 }
 0x118   :  { %v814_v1 = vpop.f32.mrf.mxu0 }
 0x119   :  { %v4077_v0 = vadd.f32 %v2868_v55, %v853_v43  ;;  %v851_v45 = vadd.f32 %v814_v1, %v546_v42  ;;  %v1002_v5 = vpop.f32.mrf.mxu1 }
 0x11a   :  { %v2839_v56 = vpop.f32.mrf.mxu0 }
 0x11b   :  { %v4079_v63 = vadd.f32 %v1002_v5, %v851_v45  ;;  %v856_v60 = vadd.f32 %v2839_v56, %v567_v53  ;;  %v2871_v48 = vpop.f32.mrf.mxu1 }
 0x11c   :  { %v827_v50 = vpop.f32.mrf.mxu0 }
 0x11d   :  { %v4081_v22 = vadd.f32 %v2871_v48, %v856_v60  ;;  %v854_v33 = vadd.f32 %v827_v50, %v559_v40  ;;  %v1015_v35 = vpop.f32.mrf.mxu1 }
 0x11e   :  { %v2840_v38 = vpop.f32.mrf.mxu0 }
 0x11f   :  { %v4083_v31 = vadd.f32 %v1015_v35, %v854_v33  ;;  %v857_v2 = vadd.f32 %v2840_v38, %v570_v7  ;;  %v2872_v52 = vpop.f32.mrf.mxu1 }
 0x120   :  { %v830_v62 = vpop.f32.mrf.mxu0 }
 0x121   :  { %v4085_v3 = vadd.f32 %v2872_v52, %v857_v2  ;;  %v855_v42 = vadd.f32 %v830_v62, %v562_v11  ;;  %v1018_v9 = vpop.f32.mrf.mxu1 }
 0x122   :  { %v2891_v23 = vpop.f32.mrf.mxu0 }
 0x123   :  { %v4087_v49 = vadd.f32 %v1018_v9, %v855_v42  ;;  %v4089_v53 = vpop.f32.mrf.mxu1 }
 0x124   :  { %v1155_v37 = vpop.f32.mrf.mxu0 }
 0x125   :  { %v4091_v4 = vpop.f32.mrf.mxu1 }
 0x126   :  { %v2892_v40 = vpop.f32.mrf.mxu0 }
 0x127   :  { %v4093_v54 = vpop.f32.mrf.mxu1 }
 0x128   :  { %v1158_v19 = vpop.f32.mrf.mxu0 }
 0x129   :  { %v4095_v10 = vpop.f32.mrf.mxu1 }
 0x12a   :  { %v2895_v7 = vpop.f32.mrf.mxu0 }
 0x12b   :  { %v4097_v39 = vpop.f32.mrf.mxu1 }
 0x12c   :  { %v1171_v8 = vpop.f32.mrf.mxu0 }
 0x12d   :  { %v4099_v11 = vpop.f32.mrf.mxu1 }
 0x12e   :  { %v4101_v30 = vpop.f32.mrf.mxu0 }
 0x12f   :  { %v4103_v17 = vpop.f32.mrf.mxu1 }
 0x130   :  { %v4105_v16 = vpop.f32.mrf.mxu0 }
 0x131   :  { %v4107_v47 = vpop.f32.mrf.mxu1 }
 0x132   :  { %4331 = vst [vmem:[#allocation4_spill] sm:$0xff] %v4107_v47  ;;  %v2899_v12 = vpop.f32.mrf.mxu0 }
 0x133   :  { %v2931_v13 = vpop.f32.mrf.mxu1 }
 0x134   :  { %v1187_v20 = vpop.f32.mrf.mxu0 }
 0x135   :  { %v1471_v24 = vpop.f32.mrf.mxu1 }
 0x136   :  { %v2900_v26 = vpop.f32.mrf.mxu0 }
 0x137   :  { %v4109_v28 = vpop.f32.mrf.mxu1 }
 0x138   :  { %v1190_v27 = vpop.f32.mrf.mxu0 }
 0x139   :  { %v1474_v29 = vpop.f32.mrf.mxu1 }
 0x13a   :  { %v2903_v32 = vpop.f32.mrf.mxu0 }
 0x13b   :  { %v4111_v34 = vpop.f32.mrf.mxu1 }
 0x13c   :  { %4332 = vst [vmem:[#allocation3_spill] sm:$0xff] %v4111_v34  ;;  %v1203_v6 = vpop.f32.mrf.mxu0 }
 0x13d   :  { %v4113_v41 = vpop.f32.mrf.mxu1 }
 0x13e   :  { %4333 = vst [vmem:[#allocation2_spill] sm:$0xff] %v4113_v41  ;;  %v2904_v36 = vpop.f32.mrf.mxu0 }
 0x13f   :  { %v4115_v57 = vpop.f32.mrf.mxu1 }
 0x140   :  { %4334 = vst [vmem:[#allocation10_spill] sm:$0xff] %v4115_v57  ;;  %v1206_v58 = vpop.f32.mrf.mxu0 }
 0x141   :  { %v4117_v43 = vpop.f32.mrf.mxu1 }
 0x142   :  { %4335 = vst [vmem:[#allocation9_spill] sm:$0xff] %v4117_v43  ;;  %v2955_v55 = vpop.f32.mrf.mxu0 }
 0x143   :  { %v4119_v1 = vpop.f32.mrf.mxu1 }
 0x144   :  { %4336 = vst [vmem:[#allocation6_spill] sm:$0xff] %v4119_v1  ;;  %v1627_v45 = vpop.f32.mrf.mxu0 }
 0x145   :  { %v4121_v5 = vpop.f32.mrf.mxu1 }
 0x146   :  { %4337 = vst [vmem:[#allocation5_spill] sm:$0xff] %v4121_v5  ;;  %v2956_v56 = vpop.f32.mrf.mxu0 }
 0x147   :  { %v4123_v60 = vpop.f32.mrf.mxu1 }
 0x148   :  { %4338 = vst [vmem:[#allocation13_spill] sm:$0xff] %v4123_v60  ;;  %v1630_v48 = vpop.f32.mrf.mxu0 }
 0x149   :  { %v4125_v50 = vpop.f32.mrf.mxu1 }
 0x14a   :  { %4339 = vst [vmem:[#allocation12_spill] sm:$0xff] %v4125_v50  ;;  %v2959_v33 = vpop.f32.mrf.mxu0 }
 0x14b   :  { %v4127_v35 = vpop.f32.mrf.mxu1 }
 0x14c   :  { %4340 = vst [vmem:[#allocation8_spill] sm:$0xff] %v4127_v35  ;;  %v1643_v38 = vpop.f32.mrf.mxu0 }
 0x14d   :  { %v4129_v2 = vpop.f32.mrf.mxu1 }
 0x14e   :  { %4341 = vst [vmem:[#allocation7_spill] sm:$0xff] %v4129_v2  ;;  %v4131_v52 = vpop.f32.mrf.mxu0  ;;  %v1220_v2 = vadd.f32 %v2891_v23, %v4057_v51  ;;  %v1229_v51 = vadd.f32 %v2900_v26, %v4077_v0  ;;  %v1225_v0 = vadd.f32 %v4101_v30, %v4069_v21 }
 0x14f   :  { %4342 = vst [vmem:[#allocation15_spill] sm:$0xff] %v4131_v52  ;;  %v4133_v62 = vpop.f32.mrf.mxu1  ;;  %v1218_v52 = vadd.f32 %v1155_v37, %v4059_v46  ;;  %v1227_v46 = vadd.f32 %v1190_v27, %v4079_v63  ;;  %v1223_v63 = vadd.f32 %v4105_v16, %v4071_v59 }
 0x150   :  { %4343 = vst [vmem:[#allocation14_spill] sm:$0xff] %v4133_v62  ;;  %v4135_v42 = vpop.f32.mrf.mxu0  ;;  %v1221_v62 = vadd.f32 %v2892_v40, %v4061_v14  ;;  %v1509_v27 = vadd.f32 %v4103_v17, %v1225_v0 }
 0x151   :  { %4344 = vst [vmem:[#allocation11_spill] sm:$0xff] %v4135_v42  ;;  %v4137_v9 = vpop.f32.mrf.mxu1  ;;  %v1219_v42 = vadd.f32 %v1158_v19, %v4063_v15  ;;  %v1504_v15 = vadd.f32 %v4089_v53, %v1220_v2  ;;  %v4357_v2 = vld [vmem:[#allocation12_spill] sm:$0xff] }
 0x152   :  { %4345 = vst [vmem:[#allocation16_spill] sm:$0xff] %v4137_v9  ;;  %v2963_v5 = vpop.f32.mrf.mxu0  ;;  %v1224_v9 = vadd.f32 %v2895_v7, %v4065_v18  ;;  %v1502_v18 = vadd.f32 %v4091_v4, %v1218_v52  ;;  %v1232_v4 = vadd.f32 %v2903_v32, %v4081_v22  ;;  %v1513_v7 = vadd.f32 %v4109_v28, %v1229_v51  ;;  %v4349_v28 = vld [vmem:[#allocation4_spill] sm:$0xff]  ;;  %v4350_v32 = vld [vmem:[#allocation3_spill] sm:$0xff] }
 0x153   :  { %v4139_v1 = vpop.f32.mrf.mxu1  ;;  %v1503_v23 = vadd.f32 %v4095_v10, %v1219_v42  ;;  %v1692_v30 = vadd.f32 %v2955_v55, %v1504_v15  ;;  %v4358_v42 = vld [vmem:[#allocation8_spill] sm:$0xff] }
 0x154   :  { %4346 = vst [vmem:[#allocation17_spill] sm:$0xff] %v4139_v1  ;;  %v1659_v60 = vpop.f32.mrf.mxu0  ;;  %v1222_v1 = vadd.f32 %v1171_v8, %v4067_v25  ;;  %v1505_v25 = vadd.f32 %v4093_v54, %v1221_v62  ;;  %v1230_v54 = vadd.f32 %v1203_v6, %v4083_v31  ;;  %v1233_v8 = vadd.f32 %v2904_v36, %v4085_v3  ;;  %v4351_v6 = vld [vmem:[#allocation2_spill] sm:$0xff] }
 0x155   :  { %v4141_v43 = vpop.f32.mrf.mxu1  ;;  %v1691_v16 = vadd.f32 %v1630_v48, %v1503_v23  ;;  %v1516_v3 = vadd.f32 %v4350_v32, %v1232_v4  ;;  %v4354_v48 = vld [vmem:[#allocation6_spill] sm:$0xff]  ;;  %v4359_v51 = vld [vmem:[#allocation7_spill] sm:$0xff] }
 0x156   :  { %4347 = vst [vmem:[#allocation18_spill] sm:$0xff] %v4141_v43  ;;  %v2964_v50 = vpop.f32.mrf.mxu0  ;;  %v1228_v43 = vadd.f32 %v2899_v12, %v4073_v44  ;;  %v1508_v44 = vadd.f32 %v4097_v39, %v1224_v9  ;;  %v1511_v39 = vadd.f32 %v1474_v29, %v1227_v46  ;;  %v1690_v12 = vadd.f32 %v1627_v45, %v1502_v18 }
 0x157   :  { %v4143_v57 = vpop.f32.mrf.mxu1  ;;  %v1693_v59 = vadd.f32 %v2956_v56, %v1505_v25  ;;  %v1701_v31 = vadd.f32 %v2964_v50, %v1513_v7  ;;  %v1507_v29 = vadd.f32 %v4349_v28, %v1223_v63  ;;  %v4355_v50 = vld [vmem:[#allocation5_spill] sm:$0xff]  ;;  %v1879_v52 = vadd.f32 %v4357_v2, %v1691_v16 }
 0x158   :  { %4348 = vst [vmem:[#allocation19_spill] sm:$0xff] %v4143_v57  ;;  %v1662_v35 = vpop.f32.mrf.mxu0  ;;  %v1226_v57 = vadd.f32 %v1187_v20, %v4075_v61  ;;  %v1506_v61 = vadd.f32 %v4099_v11, %v1222_v1  ;;  %v1512_v53 = vadd.f32 %v2931_v13, %v1228_v43  ;;  %v1231_v11 = vadd.f32 %v1206_v58, %v4087_v49  ;;  %v4353_v43 = vld [vmem:[#allocation9_spill] sm:$0xff] }
 0x159   :  { %v4149_v41 = vpop.f32.mrf.mxu1  ;;  %v1696_v20 = vadd.f32 %v2959_v33, %v1508_v44  ;;  %v1514_v49 = vadd.f32 %v4351_v6, %v1230_v54  ;;  %v1699_v45 = vadd.f32 %v1662_v35, %v1511_v39  ;;  %v1878_v33 = vadd.f32 %v4355_v50, %v1690_v12  ;;  %v4362_v35 = vld [vmem:[#allocation15_spill] sm:$0xff] }
 0x15a   :  { %v4153_v34 = vpop.f32.mrf.mxu0  ;;  %v1510_v19 = vadd.f32 %v1471_v24, %v1226_v57  ;;  %v1694_v22 = vadd.f32 %v1643_v38, %v1506_v61  ;;  %v1700_v24 = vadd.f32 %v2963_v5, %v1512_v53  ;;  %v4352_v57 = vld [vmem:[#allocation10_spill] sm:$0xff]  ;;  %v1515_v55 = vadd.f32 %v4353_v43, %v1231_v11  ;;  %v4356_v38 = vld [vmem:[#allocation13_spill] sm:$0xff]  ;;  %v4364_v11 = vld [vmem:[#allocation11_spill] sm:$0xff] }
 0x15b   :  { %v4157_v47 = vpop.f32.mrf.mxu1  ;;  %v1517_v58 = vadd.f32 %v4352_v57, %v1233_v8  ;;  %v1880_v5 = vadd.f32 %v4354_v48, %v1692_v30  ;;  %v1881_v17 = vadd.f32 %v4356_v38, %v1693_v59  ;;  %v1884_v9 = vadd.f32 %v4358_v42, %v1696_v20  ;;  %v4360_v15 = vld [vmem:[#allocation17_spill] sm:$0xff] }
 0x15c   :  { %v4161_v14 = vpop.f32.mrf.mxu0  ;;  %v1698_v1 = vadd.f32 %v1659_v60, %v1510_v19  ;;  %v1882_v46 = vadd.f32 %v4359_v51, %v1694_v22  ;;  %v1888_v18 = vadd.f32 %v4360_v15, %v1700_v24  ;;  %v1697_v44 = vadd.f32 %v4362_v35, %v1509_v27 }
 0x15d   :  { %v4167_v37 = vpop.f32.mrf.mxu1  ;;  %v4363_v19 = vld [vmem:[#allocation18_spill] sm:$0xff]  ;;  %v1887_v54 = vadd.f32 %v4149_v41, %v1699_v45  ;;  %v1695_v30 = vadd.f32 %v4364_v11, %v1507_v29  ;;  %v1704_v12 = vadd.f32 %v4153_v34, %v1516_v3 }
 0x15e   :  { %v2968_v40 = vpop.f32.mrf.mxu0  ;;  %v1886_v4 = vadd.f32 %v4363_v19, %v1698_v1  ;;  %v4365_v3 = vld [vmem:[#allocation14_spill] sm:$0xff] }
 0x15f   :  { %v4177_v10 = vpop.f32.mrf.mxu1  ;;  %v4361_v25 = vld [vmem:[#allocation19_spill] sm:$0xff]  ;;  %v1705_v22 = vadd.f32 %v2968_v40, %v1517_v58  ;;  %v1885_v6 = vadd.f32 %v4365_v3, %v1697_v44  ;;  %v1702_v40 = vadd.f32 %v4161_v14, %v1514_v49 }
 0x160   :  { %v1678_v21 = vpop.f32.mrf.mxu0  ;;  %v1889_v23 = vadd.f32 %v4361_v25, %v1701_v31 }
 0x161   :  { %v4182_v13 = vpop.f32.mrf.mxu1  ;;  %v1893_v49 = vadd.f32 %v4177_v10, %v1705_v22 }
 0x162   :  { %v3019_v26 = vpop.f32.mrf.mxu0 }
 0x163   :  { %v3027_v36 = vpop.f32.mrf.mxu1  ;;  %v2080_v61 = vadd.f32 %v3019_v26, %v1880_v5  ;;  %v4366_v5 = vld [vmem:[#allocation16_spill] sm:$0xff] }
 0x164   :  { %v2015_v56 = vpop.f32.mrf.mxu0  ;;  %v4201_v7 = vadd.f32 %v3027_v36, %v1888_v18  ;;  %v1703_v36 = vadd.f32 %v1678_v21, %v1515_v55  ;;  %v1883_v14 = vadd.f32 %v4366_v5, %v1695_v30  ;;  %v1892_v21 = vadd.f32 %v4157_v47, %v1704_v12 }
 0x165   :  { %v2047_v62 = vpop.f32.mrf.mxu1  ;;  %v2078_v0 = vadd.f32 %v2015_v56, %v1878_v33  ;;  %v2197_v43 = vmul.f32 %v2080_v61, %v2080_v61 }
 0x166   :  { %v3020_v60 = vpop.f32.mrf.mxu0  ;;  %v4207_v24 = vadd.f32 %v2047_v62, %v1886_v4  ;;  %v1890_v62 = vadd.f32 %v4167_v37, %v1702_v40  ;;  %v1891_v42 = vadd.f32 %v4182_v13, %v1703_v36 }
 0x167   :  { %v2081_v63 = vadd.f32 %v3020_v60, %v1881_v17  ;;  %v3028_v53 = vpop.f32.mrf.mxu1  ;;  %v2195_v27 = vmul.f32 %v2078_v0, %v2078_v0 }
 0x168   :  { %v4203_v39 = vadd.f32 %v3028_v53, %v1889_v23  ;;  %v2018_v8 = vpop.f32.mrf.mxu0  ;;  %v2203_v30 = vmul.f32 %v4207_v24, %v4207_v24 }
 0x169   :  { %v2562_v59 = vpack.c.bf16 %v2081_v63, %v2080_v61  ;;  %v2079_v16 = vadd.f32 %v2018_v8, %v1879_v52  ;;  %v2050_v20 = vpop.f32.mrf.mxu1  ;;  %v2198_v55 = vmul.f32 %v2081_v63, %v2081_v63 }
 0x16a   :  { %v2582_v31 = vpack.c.bf16 %v4203_v39, %v4201_v7  ;;  %v4211_v26 = vadd.f32 %v2050_v20, %v1887_v54  ;;  %v3023_v41 = vpop.f32.mrf.mxu0 }
 0x16b   :  { %2594 = vst [vmem:[%s4266_s5 + $0x8] sm:$0xff] %v2562_v59   ;;  %v2557_v28 = vpack.c.bf16 %v2079_v16, %v2078_v0  ;;  %v2174_v29 = vadd.f32 %v2079_v16, %v2078_v0  ;;  %v2196_v34 = vmul.f32 %v2079_v16, %v2079_v16  ;;  %v3031_v32 = vpop.f32.mrf.mxu1  ;;  %v2084_v38 = vadd.f32 %v3023_v41, %v1884_v9 }
 0x16c   :  { %2598 = vst [vmem:[%s4266_s5 + $0x28] sm:$0xff] %v2582_v31   ;;  %v2577_v57 = vpack.c.bf16 %v4211_v26, %v4207_v24  ;;  %v2031_v58 = vpop.f32.mrf.mxu0  ;;  %v2092_v51 = vadd.f32 %v3031_v32, %v1892_v21  ;;  %v2204_v16 = vmul.f32 %v4211_v26, %v4211_v26  ;;  %v2205_v31 = vmul.f32 %v4201_v7, %v4201_v7 }
 0x16d   :  { %2558 = vst [vmem:[%s4266_s5] sm:$0xff] %v2557_v28   ;;  %v2175_v1 = vadd.f32 %v2174_v29, %v2080_v61  ;;  %v2211_v45 = vadd.f32 %v2196_v34, %v2195_v27  ;;  %v2082_v56 = vadd.f32 %v2031_v58, %v1882_v46  ;;  %v2063_v48 = vpop.f32.mrf.mxu1  ;;  %v2201_v53 = vmul.f32 %v2084_v38, %v2084_v38 }
 0x16e   :  { %2597 = vst [vmem:[%s4266_s5 + $0x20] sm:$0xff] %v2577_v57   ;;  %v3024_v50 = vpop.f32.mrf.mxu0  ;;  %v2090_v60 = vadd.f32 %v2063_v48, %v1890_v62  ;;  %v2206_v28 = vmul.f32 %v4203_v39, %v4203_v39  ;;  %v2209_v57 = vmul.f32 %v2092_v51, %v2092_v51 }
 0x16f   :  { %v2212_v33 = vadd.f32 %v2211_v45, %v2197_v43  ;;  %v2176_v17 = vadd.f32 %v2175_v1, %v2081_v63  ;;  %v2085_v2 = vadd.f32 %v3024_v50, %v1885_v6  ;;  %v3032_v52 = vpop.f32.mrf.mxu1  ;;  %v2199_v10 = vmul.f32 %v2082_v56, %v2082_v56 }
 0x170   :  { %v2093_v46 = vadd.f32 %v3032_v52, %v1893_v49  ;;  %v2034_v47 = vpop.f32.mrf.mxu0 }
 0x171   :  { %v2177_v15 = vadd.f32 %v2176_v17, %v2082_v56  ;;  %v2213_v18 = vadd.f32 %v2212_v33, %v2198_v55  ;;  %v2572_v25 = vpack.c.bf16 %v2085_v2, %v2084_v38  ;;  %v2066_v23 = vpop.f32.mrf.mxu1  ;;  %v2083_v44 = vadd.f32 %v2034_v47, %v1883_v14 }
 0x172   :  { %v2592_v35 = vpack.c.bf16 %v2093_v46, %v2092_v51  ;;  %v2091_v61 = vadd.f32 %v2066_v23, %v1891_v42  ;;  %v2202_v54 = vmul.f32 %v2085_v2, %v2085_v2  ;;  %v2210_v43 = vmul.f32 %v2093_v46, %v2093_v46 }
 0x173   :  { %v2214_v9 = vadd.f32 %v2213_v18, %v2199_v10  ;;  %2596 = vst [vmem:[%s4266_s5 + $0x18] sm:$0xff] %v2572_v25   ;;  %v2567_v37 = vpack.c.bf16 %v2083_v44, %v2082_v56  ;;  %v2178_v13 = vadd.f32 %v2177_v15, %v2083_v44  ;;  %v2200_v0 = vmul.f32 %v2083_v44, %v2083_v44 }
 0x174   :  { %2600 = vst [vmem:[%s4266_s5 + $0x38] sm:$0xff] %v2592_v35   ;;  %v2587_v63 = vpack.c.bf16 %v2091_v61, %v2090_v60  ;;  %v2208_v40 = vmul.f32 %v2091_v61, %v2091_v61  ;;  %v2232_v14 = vlaneseq }
 0x175   :  { %2595 = vst [vmem:[%s4266_s5 + $0x10] sm:$0xff] %v2567_v37   ;;  %v2179_v19 = vadd.f32 %v2178_v13, %v2084_v38  ;;  %v2215_v4 = vadd.f32 %v2214_v9, %v2200_v0 }
 0x176   :  { %2599 = vst [vmem:[%s4266_s5 + $0x30] sm:$0xff] %v2587_v63   ;;  %v2233_v50 = vshrl.u32 %v2232_v14, 7 }
 0x177   :  { %v2180_v8 = vadd.f32 %v2179_v19, %v2085_v2  ;;  %v2216_v11 = vadd.f32 %v2215_v4, %v2201_v53 }
 0x178   :  { %vm2234_vm1 = vcmp.eq.s32.totalorder %v2233_v50, 0  ;;  %vm2236_vm2 = vcmp.eq.s32.totalorder %v2233_v50, 1 }
 0x179   :  { %v2181_v12 = vadd.f32 %v2180_v8, %v4207_v24  ;;  %v2217_v59 = vadd.f32 %v2216_v11, %v2202_v54  ;;  %v2207_v24 = vmul.f32 %v2090_v60, %v2090_v60 }
 0x17b   :  { %v2218_v20 = vadd.f32 %v2217_v59, %v2203_v30  ;;  %v2182_v22 = vadd.f32 %v2181_v12, %v4211_v26 }
 0x17d   :  { %v2183_v41 = vadd.f32 %v2182_v22, %v4201_v7  ;;  %v2219_v27 = vadd.f32 %v2218_v20, %v2204_v16 }
 0x17f   :  { %v2184_v29 = vadd.f32 %v2183_v41, %v4203_v39  ;;  %v2220_v34 = vadd.f32 %v2219_v27, %v2205_v31 }
 0x181   :  { %v2185_v32 = vadd.f32 %v2184_v29, %v2090_v60  ;;  %v2221_v3 = vadd.f32 %v2220_v34, %v2206_v28 }
 0x183   :  { %v2186_v6 = vadd.f32 %v2185_v32, %v2091_v61  ;;  %v2222_v36 = vadd.f32 %v2221_v3, %v2207_v24 }
 0x185   :  { %v2187_v26 = vadd.f32 %v2186_v6, %v2092_v51  ;;  %v2223_v58 = vadd.f32 %v2222_v36, %v2208_v40 }
 0x187   :  { %v2188_v1 = vadd.f32 %v2187_v26, %v2093_v46  ;;  %v2224_v45 = vadd.f32 %v2223_v58, %v2209_v57 }
 0x189   :  { %v2189_v7 = vrot.slane %v2188_v1, 4  ;;  %v2225_v56 = vadd.f32 %v2224_v45, %v2210_v43 }
 0x18b   :  { %v2190_v48 = vadd.f32 %v2189_v7, %v2188_v1  ;;  %v2226_v5 = vrot.slane %v2225_v56, 4 }
 0x18d   :  { %v2191_v21 = vrot.slane %v2190_v48, 2  ;;  %v2227_v39 = vadd.f32 %v2226_v5, %v2225_v56 }
 0x18f   :  { %v2192_v49 = vadd.f32 %v2191_v21, %v2190_v48  ;;  %v2228_v55 = vrot.slane %v2227_v39, 2 }
 0x191   :  { %v2193_v33 = vrot.slane %v2192_v49, 1  ;;  %v2229_v38 = vadd.f32 %v2228_v55, %v2227_v39 }
 0x193   :  { %v2194_v17 = vadd.f32 %v2193_v33, %v2192_v49  ;;  %v2230_v2 = vrot.slane %v2229_v38, 1 }
 0x195   :  { %v2231_v52 = vadd.f32 %v2230_v2, %v2229_v38  ;;  %v2235_v62 = vsel %vm2234_vm1, %v2194_v17, 0.0 }
 0x197   :  { %v2237_v42 = vsel %vm2236_vm2, %v2231_v52, 0.0 }
 0x198   :  { %v2238_v51 = vadd.f32 %v2237_v42, %v2235_v62 }
 0x19a   :  { %2239 = vst [vmem:[%s4267_s6] sm:$0xff] %v2238_v51 }

</bundles_post_ra>
